<compile_context>
chip_gen: v7x
topology: tpu7x:2x2x1
jax: 0.10.0
libtpu: 0.0.40
codegen_flags: <defaults>
</compile_context>

<pallas_src>
import functools

import jax
import jax.numpy as jnp
from jax.experimental import pallas as pl
from jax.experimental.pallas import tpu as pltpu


_COMPUTE_DTYPE = jnp.bfloat16   # MXU-input dtype; accumulation / epilogue stay f32


def _round_up(x, m):
    return (x + m - 1) // m * m


def _chain(h, wb_refs, out_dtype):
    """Run the 8-layer encoder+decoder chain on activation block h (rows, input_size)."""
    for idx in range(8):
        w_ref = wb_refs[2 * idx]       # (in, out)  bf16, VMEM-resident
        b_ref = wb_refs[2 * idx + 1]   # (1, out)   f32,  VMEM-resident
        y = jnp.dot(h.astype(_COMPUTE_DTYPE), w_ref[...],
                    preferred_element_type=jnp.float32)
        y = y + b_ref[...]                      # f32 epilogue (v5e-safe)
        if idx not in (3, 7):                   # no activation after encoder L4 / decoder L8
            y = jnp.maximum(y, 0.0)
        h = y                                   # keep f32 between layers
    return h.astype(out_dtype)


def autoencoder_kernel(*refs, split):
    x_ref = refs[0]          # (tb, input_size) f32
    wb = refs[1:17]          # 8 x (W bf16, b f32)
    o_ref = refs[17]         # (tb, input_size) f32
    if split:
        # Two independent half-tiles -> scheduler can overlap MXU (matmul of one half)
        # with the VPU epilogue (bias/ReLU of the other half).
        half = x_ref.shape[0] // 2
        o_ref[pl.ds(0, half), :] = _chain(x_ref[pl.ds(0, half), :], wb, o_ref.dtype)
        o_ref[pl.ds(half, half), :] = _chain(x_ref[pl.ds(half, half), :], wb, o_ref.dtype)
    else:
        o_ref[...] = _chain(x_ref[...], wb, o_ref.dtype)


def prepare_params(params):
    """One-time conversion (call OUTSIDE jit): weights -> bf16, biases -> f32."""
    return [(w_t.astype(_COMPUTE_DTYPE), b.astype(jnp.float32)) for w_t, b in params]


def autoencoder_forward(x, params, *, tile_batch=512):
    """x: (B, input_size) f32.  params: 8 pairs (W_t (in,out) bf16, b (1,out) f32),
    as produced by `prepare_params` (pre-converted once, outside the jitted path)."""
    B, input_size = x.shape

    tile_batch = max(8, _round_up(int(tile_batch), 8))
    if B <= min(tile_batch, 64):
        tb = B                                           # single grid step, whole batch
    else:
        # cap the tile so the grid has >= 2 steps (v7x megacore has something to shard)
        tb = min(tile_batch, _round_up(pl.cdiv(B, 2), 8))
    Bp = _round_up(B, tb)

    x_in = x
    if Bp != B:
        x_in = jnp.pad(x, ((0, Bp - B), (0, 0)))

    # In-kernel 2-way split only when each half keeps M >= 128 (amortized MXU fill/drain).
    split = (tb >= 256) and (tb % 16 == 0)

    flat_params = []
    for w_t, b in params:
        flat_params.append(w_t)
        flat_params.append(b)

    # Grid-invariant operands: whole array resident in VMEM, single-buffered.
    vmem_resident = pl.BlockSpec(memory_space=pltpu.MemorySpace.VMEM)
    w_specs = [vmem_resident] * len(flat_params)

    flops = 2 * B * sum(int(w.shape[0]) * int(w.shape[1]) for w, _ in params)
    bytes_accessed = (
        B * input_size * x.dtype.itemsize            # x read
        + B * input_size * 4                         # f32 output write
        + sum(int(w.size) * w.dtype.itemsize + int(b.size) * b.dtype.itemsize
              for w, b in params)
    )

    out = pl.pallas_call(
        functools.partial(autoencoder_kernel, split=split),
        out_shape=jax.ShapeDtypeStruct((Bp, input_size), jnp.float32),
        grid_spec=pl.GridSpec(
            grid=(Bp // tb,),
            in_specs=[pl.BlockSpec((tb, input_size), lambda i: (i, 0))] + w_specs,
            out_specs=pl.BlockSpec((tb, input_size), lambda i: (i, 0)),
        ),
        compiler_params=pltpu.CompilerParams(
            dimension_semantics=("parallel",),
        ),
        cost_estimate=pl.CostEstimate(
            flops=flops, transcendentals=0, bytes_accessed=bytes_accessed),
    )(x_in, *flat_params)

    return out[:B] if Bp != B else out


def init_params(key, input_size):
    """Deterministic init mimicking nn.Linear's U(-1/sqrt(fan_in), 1/sqrt(fan_in)).
    Returns list of (W_transposed (in, out), bias (1, out)) f32 for the 8 layers."""
    h1 = input_size // 5 * 4
    h2 = input_size // 5 * 3
    h3 = input_size // 5 * 2
    h4 = input_size // 5 * 1
    dims = [
        (input_size, h1), (h1, h2), (h2, h3), (h3, h4),   # encoder
        (h4, h3), (h3, h2), (h2, h1), (h1, input_size),   # decoder
    ]
    params = []
    for (fan_in, fan_out) in dims:
        key, kw, kb = jax.random.split(key, 3)
        bound = 1.0 / jnp.sqrt(jnp.float32(fan_in))
        w_t = jax.random.uniform(kw, (fan_in, fan_out), jnp.float32, -bound, bound)
        b = jax.random.uniform(kb, (1, fan_out), jnp.float32, -bound, bound)
        params.append((w_t, b))
    return params


def reference_forward(x, params):
    # TODO(synk): activation is a constructor argument in the PyTorch module; ReLU assumed,
    #             with no activation after the encoder's last layer (L4) or decoder's (L8).
    h = x
    for idx, (w_t, b) in enumerate(params):
        h = h @ w_t + b
        if idx not in (3, 7):
            h = jnp.maximum(h, 0.0)
    return h


if __name__ == "__main__":
    input_size = 640          # -> hidden sizes 512, 384, 256, 128 (lane aligned)

    key = jax.random.PRNGKey(0)
    key, kx = jax.random.split(key)
    params = init_params(key, input_size)
    prepped = prepare_params(params)   # one-time bf16 weight conversion, outside jit

    # (1) small batch: whole batch in a single grid step
    x1 = jax.random.normal(kx, (32, input_size), jnp.float32)
    ref1 = reference_forward(x1, params)
    fwd = jax.jit(functools.partial(autoencoder_forward, tile_batch=512))
    out1 = jax.block_until_ready(fwd(x1, prepped))
    assert out1.shape == (32, input_size)
    assert jnp.allclose(out1, ref1, atol=5e-2, rtol=5e-2), "mismatch (single-step)"

    # (2) multi-step grid: exercises batch tiling with VMEM-resident weights
    x2 = jax.random.normal(jax.random.PRNGKey(1), (48, input_size), jnp.float32)
    ref2 = reference_forward(x2, params)
    fwd_tiled = jax.jit(functools.partial(autoencoder_forward, tile_batch=16))
    out2 = jax.block_until_ready(fwd_tiled(x2, prepped))
    assert jnp.allclose(out2, ref2, atol=5e-2, rtol=5e-2), "mismatch (tiled)"

    # (3) larger batch: >=2 grid steps (megacore) + in-kernel 2-way half-tile split
    x3 = jax.random.normal(jax.random.PRNGKey(2), (512, input_size), jnp.float32)
    ref3 = reference_forward(x3, params)
    fwd_big = jax.jit(autoencoder_forward)
    out3 = jax.block_until_ready(fwd_big(x3, prepped))
    assert out3.shape == (512, input_size)
    assert jnp.allclose(out3, ref3, atol=5e-2, rtol=5e-2), "mismatch (split/megacore)"

    print("KERNEL_OK")
</pallas_src>

<mosaic_0001>
module attributes {stable_mosaic.version = 11 : i64} {
  func.func @autoencoder_kernel(%arg0: i32, %arg1: memref<32x640xf32, #tpu.memory_space<vmem>>, %arg2: memref<640x512xbf16, #tpu.memory_space<vmem>>, %arg3: memref<1x512xf32, #tpu.memory_space<vmem>>, %arg4: memref<512x384xbf16, #tpu.memory_space<vmem>>, %arg5: memref<1x384xf32, #tpu.memory_space<vmem>>, %arg6: memref<384x256xbf16, #tpu.memory_space<vmem>>, %arg7: memref<1x256xf32, #tpu.memory_space<vmem>>, %arg8: memref<256x128xbf16, #tpu.memory_space<vmem>>, %arg9: memref<1x128xf32, #tpu.memory_space<vmem>>, %arg10: memref<128x256xbf16, #tpu.memory_space<vmem>>, %arg11: memref<1x256xf32, #tpu.memory_space<vmem>>, %arg12: memref<256x384xbf16, #tpu.memory_space<vmem>>, %arg13: memref<1x384xf32, #tpu.memory_space<vmem>>, %arg14: memref<384x512xbf16, #tpu.memory_space<vmem>>, %arg15: memref<1x512xf32, #tpu.memory_space<vmem>>, %arg16: memref<512x640xbf16, #tpu.memory_space<vmem>>, %arg17: memref<1x640xf32, #tpu.memory_space<vmem>>, %arg18: memref<32x640xf32, #tpu.memory_space<vmem>>) attributes {dimension_semantics = [#tpu.dimension_semantics<parallel>], iteration_bounds = array<i64: 1>, scalar_prefetch = 0 : i64, scratch_operands = 0 : i64, tpu.core_type = #tpu.core_type<tc>, window_params = [{transform_indices = @transform_0, window_bounds = array<i64: 32, 640>}, {pipeline_mode = #tpu.pipeline_mode<synchronous>, transform_indices = @transform_1, window_bounds = array<i64: 640, 512>}, {pipeline_mode = #tpu.pipeline_mode<synchronous>, transform_indices = @transform_2, window_bounds = array<i64: 1, 512>}, {pipeline_mode = #tpu.pipeline_mode<synchronous>, transform_indices = @transform_3, window_bounds = array<i64: 512, 384>}, {pipeline_mode = #tpu.pipeline_mode<synchronous>, transform_indices = @transform_4, window_bounds = array<i64: 1, 384>}, {pipeline_mode = #tpu.pipeline_mode<synchronous>, transform_indices = @transform_5, window_bounds = array<i64: 384, 256>}, {pipeline_mode = #tpu.pipeline_mode<synchronous>, transform_indices = @transform_6, window_bounds = array<i64: 1, 256>}, {pipeline_mode = #tpu.pipeline_mode<synchronous>, transform_indices = @transform_7, window_bounds = array<i64: 256, 128>}, {pipeline_mode = #tpu.pipeline_mode<synchronous>, transform_indices = @transform_8, window_bounds = array<i64: 1, 128>}, {pipeline_mode = #tpu.pipeline_mode<synchronous>, transform_indices = @transform_9, window_bounds = array<i64: 128, 256>}, {pipeline_mode = #tpu.pipeline_mode<synchronous>, transform_indices = @transform_10, window_bounds = array<i64: 1, 256>}, {pipeline_mode = #tpu.pipeline_mode<synchronous>, transform_indices = @transform_11, window_bounds = array<i64: 256, 384>}, {pipeline_mode = #tpu.pipeline_mode<synchronous>, transform_indices = @transform_12, window_bounds = array<i64: 1, 384>}, {pipeline_mode = #tpu.pipeline_mode<synchronous>, transform_indices = @transform_13, window_bounds = array<i64: 384, 512>}, {pipeline_mode = #tpu.pipeline_mode<synchronous>, transform_indices = @transform_14, window_bounds = array<i64: 1, 512>}, {pipeline_mode = #tpu.pipeline_mode<synchronous>, transform_indices = @transform_15, window_bounds = array<i64: 512, 640>}, {pipeline_mode = #tpu.pipeline_mode<synchronous>, transform_indices = @transform_16, window_bounds = array<i64: 1, 640>}, {transform_indices = @transform_17, window_bounds = array<i64: 32, 640>}]} {
    %c0 = arith.constant 0 : index
    %c0_0 = arith.constant 0 : index
    %0 = vector.load %arg1[%c0, %c0_0] : memref<32x640xf32, #tpu.memory_space<vmem>>, vector<32x640xf32>
    %1 = arith.truncf %0 : vector<32x640xf32> to vector<32x640xbf16>
    %c0_1 = arith.constant 0 : index
    %c0_2 = arith.constant 0 : index
    %2 = vector.load %arg2[%c0_1, %c0_2] : memref<640x512xbf16, #tpu.memory_space<vmem>>, vector<640x512xbf16>
    %cst = arith.constant dense<0.000000e+00> : vector<32x512xf32>
    %3 = tpu.matmul %1, %2, %cst {dimension_numbers = #tpu.dot_dimension_numbers<[1], [0], [0], [1], [0, 0, 1, 1], [], []>} : vector<32x640xbf16>, vector<640x512xbf16>, vector<32x512xf32> -> vector<32x512xf32>
    %c0_3 = arith.constant 0 : index
    %c0_4 = arith.constant 0 : index
    %4 = vector.load %arg3[%c0_3, %c0_4] : memref<1x512xf32, #tpu.memory_space<vmem>>, vector<1x512xf32>
    %5 = vector.broadcast %4 : vector<1x512xf32> to vector<32x512xf32>
    %6 = arith.addf %3, %5 : vector<32x512xf32>
    %cst_5 = arith.constant 0.000000e+00 : f32
    %7 = vector.broadcast %cst_5 : f32 to vector<32x512xf32>
    %8 = arith.maximumf %6, %7 : vector<32x512xf32>
    %9 = arith.truncf %8 : vector<32x512xf32> to vector<32x512xbf16>
    %c0_6 = arith.constant 0 : index
    %c0_7 = arith.constant 0 : index
    %10 = vector.load %arg4[%c0_6, %c0_7] : memref<512x384xbf16, #tpu.memory_space<vmem>>, vector<512x384xbf16>
    %cst_8 = arith.constant dense<0.000000e+00> : vector<32x384xf32>
    %11 = tpu.matmul %9, %10, %cst_8 {dimension_numbers = #tpu.dot_dimension_numbers<[1], [0], [0], [1], [0, 0, 1, 1], [], []>} : vector<32x512xbf16>, vector<512x384xbf16>, vector<32x384xf32> -> vector<32x384xf32>
    %c0_9 = arith.constant 0 : index
    %c0_10 = arith.constant 0 : index
    %12 = vector.load %arg5[%c0_9, %c0_10] : memref<1x384xf32, #tpu.memory_space<vmem>>, vector<1x384xf32>
    %13 = vector.broadcast %12 : vector<1x384xf32> to vector<32x384xf32>
    %14 = arith.addf %11, %13 : vector<32x384xf32>
    %cst_11 = arith.constant 0.000000e+00 : f32
    %15 = vector.broadcast %cst_11 : f32 to vector<32x384xf32>
    %16 = arith.maximumf %14, %15 : vector<32x384xf32>
    %17 = arith.truncf %16 : vector<32x384xf32> to vector<32x384xbf16>
    %c0_12 = arith.constant 0 : index
    %c0_13 = arith.constant 0 : index
    %18 = vector.load %arg6[%c0_12, %c0_13] : memref<384x256xbf16, #tpu.memory_space<vmem>>, vector<384x256xbf16>
    %cst_14 = arith.constant dense<0.000000e+00> : vector<32x256xf32>
    %19 = tpu.matmul %17, %18, %cst_14 {dimension_numbers = #tpu.dot_dimension_numbers<[1], [0], [0], [1], [0, 0, 1, 1], [], []>} : vector<32x384xbf16>, vector<384x256xbf16>, vector<32x256xf32> -> vector<32x256xf32>
    %c0_15 = arith.constant 0 : index
    %c0_16 = arith.constant 0 : index
    %20 = vector.load %arg7[%c0_15, %c0_16] : memref<1x256xf32, #tpu.memory_space<vmem>>, vector<1x256xf32>
    %21 = vector.broadcast %20 : vector<1x256xf32> to vector<32x256xf32>
    %22 = arith.addf %19, %21 : vector<32x256xf32>
    %cst_17 = arith.constant 0.000000e+00 : f32
    %23 = vector.broadcast %cst_17 : f32 to vector<32x256xf32>
    %24 = arith.maximumf %22, %23 : vector<32x256xf32>
    %25 = arith.truncf %24 : vector<32x256xf32> to vector<32x256xbf16>
    %c0_18 = arith.constant 0 : index
    %c0_19 = arith.constant 0 : index
    %26 = vector.load %arg8[%c0_18, %c0_19] : memref<256x128xbf16, #tpu.memory_space<vmem>>, vector<256x128xbf16>
    %cst_20 = arith.constant dense<0.000000e+00> : vector<32x128xf32>
    %27 = tpu.matmul %25, %26, %cst_20 {dimension_numbers = #tpu.dot_dimension_numbers<[1], [0], [0], [1], [0, 0, 1, 1], [], []>} : vector<32x256xbf16>, vector<256x128xbf16>, vector<32x128xf32> -> vector<32x128xf32>
    %c0_21 = arith.constant 0 : index
    %c0_22 = arith.constant 0 : index
    %28 = vector.load %arg9[%c0_21, %c0_22] : memref<1x128xf32, #tpu.memory_space<vmem>>, vector<1x128xf32>
    %29 = vector.broadcast %28 : vector<1x128xf32> to vector<32x128xf32>
    %30 = arith.addf %27, %29 : vector<32x128xf32>
    %31 = arith.truncf %30 : vector<32x128xf32> to vector<32x128xbf16>
    %c0_23 = arith.constant 0 : index
    %c0_24 = arith.constant 0 : index
    %32 = vector.load %arg10[%c0_23, %c0_24] : memref<128x256xbf16, #tpu.memory_space<vmem>>, vector<128x256xbf16>
    %cst_25 = arith.constant dense<0.000000e+00> : vector<32x256xf32>
    %33 = tpu.matmul %31, %32, %cst_25 {dimension_numbers = #tpu.dot_dimension_numbers<[1], [0], [0], [1], [0, 0, 1, 1], [], []>} : vector<32x128xbf16>, vector<128x256xbf16>, vector<32x256xf32> -> vector<32x256xf32>
    %c0_26 = arith.constant 0 : index
    %c0_27 = arith.constant 0 : index
    %34 = vector.load %arg11[%c0_26, %c0_27] : memref<1x256xf32, #tpu.memory_space<vmem>>, vector<1x256xf32>
    %35 = vector.broadcast %34 : vector<1x256xf32> to vector<32x256xf32>
    %36 = arith.addf %33, %35 : vector<32x256xf32>
    %cst_28 = arith.constant 0.000000e+00 : f32
    %37 = vector.broadcast %cst_28 : f32 to vector<32x256xf32>
    %38 = arith.maximumf %36, %37 : vector<32x256xf32>
    %39 = arith.truncf %38 : vector<32x256xf32> to vector<32x256xbf16>
    %c0_29 = arith.constant 0 : index
    %c0_30 = arith.constant 0 : index
    %40 = vector.load %arg12[%c0_29, %c0_30] : memref<256x384xbf16, #tpu.memory_space<vmem>>, vector<256x384xbf16>
    %cst_31 = arith.constant dense<0.000000e+00> : vector<32x384xf32>
    %41 = tpu.matmul %39, %40, %cst_31 {dimension_numbers = #tpu.dot_dimension_numbers<[1], [0], [0], [1], [0, 0, 1, 1], [], []>} : vector<32x256xbf16>, vector<256x384xbf16>, vector<32x384xf32> -> vector<32x384xf32>
    %c0_32 = arith.constant 0 : index
    %c0_33 = arith.constant 0 : index
    %42 = vector.load %arg13[%c0_32, %c0_33] : memref<1x384xf32, #tpu.memory_space<vmem>>, vector<1x384xf32>
    %43 = vector.broadcast %42 : vector<1x384xf32> to vector<32x384xf32>
    %44 = arith.addf %41, %43 : vector<32x384xf32>
    %cst_34 = arith.constant 0.000000e+00 : f32
    %45 = vector.broadcast %cst_34 : f32 to vector<32x384xf32>
    %46 = arith.maximumf %44, %45 : vector<32x384xf32>
    %47 = arith.truncf %46 : vector<32x384xf32> to vector<32x384xbf16>
    %c0_35 = arith.constant 0 : index
    %c0_36 = arith.constant 0 : index
    %48 = vector.load %arg14[%c0_35, %c0_36] : memref<384x512xbf16, #tpu.memory_space<vmem>>, vector<384x512xbf16>
    %cst_37 = arith.constant dense<0.000000e+00> : vector<32x512xf32>
    %49 = tpu.matmul %47, %48, %cst_37 {dimension_numbers = #tpu.dot_dimension_numbers<[1], [0], [0], [1], [0, 0, 1, 1], [], []>} : vector<32x384xbf16>, vector<384x512xbf16>, vector<32x512xf32> -> vector<32x512xf32>
    %c0_38 = arith.constant 0 : index
    %c0_39 = arith.constant 0 : index
    %50 = vector.load %arg15[%c0_38, %c0_39] : memref<1x512xf32, #tpu.memory_space<vmem>>, vector<1x512xf32>
    %51 = vector.broadcast %50 : vector<1x512xf32> to vector<32x512xf32>
    %52 = arith.addf %49, %51 : vector<32x512xf32>
    %cst_40 = arith.constant 0.000000e+00 : f32
    %53 = vector.broadcast %cst_40 : f32 to vector<32x512xf32>
    %54 = arith.maximumf %52, %53 : vector<32x512xf32>
    %55 = arith.truncf %54 : vector<32x512xf32> to vector<32x512xbf16>
    %c0_41 = arith.constant 0 : index
    %c0_42 = arith.constant 0 : index
    %56 = vector.load %arg16[%c0_41, %c0_42] : memref<512x640xbf16, #tpu.memory_space<vmem>>, vector<512x640xbf16>
    %cst_43 = arith.constant dense<0.000000e+00> : vector<32x640xf32>
    %57 = tpu.matmul %55, %56, %cst_43 {dimension_numbers = #tpu.dot_dimension_numbers<[1], [0], [0], [1], [0, 0, 1, 1], [], []>} : vector<32x512xbf16>, vector<512x640xbf16>, vector<32x640xf32> -> vector<32x640xf32>
    %c0_44 = arith.constant 0 : index
    %c0_45 = arith.constant 0 : index
    %58 = vector.load %arg17[%c0_44, %c0_45] : memref<1x640xf32, #tpu.memory_space<vmem>>, vector<1x640xf32>
    %59 = vector.broadcast %58 : vector<1x640xf32> to vector<32x640xf32>
    %60 = arith.addf %57, %59 : vector<32x640xf32>
    %c0_46 = arith.constant 0 : index
    %c0_47 = arith.constant 0 : index
    %61 = vector.load %arg18[%c0_46, %c0_47] : memref<32x640xf32, #tpu.memory_space<vmem>>, vector<32x640xf32>
    tpu.vector_store %arg18[%c0_46, %c0_47], %60 {strides = array<i32>} : memref<32x640xf32, #tpu.memory_space<vmem>>, vector<32x640xf32>,
    return
  }
  func.func @transform_0(%arg0: i32) -> (i32, i32) {
    %c0_i32 = arith.constant 0 : i32
    %c0_i32_0 = arith.constant 0 : i32
    return %arg0, %c0_i32 : i32, i32
  }
  func.func @transform_1(%arg0: i32) -> (i32, i32) {
    %c0_i32 = arith.constant 0 : i32
    %c0_i32_0 = arith.constant 0 : i32
    %c0_i32_1 = arith.constant 0 : i32
    return %c0_i32, %c0_i32_0 : i32, i32
  }
  func.func @transform_2(%arg0: i32) -> (i32, i32) {
    %c0_i32 = arith.constant 0 : i32
    %c0_i32_0 = arith.constant 0 : i32
    %c0_i32_1 = arith.constant 0 : i32
    return %c0_i32, %c0_i32_0 : i32, i32
  }
  func.func @transform_3(%arg0: i32) -> (i32, i32) {
    %c0_i32 = arith.constant 0 : i32
    %c0_i32_0 = arith.constant 0 : i32
    %c0_i32_1 = arith.constant 0 : i32
    return %c0_i32, %c0_i32_0 : i32, i32
  }
  func.func @transform_4(%arg0: i32) -> (i32, i32) {
    %c0_i32 = arith.constant 0 : i32
    %c0_i32_0 = arith.constant 0 : i32
    %c0_i32_1 = arith.constant 0 : i32
    return %c0_i32, %c0_i32_0 : i32, i32
  }
  func.func @transform_5(%arg0: i32) -> (i32, i32) {
    %c0_i32 = arith.constant 0 : i32
    %c0_i32_0 = arith.constant 0 : i32
    %c0_i32_1 = arith.constant 0 : i32
    return %c0_i32, %c0_i32_0 : i32, i32
  }
  func.func @transform_6(%arg0: i32) -> (i32, i32) {
    %c0_i32 = arith.constant 0 : i32
    %c0_i32_0 = arith.constant 0 : i32
    %c0_i32_1 = arith.constant 0 : i32
    return %c0_i32, %c0_i32_0 : i32, i32
  }
  func.func @transform_7(%arg0: i32) -> (i32, i32) {
    %c0_i32 = arith.constant 0 : i32
    %c0_i32_0 = arith.constant 0 : i32
    %c0_i32_1 = arith.constant 0 : i32
    return %c0_i32, %c0_i32_0 : i32, i32
  }
  func.func @transform_8(%arg0: i32) -> (i32, i32) {
    %c0_i32 = arith.constant 0 : i32
    %c0_i32_0 = arith.constant 0 : i32
    %c0_i32_1 = arith.constant 0 : i32
    return %c0_i32, %c0_i32_0 : i32, i32
  }
  func.func @transform_9(%arg0: i32) -> (i32, i32) {
    %c0_i32 = arith.constant 0 : i32
    %c0_i32_0 = arith.constant 0 : i32
    %c0_i32_1 = arith.constant 0 : i32
    return %c0_i32, %c0_i32_0 : i32, i32
  }
  func.func @transform_10(%arg0: i32) -> (i32, i32) {
    %c0_i32 = arith.constant 0 : i32
    %c0_i32_0 = arith.constant 0 : i32
    %c0_i32_1 = arith.constant 0 : i32
    return %c0_i32, %c0_i32_0 : i32, i32
  }
  func.func @transform_11(%arg0: i32) -> (i32, i32) {
    %c0_i32 = arith.constant 0 : i32
    %c0_i32_0 = arith.constant 0 : i32
    %c0_i32_1 = arith.constant 0 : i32
    return %c0_i32, %c0_i32_0 : i32, i32
  }
  func.func @transform_12(%arg0: i32) -> (i32, i32) {
    %c0_i32 = arith.constant 0 : i32
    %c0_i32_0 = arith.constant 0 : i32
    %c0_i32_1 = arith.constant 0 : i32
    return %c0_i32, %c0_i32_0 : i32, i32
  }
  func.func @transform_13(%arg0: i32) -> (i32, i32) {
    %c0_i32 = arith.constant 0 : i32
    %c0_i32_0 = arith.constant 0 : i32
    %c0_i32_1 = arith.constant 0 : i32
    return %c0_i32, %c0_i32_0 : i32, i32
  }
  func.func @transform_14(%arg0: i32) -> (i32, i32) {
    %c0_i32 = arith.constant 0 : i32
    %c0_i32_0 = arith.constant 0 : i32
    %c0_i32_1 = arith.constant 0 : i32
    return %c0_i32, %c0_i32_0 : i32, i32
  }
  func.func @transform_15(%arg0: i32) -> (i32, i32) {
    %c0_i32 = arith.constant 0 : i32
    %c0_i32_0 = arith.constant 0 : i32
    %c0_i32_1 = arith.constant 0 : i32
    return %c0_i32, %c0_i32_0 : i32, i32
  }
  func.func @transform_16(%arg0: i32) -> (i32, i32) {
    %c0_i32 = arith.constant 0 : i32
    %c0_i32_0 = arith.constant 0 : i32
    %c0_i32_1 = arith.constant 0 : i32
    return %c0_i32, %c0_i32_0 : i32, i32
  }
  func.func @transform_17(%arg0: i32) -> (i32, i32) {
    %c0_i32 = arith.constant 0 : i32
    %c0_i32_0 = arith.constant 0 : i32
    return %arg0, %c0_i32 : i32, i32
  }
}

</mosaic_0001>

<bundles_post_ra>
// kernel: autoencoder_forward.1
= control target key start
LH: loop header
LB: loop body
LE: loop exit
PB: predicated region body
PF: predicated region fallthrough
CT: control target
= control target key end

     0   :  { %s8441_s0 = inlined_call_operand.hbm [shape: f32[32,640], index: 0, kind: input, shape index: {}]   ;;  %s8442_s1 = inlined_call_operand.hbm [shape: bf16[640,512], index: 1, kind: input, shape index: {}]   ;;  %s8443_s2 = inlined_call_operand.vmem [shape: f32[1,512], index: 2, kind: input, shape index: {}]   ;;  %s8444_s3 = inlined_call_operand.hbm [shape: bf16[512,384], index: 3, kind: input, shape index: {}]   ;;  %s8445_s4 = inlined_call_operand.hbm [shape: f32[1,384], index: 4, kind: input, shape index: {}]   ;;  %s8446_s5 = inlined_call_operand.hbm [shape: bf16[384,256], index: 5, kind: input, shape index: {}]   ;;  %s8447_s6 = inlined_call_operand.vmem [shape: f32[1,256], index: 6, kind: input, shape index: {}]   ;;  %s8448_s7 = inlined_call_operand.hbm [shape: bf16[256,128], index: 7, kind: input, shape index: {}]   ;;  %s8449_s8 = inlined_call_operand.vmem [shape: f32[1,128], index: 8, kind: input, shape index: {}]   ;;  %s8450_s9 = inlined_call_operand.hbm [shape: bf16[128,256], index: 9, kind: input, shape index: {}]   ;;  %s8451_s10 = inlined_call_operand.vmem [shape: f32[1,256], index: 10, kind: input, shape index: {}]   ;;  %s8452_s11 = inlined_call_operand.hbm [shape: bf16[256,384], index: 11, kind: input, shape index: {}]   ;;  %s8453_s12 = inlined_call_operand.vmem [shape: f32[1,384], index: 12, kind: input, shape index: {}]   ;;  %s8454_s13 = inlined_call_operand.hbm [shape: bf16[384,512], index: 13, kind: input, shape index: {}]   ;;  %s8455_s14 = inlined_call_operand.vmem [shape: f32[1,512], index: 14, kind: input, shape index: {}]   ;;  %s8456_s15 = inlined_call_operand.hbm [shape: bf16[512,640], index: 15, kind: input, shape index: {}]   ;;  %s8457_s16 = inlined_call_operand.vmem [shape: f32[1,640], index: 16, kind: input, shape index: {}]   ;;  %s8458_s17 = inlined_call_operand.hbm [shape: f32[32,640], index: 17, kind: output, shape index: {}]  }
   0x1   :  { %8463 = sst [smem:[#allocation27_spill]] %s8441_s0 }
   0x2   :  { %8464 = sst [smem:[#allocation28_spill]] %s8442_s1 }
   0x3   :  { %8465 = sst [smem:[#allocation29_spill]] %s8457_s16 }
   0x4   :  { %8466 = sst [smem:[#allocation30_spill]] %s8458_s17 }
   0x5   :  { %22 = vsyncpa [#allocation3], 0 }
   0x6   :  { %23 = vsyncpa [#allocation6], 0 }
   0x7   :  { %24 = vsyncpa [#allocation9], 0 }
   0x8   :  { %25 = vsyncpa [#allocation12], 0 }
   0x9   :  { %26 = vsyncpa [#allocation15], 0 }
   0xa   :  { %27 = vsyncpa [#allocation18], 0 }
   0xb   :  { %28 = vsyncpa [#allocation4], 0  ;;  %s8041_s24 = smov [#allocation5]   ;;  %s8467_s28 = sld [smem:[#allocation28_spill]] }
   0xc   :  { %s46_s25 = sshll.u32 %s8041_s24, 4  ;;  %s47_s25 = int_to_ptr.vmem [resolvable:$true] %s46_s25 }
  0x11   :  { %s7785_s29 = scalar_lea.hbm %s8467_s28, 20480 }
  0x12   :  { %p7786_p0 = scmp.ne.s32.totalorder %s8467_s28, %s7785_s29  ;;  %p7789_p1 = scmp.lt.u32.totalorder %s7785_s29, %s8467_s28 }
  0x14   :  { %p7791_p2 = pnand %p7789_p1, %p7786_p0 }
  0x16   :  { %7794 = shalt.err (!%p7791_p2)
}
  0x17   :  { %s7795_s1 = scalar_lea.vmem %s47_s25, 20480  ;;  %p7800_p4 = scmp.lt.s32.totalorder %s47_s25, %s47_s25 }
  0x18   :  { %p7796_p3 = scmp.ne.s32.totalorder %s47_s25, %s7795_s1  ;;  %p7801_p5 = scmp.lt.s32.totalorder %s7795_s1, %s7795_s1 }
  0x1a   :  { %p7802_p6 = por %p7801_p5, %p7800_p4 }
  0x1c   :  { %p7803_p7 = pnand %p7802_p6, %p7796_p3 }
  0x1e   :  { %7806 = shalt.err (!%p7803_p7)
}
  0x1f   :  { %s8462_s20 = smov 256   ;;  %s8043_s21 = smov 16  }
  0x20   :  { %52 = dma.hbm_to_vmem [thread:$0]  %s8467_s28, 20480, %s47_s25, [#allocation6], %s8462_s20, %s8462_s20, %s8043_s21  }
  0x21   :  { %s8044_s24 = smov [#allocation8]   ;;  %s8045_s27 = smov [#allocation11]  }
  0x22   :  { %s73_s26 = sshll.u32 %s8044_s24, 4  ;;  %s96_s29 = sshll.u32 %s8045_s27, 4  ;;  %s74_s26 = int_to_ptr.vmem [resolvable:$true] %s73_s26  ;;  %s97_s29 = int_to_ptr.vmem [resolvable:$true] %s96_s29 }
  0x23   :  { %s7807_s18 = scalar_lea.hbm %s8445_s4, 48 }
  0x24   :  { %p7808_p8 = scmp.ne.s32.totalorder %s8445_s4, %s7807_s18  ;;  %p7811_p9 = scmp.lt.u32.totalorder %s7807_s18, %s8445_s4 }
  0x26   :  { %p7813_p10 = pnand %p7811_p9, %p7808_p8 }
  0x28   :  { %7816 = shalt.err (!%p7813_p10)
}
  0x29   :  { %s7817_s25 = scalar_lea.vmem %s74_s26, 48  ;;  %s7821_s28 = scalar_lea.vmem %s74_s26, 64 }
  0x2a   :  { %p7818_p11 = scmp.ne.s32.totalorder %s74_s26, %s7817_s25  ;;  %p7822_p12 = scmp.lt.s32.totalorder %s74_s26, %s74_s26 }
  0x2b   :  { %p7823_p13 = scmp.lt.s32.totalorder %s7821_s28, %s7817_s25 }
  0x2d   :  { %p7824_p0 = por %p7823_p13, %p7822_p12 }
  0x2f   :  { %p7825_p1 = pnand %p7824_p0, %p7818_p11 }
  0x31   :  { %7828 = shalt.err (!%p7825_p1)
}
  0x32   :  { %76 = dma.hbm_to_vmem [thread:$0]  %s8445_s4, 48, %s74_s26, [#allocation9]  }
  0x33   :  { %s7829_s16 = scalar_lea.hbm %s8448_s7, 2048 }
  0x34   :  { %p7830_p2 = scmp.ne.s32.totalorder %s8448_s7, %s7829_s16  ;;  %p7833_p3 = scmp.lt.u32.totalorder %s7829_s16, %s8448_s7 }
  0x36   :  { %p7835_p4 = pnand %p7833_p3, %p7830_p2 }
  0x38   :  { %7838 = shalt.err (!%p7835_p4)
}
  0x39   :  { %s7839_s19 = scalar_lea.vmem %s97_s29, 2048  ;;  %p7844_p6 = scmp.lt.s32.totalorder %s97_s29, %s97_s29 }
  0x3a   :  { %p7840_p5 = scmp.ne.s32.totalorder %s97_s29, %s7839_s19  ;;  %p7845_p7 = scmp.lt.s32.totalorder %s7839_s19, %s7839_s19 }
  0x3c   :  { %p7846_p8 = por %p7845_p7, %p7844_p6 }
  0x3e   :  { %p7847_p9 = pnand %p7846_p8, %p7840_p5 }
  0x40   :  { %7850 = shalt.err (!%p7847_p9)
}
  0x41   :  { %s8046_s4 = smov 64   ;;  %s8047_s26 = smov 4  }
  0x42   :  { %102 = dma.hbm_to_vmem [thread:$0]  %s8448_s7, 2048, %s97_s29, [#allocation12], %s8046_s4, %s8046_s4, %s8047_s26  }
  0x43   :  { %s8048_s28 = smov [#allocation14]   ;;  %s8049_s23 = smov [#allocation2]  }
  0x44   :  { %s124_s22 = sshll.u32 %s8048_s28, 4  ;;  %s34_s24 = sshll.u32 %s8049_s23, 4  ;;  %s125_s22 = int_to_ptr.vmem [resolvable:$true] %s124_s22  ;;  %s35_s24 = int_to_ptr.vmem [resolvable:$true] %s34_s24 }
  0x45   :  { %s7851_s17 = scalar_lea.hbm %s8452_s11, 6144 }
  0x46   :  { %p7852_p10 = scmp.ne.s32.totalorder %s8452_s11, %s7851_s17  ;;  %p7855_p11 = scmp.lt.u32.totalorder %s7851_s17, %s8452_s11 }
  0x48   :  { %p7857_p12 = pnand %p7855_p11, %p7852_p10 }
  0x4a   :  { %7860 = shalt.err (!%p7857_p12)
}
  0x4b   :  { %s7861_s7 = scalar_lea.vmem %s125_s22, 6144  ;;  %p7866_p0 = scmp.lt.s32.totalorder %s125_s22, %s125_s22 }
  0x4c   :  { %p7862_p13 = scmp.ne.s32.totalorder %s125_s22, %s7861_s7  ;;  %p7867_p1 = scmp.lt.s32.totalorder %s7861_s7, %s7861_s7 }
  0x4e   :  { %p7868_p2 = por %p7867_p1, %p7866_p0 }
  0x50   :  { %p7869_p3 = pnand %p7868_p2, %p7862_p13 }
  0x52   :  { %7872 = shalt.err (!%p7869_p3)
}
  0x53   :  { %s8050_s29 = smov 192   ;;  %s8051_s4 = smov 12  }
  0x54   :  { %130 = dma.hbm_to_vmem [thread:$0]  %s8452_s11, 6144, %s125_s22, [#allocation15], %s8050_s29, %s8050_s29, %s8051_s4  }
  0x55   :  { %s8468_s23 = sld [smem:[#allocation27_spill]] }
  0x5b   :  { %s7873_s27 = scalar_lea.hbm %s8468_s23, 2560 }
  0x5c   :  { %p7874_p4 = scmp.ne.s32.totalorder %s8468_s23, %s7873_s27  ;;  %p7877_p5 = scmp.lt.u32.totalorder %s7873_s27, %s8468_s23 }
  0x5e   :  { %p7879_p6 = pnand %p7877_p5, %p7874_p4 }
  0x60   :  { %7882 = shalt.err (!%p7879_p6)
}
  0x61   :  { %s7883_s18 = scalar_lea.vmem %s35_s24, 2560  ;;  %p7888_p8 = scmp.lt.s32.totalorder %s35_s24, %s35_s24 }
  0x62   :  { %p7884_p7 = scmp.ne.s32.totalorder %s35_s24, %s7883_s18  ;;  %p7889_p9 = scmp.lt.s32.totalorder %s7883_s18, %s7883_s18 }
  0x64   :  { %p7890_p10 = por %p7889_p9, %p7888_p8 }
  0x66   :  { %p7891_p11 = pnand %p7890_p10, %p7884_p7 }
  0x68   :  { %7894 = shalt.err (!%p7891_p11)
}
  0x69   :  { %s8052_s11 = smov 640   ;;  %s8053_s22 = smov 40  }
  0x6a   :  { %40 = dma.hbm_to_vmem [thread:$0]  %s8468_s23, 2560, %s35_s24, [#allocation3], %s8052_s11, %s8052_s11, %s8053_s22  }
  0x6b   :  { %s8054_s26 = smov [#allocation7]   ;;  %s8055_s25 = smov [#allocation10]  }
  0x6c   :  { %s60_s1 = sshll.u32 %s8054_s26, 4  ;;  %s82_s28 = sshll.u32 %s8055_s25, 4  ;;  %s61_s1 = int_to_ptr.vmem [resolvable:$true] %s60_s1  ;;  %s83_s28 = int_to_ptr.vmem [resolvable:$true] %s82_s28 }
  0x6d   :  { %s7895_s17 = scalar_lea.hbm %s8444_s3, 12288 }
  0x6e   :  { %p7896_p12 = scmp.ne.s32.totalorder %s8444_s3, %s7895_s17  ;;  %p7899_p13 = scmp.lt.u32.totalorder %s7895_s17, %s8444_s3 }
  0x70   :  { %p7901_p0 = pnand %p7899_p13, %p7896_p12 }
  0x72   :  { %7904 = shalt.err (!%p7901_p0)
}
  0x73   :  { %s7905_s24 = scalar_lea.vmem %s61_s1, 12288  ;;  %p7910_p2 = scmp.lt.s32.totalorder %s61_s1, %s61_s1 }
  0x74   :  { %p7906_p1 = scmp.ne.s32.totalorder %s61_s1, %s7905_s24  ;;  %p7911_p3 = scmp.lt.s32.totalorder %s7905_s24, %s7905_s24 }
  0x76   :  { %p7912_p4 = por %p7911_p3, %p7910_p2 }
  0x78   :  { %p7913_p5 = pnand %p7912_p4, %p7906_p1 }
  0x7a   :  { %7916 = shalt.err (!%p7913_p5)
}
  0x7b   :  { %66 = dma.hbm_to_vmem [thread:$0]  %s8444_s3, 12288, %s61_s1, [#allocation6], %s8050_s29, %s8050_s29, %s8051_s4  }
  0x7c   :  { %s7917_s26 = scalar_lea.hbm %s8446_s5, 6144 }
  0x7d   :  { %p7918_p6 = scmp.ne.s32.totalorder %s8446_s5, %s7917_s26  ;;  %p7921_p7 = scmp.lt.u32.totalorder %s7917_s26, %s8446_s5 }
  0x7f   :  { %p7923_p8 = pnand %p7921_p7, %p7918_p6 }
  0x81   :  { %7926 = shalt.err (!%p7923_p8)
}
  0x82   :  { %s7927_s0 = scalar_lea.vmem %s83_s28, 6144  ;;  %p7932_p10 = scmp.lt.s32.totalorder %s83_s28, %s83_s28 }
  0x83   :  { %p7928_p9 = scmp.ne.s32.totalorder %s83_s28, %s7927_s0  ;;  %p7933_p11 = scmp.lt.s32.totalorder %s7927_s0, %s7927_s0 }
  0x85   :  { %p7934_p12 = por %p7933_p11, %p7932_p10 }
  0x87   :  { %p7935_p13 = pnand %p7934_p12, %p7928_p9 }
  0x89   :  { %7938 = shalt.err (!%p7935_p13)
}
  0x8a   :  { %s8056_s3 = smov 128   ;;  %s8057_s29 = smov 8  }
  0x8b   :  { %88 = dma.hbm_to_vmem [thread:$0]  %s8446_s5, 6144, %s83_s28, [#allocation9], %s8056_s3, %s8056_s3, %s8057_s29  }
  0x8c   :  { %s8058_s30 = smov [#allocation13]   ;;  %s8059_s24 = smov [#allocation16]  }
  0x8d   :  { %s110_s18 = sshll.u32 %s8058_s30, 4  ;;  %s138_s23 = sshll.u32 %s8059_s24, 4  ;;  %s111_s18 = int_to_ptr.vmem [resolvable:$true] %s110_s18  ;;  %s139_s23 = int_to_ptr.vmem [resolvable:$true] %s138_s23 }
  0x8e   :  { %s7939_s20 = scalar_lea.hbm %s8450_s9, 2048 }
  0x8f   :  { %p7940_p0 = scmp.ne.s32.totalorder %s8450_s9, %s7939_s20  ;;  %p7943_p1 = scmp.lt.u32.totalorder %s7939_s20, %s8450_s9 }
  0x91   :  { %p7945_p2 = pnand %p7943_p1, %p7940_p0 }
  0x93   :  { %7948 = shalt.err (!%p7945_p2)
}
  0x94   :  { %s7949_s5 = scalar_lea.vmem %s111_s18, 2048  ;;  %p7954_p4 = scmp.lt.s32.totalorder %s111_s18, %s111_s18 }
  0x95   :  { %p7950_p3 = scmp.ne.s32.totalorder %s111_s18, %s7949_s5  ;;  %p7955_p5 = scmp.lt.s32.totalorder %s7949_s5, %s7949_s5 }
  0x97   :  { %p7956_p6 = por %p7955_p5, %p7954_p4 }
  0x99   :  { %p7957_p7 = pnand %p7956_p6, %p7950_p3 }
  0x9b   :  { %7960 = shalt.err (!%p7957_p7)
}
  0x9c   :  { %116 = dma.hbm_to_vmem [thread:$0]  %s8450_s9, 2048, %s111_s18, [#allocation12], %s8056_s3, %s8056_s3, %s8057_s29  }
  0x9d   :  { %s7961_s1 = scalar_lea.hbm %s8454_s13, 12288 }
  0x9e   :  { %p7962_p8 = scmp.ne.s32.totalorder %s8454_s13, %s7961_s1  ;;  %p7965_p9 = scmp.lt.u32.totalorder %s7961_s1, %s8454_s13 }
  0xa0   :  { %p7967_p10 = pnand %p7965_p9, %p7962_p8 }
  0xa2   :  { %7970 = shalt.err (!%p7967_p10)
}
  0xa3   :  { %s7971_s20 = scalar_lea.vmem %s139_s23, 12288  ;;  %p7976_p12 = scmp.lt.s32.totalorder %s139_s23, %s139_s23 }
  0xa4   :  { %p7972_p11 = scmp.ne.s32.totalorder %s139_s23, %s7971_s20  ;;  %p7977_p13 = scmp.lt.s32.totalorder %s7971_s20, %s7971_s20 }
  0xa6   :  { %p7978_p0 = por %p7977_p13, %p7976_p12 }
  0xa8   :  { %p7979_p1 = pnand %p7978_p0, %p7972_p11 }
  0xaa   :  { %7982 = shalt.err (!%p7979_p1)
}
  0xab   :  { %s8469_s9 = smov 256   ;;  %s8060_s18 = smov [#allocation17]  }
  0xac   :  { %144 = dma.hbm_to_vmem [thread:$0]  %s8454_s13, 12288, %s139_s23, [#allocation15], %s8469_s9, %s8469_s9, %s8043_s21  }
  0xad   :  { %s152_s26 = sshll.u32 %s8060_s18, 4  ;;  %s7983_s16 = scalar_lea.hbm %s8456_s15, 20480  ;;  %s153_s26 = int_to_ptr.vmem [resolvable:$true] %s152_s26 }
  0xae   :  { %p7984_p2 = scmp.ne.s32.totalorder %s8456_s15, %s7983_s16  ;;  %p7987_p3 = scmp.lt.u32.totalorder %s7983_s16, %s8456_s15 }
  0xb0   :  { %p7989_p4 = pnand %p7987_p3, %p7984_p2 }
  0xb2   :  { %7992 = shalt.err (!%p7989_p4)
}
  0xb3   :  { %s7993_s4 = scalar_lea.vmem %s153_s26, 20480  ;;  %p7998_p6 = scmp.lt.s32.totalorder %s153_s26, %s153_s26 }
  0xb4   :  { %p7994_p5 = scmp.ne.s32.totalorder %s153_s26, %s7993_s4  ;;  %p7999_p7 = scmp.lt.s32.totalorder %s7993_s4, %s7993_s4 }
  0xb6   :  { %p8000_p8 = por %p7999_p7, %p7998_p6 }
  0xb8   :  { %p8001_p9 = pnand %p8000_p8, %p7994_p5 }
  0xba   :  { %8004 = shalt.err (!%p8001_p9)
}
  0xbb   :  { %s8061_s13 = smov 320   ;;  %s8062_s21 = smov 20  }
  0xbc   :  { %158 = dma.hbm_to_vmem [thread:$0]  %s8456_s15, 20480, %s153_s26, [#allocation18], %s8061_s13, %s8061_s13, %s8062_s21  }
  0xbd   :  { %8027 = dma.done.wait [#allocation3], 2560  }
  0xbe   :  { %8028 = vsyncadd [#allocation3], 4294964736 }
  0xbf   :  { %8029 = dma.done.wait [#allocation6], 32768  }
  0xc0   :  { %8030 = vsyncadd [#allocation6], 4294934528 }
  0xc1   :  { %8031 = dma.done.wait [#allocation9], 6192  }
  0xc2   :  { %8032 = vsyncadd [#allocation9], 4294961104 }
  0xc3   :  { %8033 = dma.done.wait [#allocation12], 4096  }
  0xc4   :  { %8034 = vsyncadd [#allocation12], 4294963200 }
  0xc5   :  { %8035 = dma.done.wait [#allocation15], 18432  }
  0xc6   :  { %8036 = vsyncadd [#allocation15], 4294948864 }
  0xc7   :  { %8037 = dma.done.wait [#allocation18], 20480  }
  0xc8   :  { %8038 = vsyncadd [#allocation18], 4294946816  ;;  %v6873_v0 = vld [vmem:[#allocation5 + $0x4] ss:$16 sps:$4 sm:$0xff]   ;;  %v6875_v1 = vld [vmem:[#allocation5 + $0xc] ss:$16 sps:$4 sm:$0xff]  }
  0xc9   :  { %1204 = vmatprep.subr.bf16.mxu0 %v6873_v0  ;;  %v6877_v2 = vld [vmem:[#allocation5] ss:$16 sps:$4 sm:$0xff]   ;;  %v6878_v3 = vld [vmem:[#allocation5 + $0x8] ss:$16 sps:$4 sm:$0xff]   ;;  %1363 = vmatprep.subr.bf16.mxu1 %v6875_v1  ;;  %v6879_v4 = vld [vmem:[#allocation5 + $0x24] ss:$16 sps:$4 sm:$0xff]  }
  0xca   :  { %1205 = vmatpush1.bf16.msra.mxu0 %v6877_v2  ;;  %1364 = vmatpush1.bf16.msra.mxu1 %v6878_v3  ;;  %v6881_v5 = vld [vmem:[#allocation5 + $0x2c] ss:$16 sps:$4 sm:$0xff]   ;;  %v6883_v6 = vld [vmem:[#allocation5 + $0x20] ss:$16 sps:$4 sm:$0xff]   ;;  %v6884_v7 = vld [vmem:[#allocation5 + $0x28] ss:$16 sps:$4 sm:$0xff]  }
  0xcb   :  { %1206 = vmatprep.subr.bf16.mxu0 %v6879_v4  ;;  %1365 = vmatprep.subr.bf16.mxu1 %v6881_v5  ;;  %v6885_v8 = vld [vmem:[#allocation5 + $0x44] ss:$16 sps:$4 sm:$0xff]   ;;  %v6887_v9 = vld [vmem:[#allocation5 + $0x4c] ss:$16 sps:$4 sm:$0xff]   ;;  %v6889_v10 = vld [vmem:[#allocation5 + $0x40] ss:$16 sps:$4 sm:$0xff]  }
  0xcc   :  { %v6890_v11 = vld [vmem:[#allocation5 + $0x48] ss:$16 sps:$4 sm:$0xff]   ;;  %v6891_v12 = vld [vmem:[#allocation5 + $0x64] ss:$16 sps:$4 sm:$0xff]   ;;  %v6893_v13 = vld [vmem:[#allocation5 + $0x6c] ss:$16 sps:$4 sm:$0xff]  }
  0xcd   :  { %v6895_v14 = vld [vmem:[#allocation5 + $0x60] ss:$16 sps:$4 sm:$0xff]   ;;  %v6896_v15 = vld [vmem:[#allocation5 + $0x68] ss:$16 sps:$4 sm:$0xff]   ;;  %v6897_v16 = vld [vmem:[#allocation5 + $0x84] ss:$16 sps:$4 sm:$0xff]  }
  0xce   :  { %1207 = vmatpush1.bf16.msra.mxu0 %v6883_v6  ;;  %1366 = vmatpush1.bf16.msra.mxu1 %v6884_v7  ;;  %v6899_v17 = vld [vmem:[#allocation5 + $0x8c] ss:$16 sps:$4 sm:$0xff]   ;;  %v6901_v18 = vld [vmem:[#allocation5 + $0x80] ss:$16 sps:$4 sm:$0xff]   ;;  %v6902_v19 = vld [vmem:[#allocation5 + $0x88] ss:$16 sps:$4 sm:$0xff]  }
  0xcf   :  { %1208 = vmatprep.subr.bf16.mxu0 %v6885_v8  ;;  %1367 = vmatprep.subr.bf16.mxu1 %v6887_v9  ;;  %v6903_v20 = vld [vmem:[#allocation5 + $0xa4] ss:$16 sps:$4 sm:$0xff]   ;;  %v6905_v21 = vld [vmem:[#allocation5 + $0xac] ss:$16 sps:$4 sm:$0xff]   ;;  %v6907_v22 = vld [vmem:[#allocation5 + $0xa0] ss:$16 sps:$4 sm:$0xff]  }
  0xd0   :  { %v6908_v23 = vld [vmem:[#allocation5 + $0xa8] ss:$16 sps:$4 sm:$0xff]   ;;  %v6909_v24 = vld [vmem:[#allocation5 + $0xc4] ss:$16 sps:$4 sm:$0xff]   ;;  %v6911_v25 = vld [vmem:[#allocation5 + $0xcc] ss:$16 sps:$4 sm:$0xff]  }
  0xd1   :  { %v6913_v26 = vld [vmem:[#allocation5 + $0xc0] ss:$16 sps:$4 sm:$0xff]   ;;  %v6914_v27 = vld [vmem:[#allocation5 + $0xc8] ss:$16 sps:$4 sm:$0xff]   ;;  %v6915_v28 = vld [vmem:[#allocation5 + $0xe4] ss:$16 sps:$4 sm:$0xff]  }
  0xd2   :  { %1209 = vmatpush1.bf16.msra.mxu0 %v6889_v10  ;;  %1368 = vmatpush1.bf16.msra.mxu1 %v6890_v11  ;;  %v6917_v29 = vld [vmem:[#allocation5 + $0xec] ss:$16 sps:$4 sm:$0xff]   ;;  %v6919_v30 = vld [vmem:[#allocation5 + $0xe0] ss:$16 sps:$4 sm:$0xff]   ;;  %v6920_v31 = vld [vmem:[#allocation5 + $0xe8] ss:$16 sps:$4 sm:$0xff]  }
  0xd3   :  { %1210 = vmatprep.subr.bf16.mxu0 %v6891_v12  ;;  %1369 = vmatprep.subr.bf16.mxu1 %v6893_v13  ;;  %v6921_v32 = vld [vmem:[#allocation5 + $0x104] ss:$16 sps:$4 sm:$0xff]   ;;  %v6923_v33 = vld [vmem:[#allocation5 + $0x10c] ss:$16 sps:$4 sm:$0xff]   ;;  %v6925_v34 = vld [vmem:[#allocation5 + $0x100] ss:$16 sps:$4 sm:$0xff]  }
  0xd4   :  { %v6926_v35 = vld [vmem:[#allocation5 + $0x108] ss:$16 sps:$4 sm:$0xff]   ;;  %v6927_v36 = vld [vmem:[#allocation5 + $0x124] ss:$16 sps:$4 sm:$0xff]   ;;  %v6929_v37 = vld [vmem:[#allocation5 + $0x12c] ss:$16 sps:$4 sm:$0xff]  }
  0xd5   :  { %v6931_v38 = vld [vmem:[#allocation5 + $0x120] ss:$16 sps:$4 sm:$0xff]   ;;  %v6932_v39 = vld [vmem:[#allocation5 + $0x128] ss:$16 sps:$4 sm:$0xff]   ;;  %v6933_v40 = vld [vmem:[#allocation5 + $0x144] ss:$16 sps:$4 sm:$0xff]  }
  0xd6   :  { %1211 = vmatpush1.bf16.msra.mxu0 %v6895_v14  ;;  %1370 = vmatpush1.bf16.msra.mxu1 %v6896_v15  ;;  %v6935_v41 = vld [vmem:[#allocation5 + $0x14c] ss:$16 sps:$4 sm:$0xff]   ;;  %v6937_v42 = vld [vmem:[#allocation5 + $0x140] ss:$16 sps:$4 sm:$0xff]   ;;  %v6938_v43 = vld [vmem:[#allocation5 + $0x148] ss:$16 sps:$4 sm:$0xff]  }
  0xd7   :  { %1212 = vmatprep.subr.bf16.mxu0 %v6897_v16  ;;  %1371 = vmatprep.subr.bf16.mxu1 %v6899_v17  ;;  %v6939_v44 = vld [vmem:[#allocation5 + $0x164] ss:$16 sps:$4 sm:$0xff]   ;;  %v6941_v45 = vld [vmem:[#allocation5 + $0x16c] ss:$16 sps:$4 sm:$0xff]   ;;  %v6943_v48 = vld [vmem:[#allocation5 + $0x160] ss:$16 sps:$4 sm:$0xff]  }
  0xd8   :  { %v193_v46 = vld [vmem:[#allocation2 + $0x8] sm:$0xff]  ;;  %v198_v47 = vld [vmem:[#allocation2 + $0x30] sm:$0xff]  ;;  %v192_v4 = vld [vmem:[#allocation2] sm:$0xff]  ;;  %s8470_s29 = sld [smem:[#allocation29_spill]]  ;;  %s8064_s18 = smov [#allocation19]  }
  0xd9   :  { %v6944_v49 = vld [vmem:[#allocation5 + $0x168] ss:$16 sps:$4 sm:$0xff]   ;;  %v213_v50 = vpack.c.bf16 %v198_v47, %v193_v46  ;;  %v6945_v51 = vld [vmem:[#allocation5 + $0x184] ss:$16 sps:$4 sm:$0xff]   ;;  %v6947_v52 = vld [vmem:[#allocation5 + $0x18c] ss:$16 sps:$4 sm:$0xff]  }
  0xda   :  { %1213 = vmatpush1.bf16.msra.mxu0 %v6901_v18  ;;  %1372 = vmatpush1.bf16.msra.mxu1 %v6902_v19  ;;  %v6949_v53 = vld [vmem:[#allocation5 + $0x180] ss:$16 sps:$4 sm:$0xff]   ;;  %v6950_v54 = vld [vmem:[#allocation5 + $0x188] ss:$16 sps:$4 sm:$0xff]   ;;  %v6951_v55 = vld [vmem:[#allocation5 + $0x1a4] ss:$16 sps:$4 sm:$0xff]  }
  0xdb   :  { %1214 = vmatprep.subr.bf16.mxu0 %v6903_v20  ;;  %1373 = vmatprep.subr.bf16.mxu1 %v6905_v21  ;;  %v6953_v56 = vld [vmem:[#allocation5 + $0x1ac] ss:$16 sps:$4 sm:$0xff]   ;;  %v6955_v57 = vld [vmem:[#allocation5 + $0x1a0] ss:$16 sps:$4 sm:$0xff]   ;;  %v6956_v58 = vld [vmem:[#allocation5 + $0x1a8] ss:$16 sps:$4 sm:$0xff]  }
  0xdc   :  { %1236 = vmatprep.mubr.bf16.mxu0 %v213_v50  ;;  %1395 = vmatprep.mubr.bf16.mxu1 %v213_v50  ;;  %v6957_v59 = vld [vmem:[#allocation5 + $0x1c4] ss:$16 sps:$4 sm:$0xff]   ;;  %v6959_v60 = vld [vmem:[#allocation5 + $0x1cc] ss:$16 sps:$4 sm:$0xff]   ;;  %v6961_v61 = vld [vmem:[#allocation5 + $0x1c0] ss:$16 sps:$4 sm:$0xff]  }
  0xdd   :  { %v6962_v62 = vld [vmem:[#allocation5 + $0x1c8] ss:$16 sps:$4 sm:$0xff]   ;;  %v6963_v63 = vld [vmem:[#allocation5 + $0x1e4] ss:$16 sps:$4 sm:$0xff]   ;;  %v6965_v0 = vld [vmem:[#allocation5 + $0x1ec] ss:$16 sps:$4 sm:$0xff]  }
  0xde   :  { %1215 = vmatpush1.bf16.msra.mxu0 %v6907_v22  ;;  %1374 = vmatpush1.bf16.msra.mxu1 %v6908_v23  ;;  %v6967_v1 = vld [vmem:[#allocation5 + $0x1e0] ss:$16 sps:$4 sm:$0xff]   ;;  %v6968_v2 = vld [vmem:[#allocation5 + $0x1e8] ss:$16 sps:$4 sm:$0xff]   ;;  %v6971_v3 = vld [vmem:[#allocation5 + $0x204] ss:$16 sps:$4 sm:$0xff]  }
  0xdf   :  { %1216 = vmatprep.subr.bf16.mxu0 %v6909_v24  ;;  %1375 = vmatprep.subr.bf16.mxu1 %v6911_v25  ;;  %v197_v5 = vld [vmem:[#allocation2 + $0x28] sm:$0xff]  ;;  %v6969_v7 = vld [vmem:[#allocation5 + $0x200] ss:$16 sps:$4 sm:$0xff]   ;;  %v6977_v10 = vld [vmem:[#allocation5 + $0x224] ss:$16 sps:$4 sm:$0xff]   ;;  %s5879_s26 = sshll.u32 %s8064_s18, 4  ;;  %s5880_s26 = int_to_ptr.vmem [resolvable:$true] %s5879_s26 }
  0xe0   :  { %v6974_v6 = vld [vmem:[#allocation5 + $0x20c] ss:$16 sps:$4 sm:$0xff]   ;;  %v6972_v8 = vld [vmem:[#allocation5 + $0x208] ss:$16 sps:$4 sm:$0xff]   ;;  %v212_v9 = vpack.c.bf16 %v197_v5, %v192_v4  ;;  %v6975_v12 = vld [vmem:[#allocation5 + $0x220] ss:$16 sps:$4 sm:$0xff]   ;;  %p8010_p11 = scmp.lt.s32.totalorder %s5880_s26, %s5880_s26 }
  0xe1   :  { %v6980_v11 = vld [vmem:[#allocation5 + $0x22c] ss:$16 sps:$4 sm:$0xff]   ;;  %v6978_v13 = vld [vmem:[#allocation5 + $0x228] ss:$16 sps:$4 sm:$0xff]   ;;  %v6983_v14 = vld [vmem:[#allocation5 + $0x244] ss:$16 sps:$4 sm:$0xff]  }
  0xe2   :  { %1217 = vmatpush1.bf16.msra.mxu0 %v6913_v26  ;;  %1376 = vmatpush1.bf16.msra.mxu1 %v6914_v27  ;;  %v6986_v15 = vld [vmem:[#allocation5 + $0x24c] ss:$16 sps:$4 sm:$0xff]   ;;  %v6981_v16 = vld [vmem:[#allocation5 + $0x240] ss:$16 sps:$4 sm:$0xff]   ;;  %v6984_v17 = vld [vmem:[#allocation5 + $0x248] ss:$16 sps:$4 sm:$0xff]  }
  0xe3   :  { %1218 = vmatprep.subr.bf16.mxu0 %v6915_v28  ;;  %1377 = vmatprep.subr.bf16.mxu1 %v6917_v29  ;;  %v6989_v18 = vld [vmem:[#allocation5 + $0x264] ss:$16 sps:$4 sm:$0xff]   ;;  %v6992_v19 = vld [vmem:[#allocation5 + $0x26c] ss:$16 sps:$4 sm:$0xff]   ;;  %v6987_v20 = vld [vmem:[#allocation5 + $0x260] ss:$16 sps:$4 sm:$0xff]  }
  0xe4   :  { %v6990_v21 = vld [vmem:[#allocation5 + $0x268] ss:$16 sps:$4 sm:$0xff]   ;;  %v6995_v22 = vld [vmem:[#allocation5 + $0x284] ss:$16 sps:$4 sm:$0xff]   ;;  %v6998_v23 = vld [vmem:[#allocation5 + $0x28c] ss:$16 sps:$4 sm:$0xff]  }
  0xe5   :  { %v6993_v24 = vld [vmem:[#allocation5 + $0x280] ss:$16 sps:$4 sm:$0xff]   ;;  %v6996_v25 = vld [vmem:[#allocation5 + $0x288] ss:$16 sps:$4 sm:$0xff]   ;;  %v7001_v26 = vld [vmem:[#allocation5 + $0x2a4] ss:$16 sps:$4 sm:$0xff]  }
  0xe6   :  { %1219 = vmatpush1.bf16.msra.mxu0 %v6919_v30  ;;  %1378 = vmatpush1.bf16.msra.mxu1 %v6920_v31  ;;  %v7004_v27 = vld [vmem:[#allocation5 + $0x2ac] ss:$16 sps:$4 sm:$0xff]   ;;  %v208_v29 = vld [vmem:[#allocation2 + $0x80] sm:$0xff]  ;;  %v7014_v46 = vld [vmem:[#allocation5 + $0x2e8] ss:$16 sps:$4 sm:$0xff]   ;;  %s8005_s25 = scalar_lea.vmem %s5880_s26, 2560 }
  0xe7   :  { %1220 = vmatprep.subr.bf16.mxu0 %v6921_v32  ;;  %1379 = vmatprep.subr.bf16.mxu1 %v6923_v33  ;;  %v203_v28 = vld [vmem:[#allocation2 + $0x58] sm:$0xff]  ;;  %v6999_v30 = vld [vmem:[#allocation5 + $0x2a0] ss:$16 sps:$4 sm:$0xff]   ;;  %v7007_v33 = vld [vmem:[#allocation5 + $0x2c4] ss:$16 sps:$4 sm:$0xff]   ;;  %p8006_p10 = scmp.ne.s32.totalorder %s5880_s26, %s8005_s25  ;;  %p8011_p12 = scmp.lt.s32.totalorder %s8005_s25, %s8005_s25 }
  0xe8   :  { %v218_v31 = vpack.c.bf16 %v208_v29, %v203_v28  ;;  %v7002_v32 = vld [vmem:[#allocation5 + $0x2a8] ss:$16 sps:$4 sm:$0xff]   ;;  %v7019_v47 = vld [vmem:[#allocation5 + $0x304] ss:$16 sps:$4 sm:$0xff]   ;;  %v7052_v4 = vld [vmem:[#allocation5 + $0x3ac] ss:$16 sps:$4 sm:$0xff]  }
  0xe9   :  { %v7020_v50 = vld [vmem:[#allocation5 + $0x308] ss:$16 sps:$4 sm:$0xff]   ;;  %v7047_v5 = vld [vmem:[#allocation5 + $0x3a0] ss:$16 sps:$4 sm:$0xff]   ;;  %v7079_v29 = vld [vmem:[#allocation5 + $0x444] ss:$16 sps:$4 sm:$0xff]   ;;  %p8012_p13 = por %p8011_p12, %p8010_p11 }
  0xea   :  { %1221 = vmatpush1.bf16.msra.mxu0 %v6925_v34  ;;  %1380 = vmatpush1.bf16.msra.mxu1 %v6926_v35  ;;  %v7010_v34 = vld [vmem:[#allocation5 + $0x2cc] ss:$16 sps:$4 sm:$0xff]   ;;  %v202_v35 = vld [vmem:[#allocation2 + $0x50] sm:$0xff] }
  0xeb   :  { %1222 = vmatprep.subr.bf16.mxu0 %v6927_v36  ;;  %1381 = vmatprep.subr.bf16.mxu1 %v6929_v37  ;;  %v207_v36 = vld [vmem:[#allocation2 + $0x78] sm:$0xff]  ;;  %p8013_p0 = pnand %p8012_p13, %p8006_p10 }
  0xec   :  { %v217_v37 = vpack.c.bf16 %v207_v36, %v202_v35  ;;  %v7085_v36 = vld [vmem:[#allocation5 + $0x464] ss:$16 sps:$4 sm:$0xff]  }
  0xee   :  { %1223 = vmatpush1.bf16.msra.mxu0 %v6931_v38  ;;  %1382 = vmatpush1.bf16.msra.mxu1 %v6932_v39  ;;  %v7005_v38 = vld [vmem:[#allocation5 + $0x2c0] ss:$16 sps:$4 sm:$0xff]   ;;  %v7008_v39 = vld [vmem:[#allocation5 + $0x2c8] ss:$16 sps:$4 sm:$0xff]  }
  0xef   :  { %1224 = vmatprep.subr.bf16.mxu0 %v6933_v40  ;;  %1383 = vmatprep.subr.bf16.mxu1 %v6935_v41  ;;  %v195_v40 = vld [vmem:[#allocation2 + $0x18] sm:$0xff]  ;;  %v200_v41 = vld [vmem:[#allocation2 + $0x40] sm:$0xff] }
  0xf2   :  { %1225 = vmatpush1.bf16.msra.mxu0 %v6937_v42  ;;  %1384 = vmatpush1.bf16.msra.mxu1 %v6938_v43  ;;  %v7013_v42 = vld [vmem:[#allocation5 + $0x2e4] ss:$16 sps:$4 sm:$0xff]   ;;  %v7016_v43 = vld [vmem:[#allocation5 + $0x2ec] ss:$16 sps:$4 sm:$0xff]  }
  0xf3   :  { %1226 = vmatprep.subr.bf16.mxu0 %v6939_v44  ;;  %1385 = vmatprep.subr.bf16.mxu1 %v6941_v45  ;;  %v215_v44 = vpack.c.bf16 %v200_v41, %v195_v40  ;;  %v7011_v45 = vld [vmem:[#allocation5 + $0x2e0] ss:$16 sps:$4 sm:$0xff]   ;;  %v7091_v40 = vld [vmem:[#allocation5 + $0x484] ss:$16 sps:$4 sm:$0xff]   ;;  %v7094_v41 = vld [vmem:[#allocation5 + $0x48c] ss:$16 sps:$4 sm:$0xff]  }
  0xf6   :  { %1227 = vmatpush1.bf16.msra.mxu0 %v6943_v48  ;;  %1386 = vmatpush1.bf16.msra.mxu1 %v6944_v49  ;;  %v7022_v48 = vld [vmem:[#allocation5 + $0x30c] ss:$16 sps:$4 sm:$0xff]   ;;  %v7017_v49 = vld [vmem:[#allocation5 + $0x300] ss:$16 sps:$4 sm:$0xff]  }
  0xf7   :  { %1228 = vmatprep.subr.bf16.mxu0 %v6945_v51  ;;  %1387 = vmatprep.subr.bf16.mxu1 %v6947_v52  ;;  %v7025_v51 = vld [vmem:[#allocation5 + $0x324] ss:$16 sps:$4 sm:$0xff]   ;;  %v7028_v52 = vld [vmem:[#allocation5 + $0x32c] ss:$16 sps:$4 sm:$0xff]  }
  0xfa   :  { %1229 = vmatpush1.bf16.msra.mxu0 %v6949_v53  ;;  %1388 = vmatpush1.bf16.msra.mxu1 %v6950_v54  ;;  %v7023_v53 = vld [vmem:[#allocation5 + $0x320] ss:$16 sps:$4 sm:$0xff]   ;;  %v7026_v54 = vld [vmem:[#allocation5 + $0x328] ss:$16 sps:$4 sm:$0xff]  }
  0xfb   :  { %1230 = vmatprep.subr.bf16.mxu0 %v6951_v55  ;;  %1389 = vmatprep.subr.bf16.mxu1 %v6953_v56  ;;  %v7031_v55 = vld [vmem:[#allocation5 + $0x344] ss:$16 sps:$4 sm:$0xff]   ;;  %v7034_v56 = vld [vmem:[#allocation5 + $0x34c] ss:$16 sps:$4 sm:$0xff]  }
  0xfe   :  { %1231 = vmatpush1.bf16.msra.mxu0 %v6955_v57  ;;  %1390 = vmatpush1.bf16.msra.mxu1 %v6956_v58  ;;  %v7029_v57 = vld [vmem:[#allocation5 + $0x340] ss:$16 sps:$4 sm:$0xff]   ;;  %v7032_v58 = vld [vmem:[#allocation5 + $0x348] ss:$16 sps:$4 sm:$0xff]  }
  0xff   :  { %1232 = vmatprep.subr.bf16.mxu0 %v6957_v59  ;;  %1391 = vmatprep.subr.bf16.mxu1 %v6959_v60  ;;  %v7037_v59 = vld [vmem:[#allocation5 + $0x364] ss:$16 sps:$4 sm:$0xff]   ;;  %v7040_v60 = vld [vmem:[#allocation5 + $0x36c] ss:$16 sps:$4 sm:$0xff]  }
 0x102   :  { %1233 = vmatpush1.bf16.msra.mxu0 %v6961_v61  ;;  %1392 = vmatpush1.bf16.msra.mxu1 %v6962_v62  ;;  %v7035_v61 = vld [vmem:[#allocation5 + $0x360] ss:$16 sps:$4 sm:$0xff]   ;;  %v7038_v62 = vld [vmem:[#allocation5 + $0x368] ss:$16 sps:$4 sm:$0xff]  }
 0x103   :  { %1234 = vmatprep.subr.bf16.mxu0 %v6963_v63  ;;  %1393 = vmatprep.subr.bf16.mxu1 %v6965_v0  ;;  %v7043_v63 = vld [vmem:[#allocation5 + $0x384] ss:$16 sps:$4 sm:$0xff]   ;;  %v7046_v0 = vld [vmem:[#allocation5 + $0x38c] ss:$16 sps:$4 sm:$0xff]  }
 0x106   :  { %1235 = vmatpush1.bf16.msra.mxu0 %v6967_v1  ;;  %1394 = vmatpush1.bf16.msra.mxu1 %v6968_v2  ;;  %v7041_v1 = vld [vmem:[#allocation5 + $0x380] ss:$16 sps:$4 sm:$0xff]   ;;  %v7044_v2 = vld [vmem:[#allocation5 + $0x388] ss:$16 sps:$4 sm:$0xff]  }
 0x107   :  { %1257 = vmatprep.subr.bf16.mxu0 %v6971_v3  ;;  %1416 = vmatprep.subr.bf16.mxu1 %v6974_v6  ;;  %v7049_v3 = vld [vmem:[#allocation5 + $0x3a4] ss:$16 sps:$4 sm:$0xff]   ;;  %v7050_v6 = vld [vmem:[#allocation5 + $0x3a8] ss:$16 sps:$4 sm:$0xff]  }
 0x109   :  { %1237 = vmatmul.mubr.bf16.vlgmr.msra.gmra.mrb[0].mxu0 %v212_v9  ;;  %1396 = vmatmul.mubr.bf16.vlgmr.msra.gmra.mrb[0].mxu1 %v212_v9  ;;  %v7053_v9 = vld [vmem:[#allocation5 + $0x3c0] ss:$16 sps:$4 sm:$0xff]  }
 0x10a   :  { %1258 = vmatpush1.bf16.msra.mxu0 %v6969_v7  ;;  %1417 = vmatpush1.bf16.msra.mxu1 %v6972_v8  ;;  %v7055_v7 = vld [vmem:[#allocation5 + $0x3c4] ss:$16 sps:$4 sm:$0xff]   ;;  %v7058_v8 = vld [vmem:[#allocation5 + $0x3cc] ss:$16 sps:$4 sm:$0xff]  }
 0x10b   :  { %1259 = vmatprep.subr.bf16.mxu0 %v6977_v10  ;;  %1418 = vmatprep.subr.bf16.mxu1 %v6980_v11  ;;  %v7056_v10 = vld [vmem:[#allocation5 + $0x3c8] ss:$16 sps:$4 sm:$0xff]   ;;  %v7061_v11 = vld [vmem:[#allocation5 + $0x3e4] ss:$16 sps:$4 sm:$0xff]  }
 0x10c   :  { %1246 = vmatprep.mubr.bf16.mxu0 %v218_v31  ;;  %1405 = vmatprep.mubr.bf16.mxu1 %v218_v31  ;;  %v209_v31 = vld [vmem:[#allocation2 + $0x88] sm:$0xff] }
 0x10e   :  { %1260 = vmatpush1.bf16.msra.mxu0 %v6975_v12  ;;  %1419 = vmatpush1.bf16.msra.mxu1 %v6978_v13  ;;  %v7064_v12 = vld [vmem:[#allocation5 + $0x3ec] ss:$16 sps:$4 sm:$0xff]   ;;  %v7059_v13 = vld [vmem:[#allocation5 + $0x3e0] ss:$16 sps:$4 sm:$0xff]  }
 0x10f   :  { %1261 = vmatprep.subr.bf16.mxu0 %v6983_v14  ;;  %1420 = vmatprep.subr.bf16.mxu1 %v6986_v15  ;;  %v7062_v14 = vld [vmem:[#allocation5 + $0x3e8] ss:$16 sps:$4 sm:$0xff]   ;;  %v7067_v15 = vld [vmem:[#allocation5 + $0x404] ss:$16 sps:$4 sm:$0xff]  }
 0x111   :  { %1247 = vmatmul.mubr.bf16.gmra.mrb[4].mxu0 %v217_v37  ;;  %1406 = vmatmul.mubr.bf16.gmra.mrb[4].mxu1 %v217_v37  ;;  %v7088_v37 = vld [vmem:[#allocation5 + $0x46c] ss:$16 sps:$4 sm:$0xff]  }
 0x112   :  { %1262 = vmatpush1.bf16.msra.mxu0 %v6981_v16  ;;  %1421 = vmatpush1.bf16.msra.mxu1 %v6984_v17  ;;  %v194_v16 = vld [vmem:[#allocation2 + $0x10] sm:$0xff]  ;;  %v199_v17 = vld [vmem:[#allocation2 + $0x38] sm:$0xff] }
 0x113   :  { %1263 = vmatprep.subr.bf16.mxu0 %v6989_v18  ;;  %1422 = vmatprep.subr.bf16.mxu1 %v6992_v19  ;;  %v7070_v18 = vld [vmem:[#allocation5 + $0x40c] ss:$16 sps:$4 sm:$0xff]   ;;  %v7065_v19 = vld [vmem:[#allocation5 + $0x400] ss:$16 sps:$4 sm:$0xff]  }
 0x114   :  { %1289 = vmatprep.mubr.bf16.mxu0 %v215_v44  ;;  %1448 = vmatprep.mubr.bf16.mxu1 %v215_v44  ;;  %v8063_v44 = vmov 0  }
 0x116   :  { %1264 = vmatpush1.bf16.msra.mxu0 %v6987_v20  ;;  %1423 = vmatpush1.bf16.msra.mxu1 %v6990_v21  ;;  %v205_v20 = vld [vmem:[#allocation2 + $0x68] sm:$0xff]  ;;  %v214_v21 = vpack.c.bf16 %v199_v17, %v194_v16 }
 0x117   :  { %1265 = vmatprep.subr.bf16.mxu0 %v6995_v22  ;;  %1424 = vmatprep.subr.bf16.mxu1 %v6998_v23  ;;  %v210_v22 = vld [vmem:[#allocation2 + $0x90] sm:$0xff]  ;;  %v7068_v23 = vld [vmem:[#allocation5 + $0x408] ss:$16 sps:$4 sm:$0xff]   ;;  %v7125_v17 = vld [vmem:[#allocation7 + $0x60] ss:$12 sps:$4 sm:$0xff]  }
 0x118   :  { %v220_v28 = vpack.c.bf16 %v210_v22, %v205_v20  ;;  %v7160_v16 = vld [vmem:[#allocation7 + $0x128] ss:$12 sps:$4 sm:$0xff]   ;;  %v7165_v20 = vld [vmem:[#allocation7 + $0x140] ss:$12 sps:$4 sm:$0xff]  }
 0x119   :  { %v7166_v22 = vld [vmem:[#allocation7 + $0x80] ss:$12 sps:$4 sm:$0xff]  }
 0x11a   :  { %1266 = vmatpush1.bf16.msra.mxu0 %v6993_v24  ;;  %1425 = vmatpush1.bf16.msra.mxu1 %v6996_v25  ;;  %v7073_v24 = vld [vmem:[#allocation5 + $0x424] ss:$16 sps:$4 sm:$0xff]   ;;  %v7076_v25 = vld [vmem:[#allocation5 + $0x42c] ss:$16 sps:$4 sm:$0xff]  }
 0x11b   :  { %1267 = vmatprep.subr.bf16.mxu0 %v7001_v26  ;;  %1426 = vmatprep.subr.bf16.mxu1 %v7004_v27  ;;  %v7071_v26 = vld [vmem:[#allocation5 + $0x420] ss:$16 sps:$4 sm:$0xff]   ;;  %v7074_v27 = vld [vmem:[#allocation5 + $0x428] ss:$16 sps:$4 sm:$0xff]  }
 0x11e   :  { %1268 = vmatpush1.bf16.msra.mxu0 %v6999_v30  ;;  %1427 = vmatpush1.bf16.msra.mxu1 %v7002_v32  ;;  %v204_v30 = vld [vmem:[#allocation2 + $0x60] sm:$0xff]  ;;  %v7082_v32 = vld [vmem:[#allocation5 + $0x44c] ss:$16 sps:$4 sm:$0xff]  }
 0x11f   :  { %1269 = vmatprep.subr.bf16.mxu0 %v7007_v33  ;;  %1428 = vmatprep.subr.bf16.mxu1 %v7010_v34  ;;  %v7077_v33 = vld [vmem:[#allocation5 + $0x440] ss:$16 sps:$4 sm:$0xff]   ;;  %v7080_v34 = vld [vmem:[#allocation5 + $0x448] ss:$16 sps:$4 sm:$0xff]   ;;  %v219_v35 = vpack.c.bf16 %v209_v31, %v204_v30 }
 0x120   :  { %v7142_v30 = vld [vmem:[#allocation7 + $0xd8] ss:$12 sps:$4 sm:$0xff]   ;;  %v7149_v31 = vld [vmem:[#allocation7 + $0xf4] ss:$12 sps:$4 sm:$0xff]  }
 0x122   :  { %1270 = vmatpush1.bf16.msra.mxu0 %v7005_v38  ;;  %1429 = vmatpush1.bf16.msra.mxu1 %v7008_v39  ;;  %v7083_v38 = vld [vmem:[#allocation5 + $0x460] ss:$16 sps:$4 sm:$0xff]   ;;  %v7086_v39 = vld [vmem:[#allocation5 + $0x468] ss:$16 sps:$4 sm:$0xff]  }
 0x123   :  { %1271 = vmatprep.subr.bf16.mxu0 %v7013_v42  ;;  %1430 = vmatprep.subr.bf16.mxu1 %v7016_v43  ;;  %v7089_v42 = vld [vmem:[#allocation5 + $0x480] ss:$16 sps:$4 sm:$0xff]   ;;  %v7092_v43 = vld [vmem:[#allocation5 + $0x488] ss:$16 sps:$4 sm:$0xff]  }
 0x126   :  { %1272 = vmatpush1.bf16.msra.mxu0 %v7011_v45  ;;  %1431 = vmatpush1.bf16.msra.mxu1 %v7014_v46  ;;  %v7097_v45 = vld [vmem:[#allocation5 + $0x4a4] ss:$16 sps:$4 sm:$0xff]   ;;  %v7100_v46 = vld [vmem:[#allocation5 + $0x4ac] ss:$16 sps:$4 sm:$0xff]  }
 0x127   :  { %1273 = vmatprep.subr.bf16.mxu0 %v7019_v47  ;;  %1432 = vmatprep.subr.bf16.mxu1 %v7022_v48  ;;  %v7095_v47 = vld [vmem:[#allocation5 + $0x4a0] ss:$16 sps:$4 sm:$0xff]   ;;  %v7098_v48 = vld [vmem:[#allocation5 + $0x4a8] ss:$16 sps:$4 sm:$0xff]  }
 0x12a   :  { %1274 = vmatpush1.bf16.msra.mxu0 %v7017_v49  ;;  %1433 = vmatpush1.bf16.msra.mxu1 %v7020_v50  ;;  %v7103_v49 = vld [vmem:[#allocation5 + $0x4c4] ss:$16 sps:$4 sm:$0xff]   ;;  %v7106_v50 = vld [vmem:[#allocation5 + $0x4cc] ss:$16 sps:$4 sm:$0xff]  }
 0x12b   :  { %1275 = vmatprep.subr.bf16.mxu0 %v7025_v51  ;;  %1434 = vmatprep.subr.bf16.mxu1 %v7028_v52  ;;  %v7101_v51 = vld [vmem:[#allocation5 + $0x4c0] ss:$16 sps:$4 sm:$0xff]   ;;  %v7104_v52 = vld [vmem:[#allocation5 + $0x4c8] ss:$16 sps:$4 sm:$0xff]  }
 0x12e   :  { %1276 = vmatpush1.bf16.msra.mxu0 %v7023_v53  ;;  %1435 = vmatpush1.bf16.msra.mxu1 %v7026_v54  ;;  %v7109_v53 = vld [vmem:[#allocation5 + $0x4e4] ss:$16 sps:$4 sm:$0xff]   ;;  %v7112_v54 = vld [vmem:[#allocation5 + $0x4ec] ss:$16 sps:$4 sm:$0xff]  }
 0x12f   :  { %1277 = vmatprep.subr.bf16.mxu0 %v7031_v55  ;;  %1436 = vmatprep.subr.bf16.mxu1 %v7034_v56  ;;  %v7107_v55 = vld [vmem:[#allocation5 + $0x4e0] ss:$16 sps:$4 sm:$0xff]   ;;  %v7110_v56 = vld [vmem:[#allocation5 + $0x4e8] ss:$16 sps:$4 sm:$0xff]  }
 0x132   :  { %1278 = vmatpush1.bf16.msra.mxu0 %v7029_v57  ;;  %1437 = vmatpush1.bf16.msra.mxu1 %v7032_v58  ;;  %v196_v57 = vld [vmem:[#allocation2 + $0x20] sm:$0xff]  ;;  %v201_v58 = vld [vmem:[#allocation2 + $0x48] sm:$0xff] }
 0x133   :  { %1279 = vmatprep.subr.bf16.mxu0 %v7037_v59  ;;  %1438 = vmatprep.subr.bf16.mxu1 %v7040_v60  ;;  %v7115_v59 = vld [vmem:[#allocation7 + $0x4] ss:$12 sps:$4 sm:$0xff]   ;;  %v7140_v60 = vld [vmem:[#allocation7 + $0xc8] ss:$12 sps:$4 sm:$0xff]  }
 0x136   :  { %1280 = vmatpush1.bf16.msra.mxu0 %v7035_v61  ;;  %1439 = vmatpush1.bf16.msra.mxu1 %v7038_v62  ;;  %v216_v61 = vpack.c.bf16 %v201_v58, %v196_v57  ;;  %v7113_v62 = vld [vmem:[#allocation7] ss:$12 sps:$4 sm:$0xff]  }
 0x137   :  { %1281 = vmatprep.subr.bf16.mxu0 %v7043_v63  ;;  %1440 = vmatprep.subr.bf16.mxu1 %v7046_v0  ;;  %v7141_v63 = vld [vmem:[#allocation7 + $0x8] ss:$12 sps:$4 sm:$0xff]  }
 0x138   :  { %v7118_v0 = vld [vmem:[#allocation7 + $0x1c] ss:$12 sps:$4 sm:$0xff]  }
 0x13a   :  { %1282 = vmatpush1.bf16.msra.mxu0 %v7041_v1  ;;  %1441 = vmatpush1.bf16.msra.mxu1 %v7044_v2  ;;  %v7145_v1 = vld [vmem:[#allocation7 + $0xe0] ss:$12 sps:$4 sm:$0xff]   ;;  %v206_v2 = vld [vmem:[#allocation2 + $0x70] sm:$0xff] }
 0x13b   :  { %1283 = vmatprep.subr.bf16.mxu0 %v7049_v3  ;;  %1442 = vmatprep.subr.bf16.mxu1 %v7052_v4  ;;  %v211_v3 = vld [vmem:[#allocation2 + $0x98] sm:$0xff] }
 0x13c   :  { %v7116_v4 = vld [vmem:[#allocation7 + $0x18] ss:$12 sps:$4 sm:$0xff]  }
 0x13e   :  { %1284 = vmatpush1.bf16.msra.mxu0 %v7047_v5  ;;  %1443 = vmatpush1.bf16.msra.mxu1 %v7050_v6  ;;  %v7146_v5 = vld [vmem:[#allocation7 + $0x20] ss:$12 sps:$4 sm:$0xff]  }
 0x13f   :  { %1285 = vmatprep.subr.bf16.mxu0 %v7055_v7  ;;  %1444 = vmatprep.subr.bf16.mxu1 %v7058_v8  ;;  %v7121_v6 = vld [vmem:[#allocation7 + $0x34] ss:$12 sps:$4 sm:$0xff]   ;;  %v7150_v7 = vld [vmem:[#allocation7 + $0xf8] ss:$12 sps:$4 sm:$0xff]   ;;  %v221_v8 = vpack.c.bf16 %v211_v3, %v206_v2 }
 0x142   :  { %1286 = vmatpush1.bf16.msra.mxu0 %v7053_v9  ;;  %1445 = vmatpush1.bf16.msra.mxu1 %v7056_v10  ;;  %v7119_v9 = vld [vmem:[#allocation7 + $0x30] ss:$12 sps:$4 sm:$0xff]   ;;  %v7151_v10 = vld [vmem:[#allocation7 + $0x38] ss:$12 sps:$4 sm:$0xff]  }
 0x143   :  { %1287 = vmatprep.subr.bf16.mxu0 %v7061_v11  ;;  %1446 = vmatprep.subr.bf16.mxu1 %v7064_v12  ;;  %v7124_v11 = vld [vmem:[#allocation7 + $0x4c] ss:$12 sps:$4 sm:$0xff]   ;;  %v7155_v12 = vld [vmem:[#allocation7 + $0x110] ss:$12 sps:$4 sm:$0xff]  }
 0x146   :  { %1288 = vmatpush1.bf16.msra.mxu0 %v7059_v13  ;;  %1447 = vmatpush1.bf16.msra.mxu1 %v7062_v14  ;;  %v7122_v13 = vld [vmem:[#allocation7 + $0x48] ss:$12 sps:$4 sm:$0xff]   ;;  %v7156_v14 = vld [vmem:[#allocation7 + $0x50] ss:$12 sps:$4 sm:$0xff]  }
 0x147   :  { %1310 = vmatprep.subr.bf16.mxu0 %v7067_v15  ;;  %1469 = vmatprep.subr.bf16.mxu1 %v7070_v18  ;;  %v7127_v15 = vld [vmem:[#allocation7 + $0x64] ss:$12 sps:$4 sm:$0xff]   ;;  %v7161_v18 = vld [vmem:[#allocation7 + $0x68] ss:$12 sps:$4 sm:$0xff]  }
 0x149   :  { %1290 = vmatmul.mubr.bf16.vlgmr.msra.gmra.mrb[0].mxu0 %v214_v21  ;;  %1449 = vmatmul.mubr.bf16.vlgmr.msra.gmra.mrb[0].mxu1 %v214_v21  ;;  %v7128_v21 = vld [vmem:[#allocation7 + $0x78] ss:$12 sps:$4 sm:$0xff]  }
 0x14a   :  { %1311 = vmatpush1.bf16.msra.mxu0 %v7065_v19  ;;  %1470 = vmatpush1.bf16.msra.mxu1 %v7068_v23  ;;  %v7130_v19 = vld [vmem:[#allocation7 + $0x7c] ss:$12 sps:$4 sm:$0xff]   ;;  %v7133_v23 = vld [vmem:[#allocation7 + $0x94] ss:$12 sps:$4 sm:$0xff]  }
 0x14b   :  { %1312 = vmatprep.subr.bf16.mxu0 %v7073_v24  ;;  %1471 = vmatprep.subr.bf16.mxu1 %v7076_v25  ;;  %v7131_v24 = vld [vmem:[#allocation7 + $0x90] ss:$12 sps:$4 sm:$0xff]   ;;  %v7136_v25 = vld [vmem:[#allocation7 + $0xac] ss:$12 sps:$4 sm:$0xff]  }
 0x14c   :  { %1299 = vmatprep.mubr.bf16.mxu0 %v220_v28  ;;  %1458 = vmatprep.mubr.bf16.mxu1 %v220_v28  ;;  %v7137_v28 = vld [vmem:[#allocation7 + $0xc0] ss:$12 sps:$4 sm:$0xff]  }
 0x14e   :  { %1313 = vmatpush1.bf16.msra.mxu0 %v7071_v26  ;;  %1472 = vmatpush1.bf16.msra.mxu1 %v7074_v27  ;;  %v7134_v26 = vld [vmem:[#allocation7 + $0xa8] ss:$12 sps:$4 sm:$0xff]   ;;  %v7139_v27 = vld [vmem:[#allocation7 + $0xc4] ss:$12 sps:$4 sm:$0xff]  }
 0x14f   :  { %1314 = vmatprep.subr.bf16.mxu0 %v7079_v29  ;;  %1473 = vmatprep.subr.bf16.mxu1 %v7082_v32  ;;  %v7144_v29 = vld [vmem:[#allocation7 + $0xdc] ss:$12 sps:$4 sm:$0xff]  }
 0x150   :  { %v7147_v32 = vld [vmem:[#allocation7 + $0xf0] ss:$12 sps:$4 sm:$0xff]  }
 0x151   :  { %1300 = vmatmul.mubr.bf16.gmra.mrb[4].mxu0 %v219_v35  ;;  %1459 = vmatmul.mubr.bf16.gmra.mrb[4].mxu1 %v219_v35  ;;  %v7159_v35 = vld [vmem:[#allocation7 + $0x124] ss:$12 sps:$4 sm:$0xff]  }
 0x152   :  { %1315 = vmatpush1.bf16.msra.mxu0 %v7077_v33  ;;  %1474 = vmatpush1.bf16.msra.mxu1 %v7080_v34  ;;  %v7154_v33 = vld [vmem:[#allocation7 + $0x10c] ss:$12 sps:$4 sm:$0xff]   ;;  %v7152_v34 = vld [vmem:[#allocation7 + $0x108] ss:$12 sps:$4 sm:$0xff]  }
 0x153   :  { %1316 = vmatprep.subr.bf16.mxu0 %v7085_v36  ;;  %1475 = vmatprep.subr.bf16.mxu1 %v7088_v37  ;;  %v7157_v36 = vld [vmem:[#allocation7 + $0x120] ss:$12 sps:$4 sm:$0xff]   ;;  %v7164_v37 = vld [vmem:[#allocation7 + $0x13c] ss:$12 sps:$4 sm:$0xff]  }
 0x154   :  { %1342 = vmatprep.mubr.bf16.mxu0 %v8063_v44  ;;  %1501 = vmatprep.mubr.bf16.mxu1 %v8063_v44 }
 0x156   :  { %1317 = vmatpush1.bf16.msra.mxu0 %v7083_v38  ;;  %1476 = vmatpush1.bf16.msra.mxu1 %v7086_v39  ;;  %v7162_v38 = vld [vmem:[#allocation7 + $0x138] ss:$12 sps:$4 sm:$0xff]   ;;  %v7169_v39 = vld [vmem:[#allocation7 + $0x154] ss:$12 sps:$4 sm:$0xff]  }
 0x157   :  { %1318 = vmatprep.subr.bf16.mxu0 %v7091_v40  ;;  %1477 = vmatprep.subr.bf16.mxu1 %v7094_v41  ;;  %v7170_v40 = vld [vmem:[#allocation7 + $0x158] ss:$12 sps:$4 sm:$0xff]   ;;  %v7167_v41 = vld [vmem:[#allocation7 + $0x150] ss:$12 sps:$4 sm:$0xff]  }
 0x15a   :  { %1319 = vmatpush1.bf16.msra.mxu0 %v7089_v42  ;;  %1478 = vmatpush1.bf16.msra.mxu1 %v7092_v43  ;;  %v7171_v42 = vld [vmem:[#allocation7 + $0x98] ss:$12 sps:$4 sm:$0xff]  }
 0x15b   :  { %1320 = vmatprep.subr.bf16.mxu0 %v7097_v45  ;;  %1479 = vmatprep.subr.bf16.mxu1 %v7100_v46  ;;  %v7174_v43 = vld [vmem:[#allocation7 + $0x16c] ss:$12 sps:$4 sm:$0xff]   ;;  %v7175_v45 = vld [vmem:[#allocation7 + $0x170] ss:$12 sps:$4 sm:$0xff]   ;;  %v7172_v46 = vld [vmem:[#allocation7 + $0x168] ss:$12 sps:$4 sm:$0xff]  }
 0x15e   :  { %1321 = vmatpush1.bf16.msra.mxu0 %v7095_v47  ;;  %1480 = vmatpush1.bf16.msra.mxu1 %v7098_v48  ;;  %v7176_v47 = vld [vmem:[#allocation7 + $0xb0] ss:$12 sps:$4 sm:$0xff]  }
 0x15f   :  { %1322 = vmatprep.subr.bf16.mxu0 %v7103_v49  ;;  %1481 = vmatprep.subr.bf16.mxu1 %v7106_v50  ;;  %v7179_v48 = vld [vmem:[#allocation7 + $0x184] ss:$12 sps:$4 sm:$0xff]   ;;  %v7180_v49 = vld [vmem:[#allocation7 + $0x248] ss:$12 sps:$4 sm:$0xff]   ;;  %v384_v50 = vlaneseq }
 0x162   :  { %1323 = vmatpush1.bf16.msra.mxu0 %v7101_v51  ;;  %1482 = vmatpush1.bf16.msra.mxu1 %v7104_v52  ;;  %v8294_v51 = vshrl.u32 %v384_v50, 7 }
 0x163   :  { %1324 = vmatprep.subr.bf16.mxu0 %v7109_v53  ;;  %1483 = vmatprep.subr.bf16.mxu1 %v7112_v54  ;;  %v382_v54 = vld [vmem:[%s8443_s2] sm:$0xf] }
 0x164   :  { %v8297_v52 = vsub.s32 0, %v8294_v51  ;;  %v8300_v53 = vsub.s32 2, %v8294_v51 }
 0x166   :  { %1325 = vmatpush1.bf16.msra.mxu0 %v7107_v55  ;;  %1484 = vmatpush1.bf16.msra.mxu1 %v7110_v56  ;;  %v8306_v55 = vsub.s32 1, %v8294_v51  ;;  %v8309_v56 = vsub.s32 3, %v8294_v51  ;;  %v387_v57 = vrot.slane %v382_v54, %v8297_v52  ;;  %v395_v58 = vrot.slane %v382_v54, %v8300_v53 }
 0x167   :  { %2203 = vmatprep.subr.bf16.mxu0 %v7115_v59  ;;  %6537 = vmatprep.subr.bf16.mxu1 %v7140_v60 }
 0x168   :  { %v391_v59 = vrot.slane %v382_v54, %v8306_v55  ;;  %v399_v60 = vrot.slane %v382_v54, %v8309_v56 }
 0x169   :  { %1343 = vmatmul.mubr.bf16.vlgmr.msra.gmra.mrb[0].mxu0 %v216_v61  ;;  %1502 = vmatmul.mubr.bf16.vlgmr.msra.gmra.mrb[0].mxu1 %v216_v61 }
 0x16a   :  { %1352 = vmatprep.mubr.bf16.mxu0 %v8063_v44  ;;  %1511 = vmatprep.mubr.bf16.mxu1 %v8063_v44 }
 0x16b   :  { %2204 = vmatpush1.bf16.msra.mxu0 %v7113_v62  ;;  %6538 = vmatpush3.bf16.msra.mxu1 %v7141_v63 }
 0x16c   :  { %2205 = vmatprep.subr.bf16.mxu0 %v7118_v0  ;;  %6539 = vmatprep.subr.bf16.mxu1 %v7145_v1 }
 0x16f   :  { %2206 = vmatpush1.bf16.msra.mxu0 %v7116_v4  ;;  %6540 = vmatpush3.bf16.msra.mxu1 %v7146_v5 }
 0x170   :  { %2207 = vmatprep.subr.bf16.mxu0 %v7121_v6  ;;  %6541 = vmatprep.subr.bf16.mxu1 %v7150_v7 }
 0x171   :  { %1353 = vmatmul.mubr.bf16.gmra.mrb[4].mxu0 %v221_v8  ;;  %1512 = vmatmul.mubr.bf16.gmra.mrb[4].mxu1 %v221_v8 }
 0x173   :  { %2208 = vmatpush1.bf16.msra.mxu0 %v7119_v9  ;;  %6542 = vmatpush3.bf16.msra.mxu1 %v7151_v10 }
 0x174   :  { %2209 = vmatprep.subr.bf16.mxu0 %v7124_v11  ;;  %6543 = vmatprep.subr.bf16.mxu1 %v7155_v12 }
 0x177   :  { %2210 = vmatpush1.bf16.msra.mxu0 %v7122_v13  ;;  %6544 = vmatpush3.bf16.msra.mxu1 %v7156_v14 }
 0x178   :  { %2211 = vmatprep.subr.bf16.mxu0 %v7127_v15  ;;  %6545 = vmatprep.subr.bf16.mxu1 %v7160_v16 }
 0x17b   :  { %2212 = vmatpush1.bf16.msra.mxu0 %v7125_v17  ;;  %6546 = vmatpush3.bf16.msra.mxu1 %v7161_v18 }
 0x17c   :  { %2213 = vmatprep.subr.bf16.mxu0 %v7130_v19  ;;  %6547 = vmatprep.subr.bf16.mxu1 %v7165_v20 }
 0x17f   :  { %2214 = vmatpush1.bf16.msra.mxu0 %v7128_v21  ;;  %6548 = vmatpush3.bf16.msra.mxu1 %v7166_v22 }
 0x180   :  { %2215 = vmatprep.subr.bf16.mxu0 %v7133_v23  ;;  %6549 = vmatprep.subr.bf16.mxu1 %v7170_v40 }
 0x183   :  { %2216 = vmatpush1.bf16.msra.mxu0 %v7131_v24  ;;  %6550 = vmatpush3.bf16.msra.mxu1 %v7171_v42 }
 0x184   :  { %2217 = vmatprep.subr.bf16.mxu0 %v7136_v25  ;;  %6551 = vmatprep.subr.bf16.mxu1 %v7175_v45 }
 0x187   :  { %2218 = vmatpush1.bf16.msra.mxu0 %v7134_v26  ;;  %6552 = vmatpush3.bf16.msra.mxu1 %v7176_v47  ;;  %v7177_v26 = vld [vmem:[#allocation7 + $0x180] ss:$12 sps:$4 sm:$0xff]  }
 0x188   :  { %2219 = vmatprep.subr.bf16.mxu0 %v7139_v27  ;;  %6565 = vmatprep.subr.bf16.mxu1 %v7180_v49  ;;  %v7181_v27 = vld [vmem:[#allocation7 + $0x188] ss:$12 sps:$4 sm:$0xff]   ;;  %v7186_v47 = vld [vmem:[#allocation7 + $0x1a0] ss:$12 sps:$4 sm:$0xff]  }
 0x18b   :  { %2220 = vmatpush1.bf16.msra.mxu0 %v7137_v28 }
 0x18c   :  { %2221 = vmatprep.subr.bf16.mxu0 %v7144_v29 }
 0x18f   :  { %2222 = vmatpush1.bf16.msra.mxu0 %v7142_v30 }
 0x190   :  { %2223 = vmatprep.subr.bf16.mxu0 %v7149_v31  ;;  %v7184_v31 = vld [vmem:[#allocation7 + $0x19c] ss:$12 sps:$4 sm:$0xff]  }
 0x193   :  { %2224 = vmatpush1.bf16.msra.mxu0 %v7147_v32  ;;  %v7185_v32 = vld [vmem:[#allocation7 + $0x260] ss:$12 sps:$4 sm:$0xff]  }
 0x194   :  { %2225 = vmatprep.subr.bf16.mxu0 %v7154_v33 }
 0x197   :  { %2226 = vmatpush1.bf16.msra.mxu0 %v7152_v34 }
 0x198   :  { %2227 = vmatprep.subr.bf16.mxu0 %v7159_v35 }
 0x19b   :  { %2228 = vmatpush1.bf16.msra.mxu0 %v7157_v36 }
 0x19c   :  { %2229 = vmatprep.subr.bf16.mxu0 %v7164_v37 }
 0x19f   :  { %2230 = vmatpush1.bf16.msra.mxu0 %v7162_v38 }
 0x1a0   :  { %2231 = vmatprep.subr.bf16.mxu0 %v7169_v39 }
 0x1a3   :  { %2232 = vmatpush1.bf16.msra.mxu0 %v7167_v41  ;;  %v7182_v41 = vld [vmem:[#allocation7 + $0x198] ss:$12 sps:$4 sm:$0xff]  }
 0x1a4   :  { %2233 = vmatprep.subr.bf16.mxu0 %v7174_v43 }
 0x1a7   :  { %2234 = vmatpush1.bf16.msra.mxu0 %v7172_v46 }
 0x1a8   :  { %2256 = vmatprep.subr.bf16.mxu0 %v7179_v48  ;;  %v7189_v48 = vld [vmem:[#allocation7 + $0x1b4] ss:$12 sps:$4 sm:$0xff]  }
 0x23c   :  { %v1344_v61 = vpop.f32.mrb[0].mxu0  ;;  %v1503_v62 = vpop.f32.mrb[0].mxu1 }
 0x23d   :  { %v6705_v63 = vadd.f32 %v1344_v61, %v387_v57  ;;  %v6713_v0 = vadd.f32 %v1503_v62, %v395_v58  ;;  %v1346_v1 = vpop.f32.mrb[1].mxu0  ;;  %v1505_v2 = vpop.f32.mrb[1].mxu1  ;;  %v7190_v62 = vld [vmem:[#allocation7 + $0x278] ss:$12 sps:$4 sm:$0xff]  }
 0x23e   :  { %v6706_v3 = vadd.f32 %v1346_v1, %v391_v59  ;;  %v6714_v4 = vadd.f32 %v1505_v2, %v399_v60  ;;  %v1348_v5 = vpop.f32.mrb[2].mxu0  ;;  %v1507_v6 = vpop.f32.mrb[2].mxu1 }
 0x23f   :  { %v6707_v7 = vadd.f32 %v1348_v5, %v387_v57  ;;  %v6715_v8 = vadd.f32 %v1507_v6, %v395_v58  ;;  %v1350_v9 = vpop.f32.mrb[3].mxu0  ;;  %v1509_v10 = vpop.f32.mrb[3].mxu1  ;;  %v1522_v13 = vmax.f32 %v6705_v63, 0.0  ;;  %v1524_v14 = vmax.f32 %v6713_v0, 0.0  ;;  %v7195_v6 = vld [vmem:[#allocation7 + $0x290] ss:$12 sps:$4 sm:$0xff]  }
 0x240   :  { %v6708_v11 = vadd.f32 %v1350_v9, %v391_v59  ;;  %v6716_v12 = vadd.f32 %v1509_v10, %v399_v60  ;;  %v1523_v17 = vmax.f32 %v6706_v3, 0.0  ;;  %v1525_v18 = vmax.f32 %v6714_v4, 0.0  ;;  %v7191_v4 = vld [vmem:[#allocation7 + $0x1b8] ss:$12 sps:$4 sm:$0xff]   ;;  %v7200_v10 = vld [vmem:[#allocation7 + $0x2a8] ss:$12 sps:$4 sm:$0xff]  }
 0x241   :  { %v1526_v15 = vmax.f32 %v6707_v7, 0.0  ;;  %v1528_v16 = vmax.f32 %v6715_v8, 0.0  ;;  %v7192_v7 = vld [vmem:[#allocation7 + $0x1c8] ss:$12 sps:$4 sm:$0xff]   ;;  %v7196_v8 = vld [vmem:[#allocation7 + $0x1d0] ss:$12 sps:$4 sm:$0xff]  }
 0x242   :  { %v1527_v19 = vmax.f32 %v6708_v11, 0.0  ;;  %v1529_v20 = vmax.f32 %v6716_v12, 0.0  ;;  %v7199_v9 = vld [vmem:[#allocation7 + $0x1e4] ss:$12 sps:$4 sm:$0xff]   ;;  %v7197_v11 = vld [vmem:[#allocation7 + $0x1e0] ss:$12 sps:$4 sm:$0xff]  }
 0x243   :  { %v1538_v21 = vpack.c.bf16 %v1526_v15, %v1522_v13  ;;  %v8315_v22 = vpack.c.bf16 %v1528_v16, %v1524_v14  ;;  %v7201_v12 = vld [vmem:[#allocation7 + $0x1e8] ss:$12 sps:$4 sm:$0xff]   ;;  %v7205_v14 = vld [vmem:[#allocation7 + $0x2c0] ss:$12 sps:$4 sm:$0xff]   ;;  %v7202_v15 = vld [vmem:[#allocation7 + $0x1f8] ss:$12 sps:$4 sm:$0xff]  }
 0x244   :  { %v1539_v23 = vpack.c.bf16 %v1527_v19, %v1523_v17  ;;  %v1541_v24 = vpack.c.bf16 %v1529_v20, %v1525_v18  ;;  %v1354_v25 = vpop.f32.mrb[4].mxu0  ;;  %v1513_v28 = vpop.f32.mrb[4].mxu1  ;;  %v7204_v13 = vld [vmem:[#allocation7 + $0x1fc] ss:$12 sps:$4 sm:$0xff]   ;;  %v7206_v16 = vld [vmem:[#allocation7 + $0x200] ss:$12 sps:$4 sm:$0xff]  }
 0x245   :  { %v6709_v29 = vadd.f32 %v1354_v25, %v387_v57  ;;  %v1356_v30 = vpop.f32.mrb[5].mxu0  ;;  %v6717_v33 = vadd.f32 %v1513_v28, %v395_v58  ;;  %v1515_v34 = vpop.f32.mrb[5].mxu1  ;;  %v7209_v17 = vld [vmem:[#allocation7 + $0x214] ss:$12 sps:$4 sm:$0xff]   ;;  %v7210_v18 = vld [vmem:[#allocation7 + $0x2d8] ss:$12 sps:$4 sm:$0xff]  }
 0x246   :  { %v6710_v35 = vadd.f32 %v1356_v30, %v391_v59  ;;  %v1358_v36 = vpop.f32.mrb[6].mxu0  ;;  %2235 = vmatprep.mubr.bf16.mxu0 %v1539_v23  ;;  %2341 = vmatprep.mubr.bf16.mxu1 %v1539_v23  ;;  %v6718_v37 = vadd.f32 %v1515_v34, %v399_v60  ;;  %v1517_v38 = vpop.f32.mrb[6].mxu1  ;;  %v7207_v19 = vld [vmem:[#allocation7 + $0x210] ss:$12 sps:$4 sm:$0xff]   ;;  %v7211_v20 = vld [vmem:[#allocation7 + $0x218] ss:$12 sps:$4 sm:$0xff]  }
 0x247   :  { %v6711_v39 = vadd.f32 %v1358_v36, %v387_v57  ;;  %v1360_v40 = vpop.f32.mrb[7].mxu0  ;;  %2236 = vmatmul.mubr.bf16.vlgmr.msra.gmra.mrb[8].mxu0 %v1538_v21  ;;  %2342 = vmatmul.mubr.bf16.vlgmr.msra.gmra.mrb[8].mxu1 %v1538_v21  ;;  %v1532_v42 = vmax.f32 %v6717_v33, 0.0  ;;  %v6719_v43 = vadd.f32 %v1517_v38, %v395_v58  ;;  %v1519_v45 = vpop.f32.mrb[7].mxu1  ;;  %v1530_v54 = vmax.f32 %v6709_v29, 0.0  ;;  %v7214_v21 = vld [vmem:[#allocation7 + $0x22c] ss:$12 sps:$4 sm:$0xff]  }
 0x248   :  { %v6712_v46 = vadd.f32 %v1360_v40, %v391_v59  ;;  %2257 = vmatpush1.bf16.msra.mxu0 %v7177_v26  ;;  %6566 = vmatpush3.bf16.msra.mxu1 %v7181_v27  ;;  %v1533_v49 = vmax.f32 %v6718_v37, 0.0  ;;  %v6720_v50 = vadd.f32 %v1519_v45, %v399_v60  ;;  %v1531_v63 = vmax.f32 %v6710_v35, 0.0  ;;  %v7187_v59 = vld [vmem:[#allocation7 + $0x1b0] ss:$12 sps:$4 sm:$0xff]   ;;  %v7194_v60 = vld [vmem:[#allocation7 + $0x1cc] ss:$12 sps:$4 sm:$0xff]  }
 0x249   :  { %v1534_v61 = vmax.f32 %v6711_v39, 0.0  ;;  %2258 = vmatprep.subr.bf16.mxu0 %v7184_v31  ;;  %6567 = vmatprep.subr.bf16.mxu1 %v7185_v32  ;;  %v1536_v57 = vmax.f32 %v6719_v43, 0.0  ;;  %v7215_v23 = vld [vmem:[#allocation7 + $0x2f0] ss:$12 sps:$4 sm:$0xff]   ;;  %v7217_v27 = vld [vmem:[#allocation7 + $0x240] ss:$12 sps:$4 sm:$0xff]  }
 0x24a   :  { %v1535_v0 = vmax.f32 %v6712_v46, 0.0  ;;  %v1537_v1 = vmax.f32 %v6720_v50, 0.0  ;;  %v7216_v25 = vld [vmem:[#allocation7 + $0x230] ss:$12 sps:$4 sm:$0xff]   ;;  %v7220_v29 = vld [vmem:[#allocation7 + $0x258] ss:$12 sps:$4 sm:$0xff]  }
 0x24b   :  { %v1542_v2 = vpack.c.bf16 %v1534_v61, %v1530_v54  ;;  %v8317_v3 = vpack.c.bf16 %v1536_v57, %v1532_v42  ;;  %v7219_v26 = vld [vmem:[#allocation7 + $0x244] ss:$12 sps:$4 sm:$0xff]   ;;  %v7222_v28 = vld [vmem:[#allocation7 + $0x25c] ss:$12 sps:$4 sm:$0xff]   ;;  %v7225_v30 = vld [vmem:[#allocation7 + $0x274] ss:$12 sps:$4 sm:$0xff]  }
 0x24c   :  { %v1543_v58 = vpack.c.bf16 %v1535_v0, %v1531_v63  ;;  %2259 = vmatpush1.bf16.msra.mxu0 %v7182_v41  ;;  %6568 = vmatpush3.bf16.msra.mxu1 %v7186_v47  ;;  %v8319_v5 = vpack.c.bf16 %v1537_v1, %v1533_v49  ;;  %v7223_v31 = vld [vmem:[#allocation7 + $0x270] ss:$12 sps:$4 sm:$0xff]   ;;  %v7228_v32 = vld [vmem:[#allocation7 + $0x28c] ss:$12 sps:$4 sm:$0xff]   ;;  %v7226_v33 = vld [vmem:[#allocation7 + $0x288] ss:$12 sps:$4 sm:$0xff]  }
 0x24d   :  { %2260 = vmatprep.subr.bf16.mxu0 %v7189_v48  ;;  %6569 = vmatprep.subr.bf16.mxu1 %v7190_v62  ;;  %v7231_v34 = vld [vmem:[#allocation7 + $0x2a4] ss:$12 sps:$4 sm:$0xff]   ;;  %v7229_v35 = vld [vmem:[#allocation7 + $0x2a0] ss:$12 sps:$4 sm:$0xff]   ;;  %v7234_v36 = vld [vmem:[#allocation7 + $0x2bc] ss:$12 sps:$4 sm:$0xff]  }
 0x24e   :  { %2245 = vmatprep.mubr.bf16.mxu0 %v1543_v58  ;;  %2349 = vmatprep.mubr.bf16.mxu1 %v1543_v58  ;;  %v7232_v37 = vld [vmem:[#allocation7 + $0x2b8] ss:$12 sps:$4 sm:$0xff]   ;;  %v7237_v38 = vld [vmem:[#allocation7 + $0x2d4] ss:$12 sps:$4 sm:$0xff]   ;;  %v7235_v39 = vld [vmem:[#allocation7 + $0x2d0] ss:$12 sps:$4 sm:$0xff]  }
 0x24f   :  { %2246 = vmatmul.mubr.bf16.gmra.mrb[12].mxu0 %v1542_v2  ;;  %2350 = vmatmul.mubr.bf16.gmra.mrb[12].mxu1 %v1542_v2  ;;  %v7240_v40 = vld [vmem:[#allocation7 + $0x2ec] ss:$12 sps:$4 sm:$0xff]   ;;  %v7238_v41 = vld [vmem:[#allocation7 + $0x2e8] ss:$12 sps:$4 sm:$0xff]  }
 0x250   :  { %2261 = vmatpush1.bf16.msra.mxu0 %v7187_v59  ;;  %6570 = vmatpush3.bf16.msra.mxu1 %v7191_v4  ;;  %v7243_v42 = vld [vmem:[#allocation10 + $0x4] ss:$8 sps:$4 sm:$0xff]   ;;  %v7241_v43 = vld [vmem:[#allocation10] ss:$8 sps:$4 sm:$0xff]   ;;  %v7246_v45 = vld [vmem:[#allocation10 + $0x14] ss:$8 sps:$4 sm:$0xff]  }
 0x251   :  { %2288 = vmatprep.mubr.bf16.mxu0 %v1541_v24  ;;  %2390 = vmatprep.mubr.bf16.mxu1 %v1541_v24  ;;  %v7212_v24 = vld [vmem:[#allocation7 + $0x228] ss:$12 sps:$4 sm:$0xff]   ;;  %v7247_v48 = vld [vmem:[#allocation10 + $0x20] ss:$8 sps:$4 sm:$0xff]   ;;  %v7252_v49 = vld [vmem:[#allocation10 + $0x34] ss:$8 sps:$4 sm:$0xff]  }
 0x252   :  { %2262 = vmatprep.subr.bf16.mxu0 %v7194_v60  ;;  %6571 = vmatprep.subr.bf16.mxu1 %v7195_v6  ;;  %v7244_v46 = vld [vmem:[#allocation10 + $0x10] ss:$8 sps:$4 sm:$0xff]   ;;  %v7249_v47 = vld [vmem:[#allocation10 + $0x24] ss:$8 sps:$4 sm:$0xff]   ;;  %v7253_v54 = vld [vmem:[#allocation10 + $0x40] ss:$8 sps:$4 sm:$0xff]  }
 0x253   :  { %v7250_v50 = vld [vmem:[#allocation10 + $0x30] ss:$8 sps:$4 sm:$0xff]   ;;  %v7258_v61 = vld [vmem:[#allocation10 + $0x54] ss:$8 sps:$4 sm:$0xff]   ;;  %v7261_v57 = vld [vmem:[#allocation10 + $0x64] ss:$8 sps:$4 sm:$0xff]  }
 0x254   :  { %2263 = vmatpush1.bf16.msra.mxu0 %v7192_v7  ;;  %6572 = vmatpush3.bf16.msra.mxu1 %v7196_v8  ;;  %v7256_v62 = vld [vmem:[#allocation10 + $0x50] ss:$8 sps:$4 sm:$0xff]   ;;  %v7259_v63 = vld [vmem:[#allocation10 + $0x60] ss:$8 sps:$4 sm:$0xff]   ;;  %v7264_v0 = vld [vmem:[#allocation10 + $0x74] ss:$8 sps:$4 sm:$0xff]  }
 0x255   :  { %2264 = vmatprep.subr.bf16.mxu0 %v7199_v9  ;;  %6573 = vmatprep.subr.bf16.mxu1 %v7200_v10  ;;  %v7262_v1 = vld [vmem:[#allocation10 + $0x70] ss:$8 sps:$4 sm:$0xff]   ;;  %v7267_v2 = vld [vmem:[#allocation10 + $0x84] ss:$8 sps:$4 sm:$0xff]   ;;  %v7270_v58 = vld [vmem:[#allocation10 + $0x94] ss:$8 sps:$4 sm:$0xff]  }
 0x256   :  { %v7268_v59 = vld [vmem:[#allocation10 + $0x90] ss:$8 sps:$4 sm:$0xff]   ;;  %v7271_v4 = vld [vmem:[#allocation10 + $0xa0] ss:$8 sps:$4 sm:$0xff]   ;;  %v7276_v60 = vld [vmem:[#allocation10 + $0xb4] ss:$8 sps:$4 sm:$0xff]  }
 0x257   :  { %v7274_v6 = vld [vmem:[#allocation10 + $0xb0] ss:$8 sps:$4 sm:$0xff]   ;;  %v7279_v7 = vld [vmem:[#allocation10 + $0xc4] ss:$8 sps:$4 sm:$0xff]   ;;  %v7277_v8 = vld [vmem:[#allocation10 + $0xc0] ss:$8 sps:$4 sm:$0xff]  }
 0x258   :  { %2265 = vmatpush1.bf16.msra.mxu0 %v7197_v11  ;;  %6574 = vmatpush3.bf16.msra.mxu1 %v7201_v12  ;;  %v7282_v9 = vld [vmem:[#allocation10 + $0xd4] ss:$8 sps:$4 sm:$0xff]   ;;  %v7280_v10 = vld [vmem:[#allocation10 + $0xd0] ss:$8 sps:$4 sm:$0xff]   ;;  %v7285_v11 = vld [vmem:[#allocation10 + $0xe4] ss:$8 sps:$4 sm:$0xff]  }
 0x259   :  { %2266 = vmatprep.subr.bf16.mxu0 %v7204_v13  ;;  %6575 = vmatprep.subr.bf16.mxu1 %v7205_v14  ;;  %v7283_v12 = vld [vmem:[#allocation10 + $0xe0] ss:$8 sps:$4 sm:$0xff]   ;;  %v7288_v13 = vld [vmem:[#allocation10 + $0xf4] ss:$8 sps:$4 sm:$0xff]   ;;  %v7286_v14 = vld [vmem:[#allocation10 + $0xf0] ss:$8 sps:$4 sm:$0xff]  }
 0x25c   :  { %2267 = vmatpush1.bf16.msra.mxu0 %v7202_v15  ;;  %6576 = vmatpush3.bf16.msra.mxu1 %v7206_v16  ;;  %v7291_v15 = vld [vmem:[#allocation10 + $0x104] ss:$8 sps:$4 sm:$0xff]  }
 0x25d   :  { %2268 = vmatprep.subr.bf16.mxu0 %v7209_v17  ;;  %6577 = vmatprep.subr.bf16.mxu1 %v7210_v18  ;;  %v7313_v16 = vld [vmem:[#allocation11 + $0x40] sm:$0xff]   ;;  %v7315_v18 = vld [vmem:[#allocation11 + $0x48] sm:$0xff]  }
 0x25e   :  { %v7314_v17 = vld [vmem:[#allocation11] sm:$0xff]  }
 0x260   :  { %2269 = vmatpush1.bf16.msra.mxu0 %v7207_v19  ;;  %6578 = vmatpush3.bf16.msra.mxu1 %v7211_v20  ;;  %v7316_v19 = vld [vmem:[#allocation11 + $0x8] sm:$0xff]   ;;  %v7317_v20 = vld [vmem:[#allocation11 + $0x50] sm:$0xff]  }
 0x261   :  { %2270 = vmatprep.subr.bf16.mxu0 %v7214_v21  ;;  %6579 = vmatprep.subr.bf16.mxu1 %v7215_v23  ;;  %v7318_v21 = vld [vmem:[#allocation11 + $0x10] sm:$0xff]   ;;  %v7319_v23 = vld [vmem:[#allocation11 + $0x58] sm:$0xff]  }
 0x264   :  { %2271 = vmatpush1.bf16.msra.mxu0 %v7212_v24  ;;  %6580 = vmatpush3.bf16.msra.mxu1 %v7216_v25  ;;  %v7320_v24 = vld [vmem:[#allocation11 + $0x18] sm:$0xff]   ;;  %v7321_v25 = vld [vmem:[#allocation11 + $0x60] sm:$0xff]  }
 0x265   :  { %2272 = vmatprep.subr.bf16.mxu0 %v7219_v26  ;;  %2725 = vmatprep.subr.bf16.mxu1 %v7243_v42 }
 0x267   :  { %2391 = vmatmul.mubr.bf16.vlgmr.msra.gmra.mrb[16].mxu1 %v8315_v22 }
 0x268   :  { %2273 = vmatpush1.bf16.msra.mxu0 %v7217_v27  ;;  %2398 = vmatprep.mubr.bf16.mxu1 %v8319_v5 }
 0x269   :  { %2274 = vmatprep.subr.bf16.mxu0 %v7222_v28  ;;  %2726 = vmatpush1.bf16.msra.mxu1 %v7241_v43 }
 0x26a   :  { %2727 = vmatprep.subr.bf16.mxu1 %v7246_v45 }
 0x26c   :  { %2275 = vmatpush1.bf16.msra.mxu0 %v7220_v29 }
 0x26d   :  { %2276 = vmatprep.subr.bf16.mxu0 %v7225_v30  ;;  %2728 = vmatpush1.bf16.msra.mxu1 %v7244_v46  ;;  %v7322_v30 = vld [vmem:[#allocation11 + $0x20] sm:$0xff]  }
 0x26e   :  { %2729 = vmatprep.subr.bf16.mxu1 %v7249_v47 }
 0x26f   :  { %2399 = vmatmul.mubr.bf16.gmra.mrb[20].mxu1 %v8317_v3 }
 0x270   :  { %2277 = vmatpush1.bf16.msra.mxu0 %v7223_v31 }
 0x271   :  { %2278 = vmatprep.subr.bf16.mxu0 %v7228_v32  ;;  %2730 = vmatpush1.bf16.msra.mxu1 %v7247_v48  ;;  %v7323_v32 = vld [vmem:[#allocation11 + $0x68] sm:$0xff]  }
 0x272   :  { %2731 = vmatprep.subr.bf16.mxu1 %v7252_v49 }
 0x274   :  { %2279 = vmatpush1.bf16.msra.mxu0 %v7226_v33 }
 0x275   :  { %2280 = vmatprep.subr.bf16.mxu0 %v7231_v34  ;;  %2732 = vmatpush1.bf16.msra.mxu1 %v7250_v50 }
 0x278   :  { %2281 = vmatpush1.bf16.msra.mxu0 %v7229_v35 }
 0x279   :  { %2282 = vmatprep.subr.bf16.mxu0 %v7234_v36 }
 0x27c   :  { %2283 = vmatpush1.bf16.msra.mxu0 %v7232_v37 }
 0x27d   :  { %2284 = vmatprep.subr.bf16.mxu0 %v7237_v38 }
 0x280   :  { %2285 = vmatpush1.bf16.msra.mxu0 %v7235_v39 }
 0x281   :  { %2286 = vmatprep.subr.bf16.mxu0 %v7240_v40  ;;  %v1674_v40 = vld [vmem:[#allocation8] sm:$0x7] }
 0x284   :  { %2287 = vmatpush1.bf16.msra.mxu0 %v7238_v41  ;;  %v1687_v41 = vrot.slane %v1674_v40, %v8300_v53 }
 0x285   :  { %6593 = vmatprep.subr.bf16.mxu0 %v7313_v16 }
 0x287   :  { %2289 = vmatmul.mubr.bf16.vlgmr.msra.gmra.mrb[8].mxu0 %v8315_v22  ;;  %v7255_v22 = vld [vmem:[#allocation10 + $0x44] ss:$8 sps:$4 sm:$0xff]  }
 0x288   :  { %2298 = vmatprep.mubr.bf16.mxu0 %v8319_v5  ;;  %2733 = vmatprep.subr.bf16.mxu1 %v7255_v22  ;;  %v7273_v5 = vld [vmem:[#allocation10 + $0xa4] ss:$8 sps:$4 sm:$0xff]  }
 0x289   :  { %2734 = vmatpush1.bf16.msra.mxu1 %v7253_v54  ;;  %6594 = vmatpush3.bf16.msra.mxu0 %v7314_v17 }
 0x28a   :  { %2735 = vmatprep.subr.bf16.mxu1 %v7258_v61  ;;  %6595 = vmatprep.subr.bf16.mxu0 %v7315_v18 }
 0x28d   :  { %2736 = vmatpush1.bf16.msra.mxu1 %v7256_v62  ;;  %6596 = vmatpush3.bf16.msra.mxu0 %v7316_v19 }
 0x28e   :  { %2737 = vmatprep.subr.bf16.mxu1 %v7261_v57  ;;  %6597 = vmatprep.subr.bf16.mxu0 %v7317_v20 }
 0x28f   :  { %2299 = vmatmul.mubr.bf16.gmra.mrb[12].mxu0 %v8317_v3  ;;  %v7265_v3 = vld [vmem:[#allocation10 + $0x80] ss:$8 sps:$4 sm:$0xff]  }
 0x291   :  { %2738 = vmatpush1.bf16.msra.mxu1 %v7259_v63  ;;  %6598 = vmatpush3.bf16.msra.mxu0 %v7318_v21 }
 0x292   :  { %2739 = vmatprep.subr.bf16.mxu1 %v7264_v0  ;;  %6599 = vmatprep.subr.bf16.mxu0 %v7319_v23 }
 0x295   :  { %2740 = vmatpush1.bf16.msra.mxu1 %v7262_v1  ;;  %6600 = vmatpush3.bf16.msra.mxu0 %v7320_v24 }
 0x296   :  { %2741 = vmatprep.subr.bf16.mxu1 %v7267_v2  ;;  %6601 = vmatprep.subr.bf16.mxu0 %v7321_v25 }
 0x299   :  { %2742 = vmatpush1.bf16.msra.mxu1 %v7265_v3  ;;  %6602 = vmatpush3.bf16.msra.mxu0 %v7322_v30  ;;  %v7294_v30 = vld [vmem:[#allocation10 + $0x114] ss:$8 sps:$4 sm:$0xff]  }
 0x29a   :  { %2743 = vmatprep.subr.bf16.mxu1 %v7270_v58  ;;  %6603 = vmatprep.subr.bf16.mxu0 %v7323_v32 }
 0x29d   :  { %2744 = vmatpush1.bf16.msra.mxu1 %v7268_v59 }
 0x29e   :  { %2745 = vmatprep.subr.bf16.mxu1 %v7273_v5 }
 0x2a1   :  { %2746 = vmatpush1.bf16.msra.mxu1 %v7271_v4 }
 0x2a2   :  { %2747 = vmatprep.subr.bf16.mxu1 %v7276_v60 }
 0x2a5   :  { %2748 = vmatpush1.bf16.msra.mxu1 %v7274_v6 }
 0x2a6   :  { %2749 = vmatprep.subr.bf16.mxu1 %v7279_v7 }
 0x2a9   :  { %2750 = vmatpush1.bf16.msra.mxu1 %v7277_v8 }
 0x2aa   :  { %2751 = vmatprep.subr.bf16.mxu1 %v7282_v9  ;;  %v1679_v9 = vrot.slane %v1674_v40, %v8297_v52 }
 0x2ad   :  { %2752 = vmatpush1.bf16.msra.mxu1 %v7280_v10  ;;  %v1683_v10 = vrot.slane %v1674_v40, %v8306_v55 }
 0x2ae   :  { %2753 = vmatprep.subr.bf16.mxu1 %v7285_v11 }
 0x2b1   :  { %2754 = vmatpush1.bf16.msra.mxu1 %v7283_v12 }
 0x2b2   :  { %2755 = vmatprep.subr.bf16.mxu1 %v7288_v13 }
 0x2b5   :  { %2756 = vmatpush1.bf16.msra.mxu1 %v7286_v14 }
 0x2b6   :  { %2778 = vmatprep.subr.bf16.mxu1 %v7291_v15 }
 0x31a   :  { %v6553_v26 = vpop.f32.mrb[8].mxu1 }
 0x31b   :  { %v6554_v27 = vpop.f32.mrb[9].mxu1 }
 0x31c   :  { %v6555_v28 = vadd.f32 %v6554_v27, %v6553_v26  ;;  %v6556_v29 = vpop.f32.mrb[10].mxu1  ;;  %v7289_v27 = vld [vmem:[#allocation10 + $0x100] ss:$8 sps:$4 sm:$0xff]  }
 0x31d   :  { %v6557_v31 = vpop.f32.mrb[11].mxu1 }
 0x31e   :  { %v6558_v33 = vadd.f32 %v6557_v31, %v6556_v29  ;;  %v2344_v45 = vadd.f32 %v6555_v28, %v1687_v41 }
 0x320   :  { %v2347_v49 = vadd.f32 %v6558_v33, %v1687_v41 }
 0x322   :  { %v6559_v34 = vpop.f32.mrb[12].mxu1 }
 0x323   :  { %v6560_v35 = vpop.f32.mrb[13].mxu1 }
 0x324   :  { %v6561_v36 = vadd.f32 %v6560_v35, %v6559_v34  ;;  %v6562_v37 = vpop.f32.mrb[14].mxu1 }
 0x325   :  { %v6563_v38 = vpop.f32.mrb[15].mxu1 }
 0x326   :  { %v6564_v39 = vadd.f32 %v6563_v38, %v6562_v37  ;;  %v2352_v0 = vadd.f32 %v6561_v36, %v1687_v41  ;;  %v7292_v36 = vld [vmem:[#allocation10 + $0x110] ss:$8 sps:$4 sm:$0xff]  }
 0x328   :  { %v2355_v59 = vadd.f32 %v6564_v39, %v1687_v41  ;;  %v7297_v39 = vld [vmem:[#allocation10 + $0x124] ss:$8 sps:$4 sm:$0xff]  }
 0x33a   :  { %v6581_v42 = vpop.f32.mrb[16].mxu1 }
 0x33b   :  { %v6582_v43 = vpop.f32.mrb[17].mxu1 }
 0x33c   :  { %v6583_v46 = vadd.f32 %v6582_v43, %v6581_v42  ;;  %v6584_v47 = vpop.f32.mrb[18].mxu1 }
 0x33d   :  { %v6585_v48 = vpop.f32.mrb[19].mxu1 }
 0x33e   :  { %v2393_v50 = vadd.f32 %v6583_v46, %v2344_v45  ;;  %v6586_v22 = vadd.f32 %v6585_v48, %v6584_v47  ;;  %v7295_v45 = vld [vmem:[#allocation10 + $0x120] ss:$8 sps:$4 sm:$0xff]   ;;  %v7300_v46 = vld [vmem:[#allocation10 + $0x134] ss:$8 sps:$4 sm:$0xff]   ;;  %v7298_v47 = vld [vmem:[#allocation10 + $0x130] ss:$8 sps:$4 sm:$0xff]  }
 0x33f   :  { %v7303_v48 = vld [vmem:[#allocation10 + $0x144] ss:$8 sps:$4 sm:$0xff]  }
 0x340   :  { %v2396_v54 = vadd.f32 %v6586_v22, %v2347_v49  ;;  %v2409_v61 = vmax.f32 %v2393_v50, 0.0  ;;  %v7301_v49 = vld [vmem:[#allocation10 + $0x140] ss:$8 sps:$4 sm:$0xff]   ;;  %v7306_v50 = vld [vmem:[#allocation10 + $0x154] ss:$8 sps:$4 sm:$0xff]  }
 0x341   :  { %v7304_v22 = vld [vmem:[#allocation10 + $0x150] ss:$8 sps:$4 sm:$0xff]  }
 0x342   :  { %v2412_v62 = vmax.f32 %v2396_v54, 0.0  ;;  %v6587_v57 = vpop.f32.mrb[20].mxu1  ;;  %v7309_v54 = vld [vmem:[#allocation10 + $0x164] ss:$8 sps:$4 sm:$0xff]  }
 0x343   :  { %v6588_v63 = vpop.f32.mrb[21].mxu1 }
 0x344   :  { %v8328_v1 = vpack.c.bf16 %v2412_v62, %v2409_v61  ;;  %v6589_v2 = vadd.f32 %v6588_v63, %v6587_v57  ;;  %v6590_v3 = vpop.f32.mrb[22].mxu1  ;;  %v7307_v61 = vld [vmem:[#allocation10 + $0x160] ss:$8 sps:$4 sm:$0xff]   ;;  %v7312_v62 = vld [vmem:[#allocation10 + $0x174] ss:$8 sps:$4 sm:$0xff]  }
 0x345   :  { %v6591_v58 = vpop.f32.mrb[23].mxu1  ;;  %v7310_v57 = vld [vmem:[#allocation10 + $0x170] ss:$8 sps:$4 sm:$0xff]   ;;  %v7324_v63 = vld [vmem:[#allocation11 + $0x28] sm:$0xff]  }
 0x346   :  { %v2401_v4 = vadd.f32 %v6589_v2, %v2352_v0  ;;  %v6592_v5 = vadd.f32 %v6591_v58, %v6590_v3  ;;  %6604 = vmatpush3.bf16.msra.mxu0 %v7324_v63  ;;  %v7325_v0 = vld [vmem:[#allocation11 + $0x70] sm:$0xff]   ;;  %v7327_v3 = vld [vmem:[#allocation11 + $0x78] sm:$0xff]  }
 0x347   :  { %v7326_v2 = vld [vmem:[#allocation11 + $0x30] sm:$0xff]   ;;  %6605 = vmatprep.subr.bf16.mxu0 %v7325_v0  ;;  %v7328_v58 = vld [vmem:[#allocation11 + $0x38] sm:$0xff]  }
 0x348   :  { %v2404_v60 = vadd.f32 %v6592_v5, %v2355_v59  ;;  %v2415_v6 = vmax.f32 %v2401_v4, 0.0  ;;  %v7331_v59 = vld [vmem:[#allocation13 + $0x4] ss:$8 sps:$4 sm:$0xff]   ;;  %v7359_v63 = vld [vmem:[#allocation14 + $0x30] ss:$12 sps:$4 sm:$0xff]  }
 0x349   :  { %v7364_v0 = vld [vmem:[#allocation14 + $0x4c] ss:$12 sps:$4 sm:$0xff]  }
 0x34a   :  { %v2418_v7 = vmax.f32 %v2404_v60, 0.0  ;;  %6606 = vmatpush3.bf16.msra.mxu0 %v7326_v2  ;;  %v7362_v2 = vld [vmem:[#allocation14 + $0x48] ss:$12 sps:$4 sm:$0xff]  }
 0x34b   :  { %6607 = vmatprep.subr.bf16.mxu0 %v7327_v3  ;;  %v7367_v3 = vld [vmem:[#allocation14 + $0x64] ss:$12 sps:$4 sm:$0xff]  }
 0x34c   :  { %v8330_v8 = vpack.c.bf16 %v2418_v7, %v2415_v6 }
 0x34e   :  { %6608 = vmatpush3.bf16.msra.mxu0 %v7328_v58  ;;  %v7365_v58 = vld [vmem:[#allocation14 + $0x60] ss:$12 sps:$4 sm:$0xff]  }
 0x34f   :  { %3137 = vmatprep.subr.bf16.mxu0 %v7331_v59  ;;  %v7370_v59 = vld [vmem:[#allocation14 + $0x7c] ss:$12 sps:$4 sm:$0xff]  }
 0x35a   :  { %v2290_v11 = vpop.f32.mrb[8].mxu0 }
 0x35b   :  { %v6721_v12 = vadd.f32 %v2290_v11, %v1679_v9  ;;  %v2292_v13 = vpop.f32.mrb[9].mxu0 }
 0x35c   :  { %v6722_v14 = vadd.f32 %v2292_v13, %v1683_v10  ;;  %v2294_v15 = vpop.f32.mrb[10].mxu0 }
 0x35d   :  { %v6723_v16 = vadd.f32 %v2294_v15, %v1679_v9  ;;  %v2296_v17 = vpop.f32.mrb[11].mxu0  ;;  %v2407_v19 = vmax.f32 %v6721_v12, 0.0 }
 0x35e   :  { %v6724_v18 = vadd.f32 %v2296_v17, %v1683_v10  ;;  %v2408_v21 = vmax.f32 %v6722_v14, 0.0 }
 0x35f   :  { %v2410_v20 = vmax.f32 %v6723_v16, 0.0 }
 0x360   :  { %v2411_v23 = vmax.f32 %v6724_v18, 0.0 }
 0x361   :  { %v2419_v24 = vpack.c.bf16 %v2410_v20, %v2407_v19  ;;  %v7329_v20 = vld [vmem:[#allocation13] ss:$8 sps:$4 sm:$0xff]  }
 0x362   :  { %v2420_v25 = vpack.c.bf16 %v2411_v23, %v2408_v21  ;;  %v2300_v26 = vpop.f32.mrb[12].mxu0 }
 0x363   :  { %v6725_v28 = vadd.f32 %v2300_v26, %v1679_v9  ;;  %v2302_v29 = vpop.f32.mrb[13].mxu0 }
 0x364   :  { %v6726_v31 = vadd.f32 %v2302_v29, %v1683_v10  ;;  %v2304_v32 = vpop.f32.mrb[14].mxu0  ;;  %2757 = vmatprep.mubr.bf16.mxu1 %v2420_v25 }
 0x365   :  { %v6727_v33 = vadd.f32 %v2304_v32, %v1679_v9  ;;  %v2306_v34 = vpop.f32.mrb[15].mxu0  ;;  %2758 = vmatmul.mubr.bf16.vlgmr.msra.gmra.mrb[24].mxu1 %v2419_v24  ;;  %v2413_v37 = vmax.f32 %v6725_v28, 0.0  ;;  %v7334_v24 = vld [vmem:[#allocation13 + $0x14] ss:$8 sps:$4 sm:$0xff]  }
 0x366   :  { %v6728_v35 = vadd.f32 %v2306_v34, %v1683_v10  ;;  %2779 = vmatpush1.bf16.msra.mxu1 %v7289_v27  ;;  %v2414_v40 = vmax.f32 %v6726_v31, 0.0 }
 0x367   :  { %v2416_v38 = vmax.f32 %v6727_v33, 0.0  ;;  %2780 = vmatprep.subr.bf16.mxu1 %v7294_v30  ;;  %v7332_v30 = vld [vmem:[#allocation13 + $0x10] ss:$8 sps:$4 sm:$0xff]   ;;  %v7337_v33 = vld [vmem:[#allocation13 + $0x24] ss:$8 sps:$4 sm:$0xff]  }
 0x368   :  { %v2417_v41 = vmax.f32 %v6728_v35, 0.0 }
 0x369   :  { %v2422_v42 = vpack.c.bf16 %v2416_v38, %v2413_v37  ;;  %v7335_v38 = vld [vmem:[#allocation13 + $0x20] ss:$8 sps:$4 sm:$0xff]  }
 0x36a   :  { %v2423_v43 = vpack.c.bf16 %v2417_v41, %v2414_v40  ;;  %2781 = vmatpush1.bf16.msra.mxu1 %v7292_v36  ;;  %v7338_v40 = vld [vmem:[#allocation13 + $0x30] ss:$8 sps:$4 sm:$0xff]   ;;  %v7343_v41 = vld [vmem:[#allocation13 + $0x44] ss:$8 sps:$4 sm:$0xff]  }
 0x36b   :  { %2782 = vmatprep.subr.bf16.mxu1 %v7297_v39  ;;  %v7340_v39 = vld [vmem:[#allocation13 + $0x34] ss:$8 sps:$4 sm:$0xff]  }
 0x36c   :  { %2767 = vmatprep.mubr.bf16.mxu1 %v2423_v43  ;;  %v7346_v43 = vld [vmem:[#allocation13 + $0x54] ss:$8 sps:$4 sm:$0xff]  }
 0x36d   :  { %2768 = vmatmul.mubr.bf16.gmra.mrb[28].mxu1 %v2422_v42  ;;  %v7341_v42 = vld [vmem:[#allocation13 + $0x40] ss:$8 sps:$4 sm:$0xff]  }
 0x36e   :  { %2783 = vmatpush1.bf16.msra.mxu1 %v7295_v45  ;;  %2810 = vmatprep.mubr.bf16.mxu1 %v8063_v44  ;;  %v7344_v45 = vld [vmem:[#allocation13 + $0x50] ss:$8 sps:$4 sm:$0xff]  }
 0x36f   :  { %2784 = vmatprep.subr.bf16.mxu1 %v7300_v46  ;;  %v7349_v46 = vld [vmem:[#allocation13 + $0x64] ss:$8 sps:$4 sm:$0xff]  }
 0x372   :  { %2785 = vmatpush1.bf16.msra.mxu1 %v7298_v47  ;;  %v7347_v47 = vld [vmem:[#allocation13 + $0x60] ss:$8 sps:$4 sm:$0xff]  }
 0x373   :  { %2786 = vmatprep.subr.bf16.mxu1 %v7303_v48  ;;  %v7352_v48 = vld [vmem:[#allocation13 + $0x74] ss:$8 sps:$4 sm:$0xff]  }
 0x376   :  { %2787 = vmatpush1.bf16.msra.mxu1 %v7301_v49  ;;  %v7350_v49 = vld [vmem:[#allocation13 + $0x70] ss:$8 sps:$4 sm:$0xff]  }
 0x377   :  { %2788 = vmatprep.subr.bf16.mxu1 %v7306_v50  ;;  %v7353_v50 = vld [vmem:[#allocation14] ss:$12 sps:$4 sm:$0xff]  }
 0x37a   :  { %2789 = vmatpush1.bf16.msra.mxu1 %v7304_v22  ;;  %v7355_v22 = vld [vmem:[#allocation14 + $0x4] ss:$12 sps:$4 sm:$0xff]  }
 0x37b   :  { %2790 = vmatprep.subr.bf16.mxu1 %v7309_v54  ;;  %v7358_v54 = vld [vmem:[#allocation14 + $0x1c] ss:$12 sps:$4 sm:$0xff]  }
 0x37e   :  { %2791 = vmatpush1.bf16.msra.mxu1 %v7307_v61  ;;  %v7356_v61 = vld [vmem:[#allocation14 + $0x18] ss:$12 sps:$4 sm:$0xff]  }
 0x37f   :  { %2792 = vmatprep.subr.bf16.mxu1 %v7312_v62  ;;  %v7361_v62 = vld [vmem:[#allocation14 + $0x34] ss:$12 sps:$4 sm:$0xff]  }
 0x382   :  { %2793 = vmatpush1.bf16.msra.mxu1 %v7310_v57  ;;  %v7380_v57 = vld [vmem:[#allocation14 + $0xc8] ss:$12 sps:$4 sm:$0xff]  }
 0x383   :  { %3539 = vmatprep.subr.bf16.mxu1 %v7355_v22  ;;  %v7409_v22 = vld [vmem:[#allocation14 + $0x154] ss:$12 sps:$4 sm:$0xff]  }
 0x385   :  { %2811 = vmatmul.mubr.bf16.vlgmr.msra.gmra.mrb[24].mxu1 %v8328_v1  ;;  %v2473_v1 = vld [vmem:[%s8447_s6] sm:$0x3] }
 0x386   :  { %2820 = vmatprep.mubr.bf16.mxu1 %v8063_v44  ;;  %v2478_v4 = vrot.slane %v2473_v1, %v8297_v52  ;;  %v2482_v5 = vrot.slane %v2473_v1, %v8306_v55  ;;  %3540 = vmatpush1.bf16.msra.mxu1 %v7353_v50  ;;  %v7368_v1 = vld [vmem:[#allocation14 + $0x78] ss:$12 sps:$4 sm:$0xff]   ;;  %v7406_v50 = vld [vmem:[#allocation14 + $0x80] ss:$12 sps:$4 sm:$0xff]  }
 0x387   :  { %3541 = vmatprep.subr.bf16.mxu1 %v7358_v54  ;;  %v7410_v54 = vld [vmem:[#allocation14 + $0x158] ss:$12 sps:$4 sm:$0xff]  }
 0x38a   :  { %3542 = vmatpush1.bf16.msra.mxu1 %v7356_v61  ;;  %v7407_v61 = vld [vmem:[#allocation14 + $0x150] ss:$12 sps:$4 sm:$0xff]  }
 0x38b   :  { %3543 = vmatprep.subr.bf16.mxu1 %v7361_v62  ;;  %v7411_v62 = vld [vmem:[#allocation14 + $0x98] ss:$12 sps:$4 sm:$0xff]  }
 0x38d   :  { %2821 = vmatmul.mubr.bf16.gmra.mrb[28].mxu1 %v8330_v8 }
 0x38e   :  { %3544 = vmatpush1.bf16.msra.mxu1 %v7359_v63  ;;  %v7415_v63 = vld [vmem:[#allocation14 + $0x170] ss:$12 sps:$4 sm:$0xff]  }
 0x38f   :  { %3545 = vmatprep.subr.bf16.mxu1 %v7364_v0  ;;  %v7412_v0 = vld [vmem:[#allocation14 + $0x168] ss:$12 sps:$4 sm:$0xff]  }
 0x392   :  { %3546 = vmatpush1.bf16.msra.mxu1 %v7362_v2  ;;  %v7416_v2 = vld [vmem:[#allocation14 + $0xb0] ss:$12 sps:$4 sm:$0xff]  }
 0x393   :  { %3547 = vmatprep.subr.bf16.mxu1 %v7367_v3  ;;  %v7419_v3 = vld [vmem:[#allocation16 + $0x4] ss:$16 sps:$4 sm:$0xff]  }
 0x396   :  { %3548 = vmatpush1.bf16.msra.mxu1 %v7365_v58  ;;  %v7422_v58 = vld [vmem:[#allocation16 + $0xc] ss:$16 sps:$4 sm:$0xff]  }
 0x397   :  { %3549 = vmatprep.subr.bf16.mxu1 %v7370_v59  ;;  %v3045_v59 = vld [vmem:[%s8451_s10] sm:$0x3] }
 0x39a   :  { %3550 = vmatpush1.bf16.msra.mxu1 %v7368_v1  ;;  %v3050_v1 = vrot.slane %v3045_v59, %v8297_v52 }
 0x458   :  { %v2812_v60 = vpop.f32.mrb[24].mxu1 }
 0x459   :  { %v6729_v6 = vadd.f32 %v2812_v60, %v2478_v4  ;;  %v2814_v7 = vpop.f32.mrb[25].mxu1  ;;  %v7376_v60 = vld [vmem:[#allocation14 + $0xac] ss:$12 sps:$4 sm:$0xff]  }
 0x45a   :  { %v6730_v8 = vadd.f32 %v2814_v7, %v2482_v5  ;;  %v2816_v9 = vpop.f32.mrb[26].mxu1  ;;  %v7379_v7 = vld [vmem:[#allocation14 + $0xc4] ss:$12 sps:$4 sm:$0xff]  }
 0x45b   :  { %v6731_v10 = vadd.f32 %v2816_v9, %v2478_v4  ;;  %v2818_v11 = vpop.f32.mrb[27].mxu1  ;;  %v2831_v13 = vmax.f32 %v6729_v6, 0.0  ;;  %v7374_v6 = vld [vmem:[#allocation14 + $0xa8] ss:$12 sps:$4 sm:$0xff]  }
 0x45c   :  { %v6732_v12 = vadd.f32 %v2818_v11, %v2482_v5  ;;  %v2832_v15 = vmax.f32 %v6730_v8, 0.0  ;;  %v7377_v8 = vld [vmem:[#allocation14 + $0xc0] ss:$12 sps:$4 sm:$0xff]   ;;  %v7384_v9 = vld [vmem:[#allocation14 + $0xdc] ss:$12 sps:$4 sm:$0xff]  }
 0x45d   :  { %v2833_v14 = vmax.f32 %v6731_v10, 0.0  ;;  %v7382_v10 = vld [vmem:[#allocation14 + $0xd8] ss:$12 sps:$4 sm:$0xff]   ;;  %v7389_v11 = vld [vmem:[#allocation14 + $0xf4] ss:$12 sps:$4 sm:$0xff]  }
 0x45e   :  { %v2834_v16 = vmax.f32 %v6732_v12, 0.0  ;;  %v7387_v12 = vld [vmem:[#allocation14 + $0xf0] ss:$12 sps:$4 sm:$0xff]  }
 0x45f   :  { %v2839_v17 = vpack.c.bf16 %v2833_v14, %v2831_v13  ;;  %v7394_v13 = vld [vmem:[#allocation14 + $0x10c] ss:$12 sps:$4 sm:$0xff]   ;;  %v7392_v14 = vld [vmem:[#allocation14 + $0x108] ss:$12 sps:$4 sm:$0xff]  }
 0x460   :  { %v2840_v18 = vpack.c.bf16 %v2834_v16, %v2832_v15  ;;  %v2822_v19 = vpop.f32.mrb[28].mxu1  ;;  %v7399_v15 = vld [vmem:[#allocation14 + $0x124] ss:$12 sps:$4 sm:$0xff]   ;;  %v7397_v16 = vld [vmem:[#allocation14 + $0x120] ss:$12 sps:$4 sm:$0xff]  }
 0x461   :  { %v6733_v21 = vadd.f32 %v2822_v19, %v2478_v4  ;;  %v2824_v23 = vpop.f32.mrb[29].mxu1 }
 0x462   :  { %v6734_v25 = vadd.f32 %v2824_v23, %v2482_v5  ;;  %v2826_v26 = vpop.f32.mrb[30].mxu1  ;;  %3010 = vmatprep.mubr.bf16.mxu0 %v2840_v18  ;;  %v7402_v18 = vld [vmem:[#allocation14 + $0x138] ss:$12 sps:$4 sm:$0xff]  }
 0x463   :  { %v6735_v27 = vadd.f32 %v2826_v26, %v2478_v4  ;;  %v2828_v28 = vpop.f32.mrb[31].mxu1  ;;  %3011 = vmatmul.mubr.bf16.vlgmr.msra.gmra.mrb[16].mxu0 %v2839_v17  ;;  %v2835_v31 = vmax.f32 %v6733_v21, 0.0  ;;  %v7373_v4 = vld [vmem:[#allocation14 + $0x94] ss:$12 sps:$4 sm:$0xff]   ;;  %v7404_v17 = vld [vmem:[#allocation14 + $0x13c] ss:$12 sps:$4 sm:$0xff]  }
 0x464   :  { %v6736_v29 = vadd.f32 %v2828_v28, %v2482_v5  ;;  %3138 = vmatpush1.bf16.msra.mxu0 %v7329_v20  ;;  %v2836_v34 = vmax.f32 %v6734_v25, 0.0  ;;  %v7371_v5 = vld [vmem:[#allocation14 + $0x90] ss:$12 sps:$4 sm:$0xff]   ;;  %3551 = vmatprep.subr.bf16.mxu1 %v7373_v4  ;;  %v3054_v4 = vrot.slane %v3045_v59, %v8306_v55 }
 0x465   :  { %v2837_v32 = vmax.f32 %v6735_v27, 0.0  ;;  %3139 = vmatprep.subr.bf16.mxu0 %v7334_v24  ;;  %3552 = vmatpush1.bf16.msra.mxu1 %v7371_v5  ;;  %v6200_v24 = vld [vmem:[%s8449_s8] ss:$0 sm:$0xff] }
 0x466   :  { %v2838_v35 = vmax.f32 %v6736_v29, 0.0  ;;  %3553 = vmatprep.subr.bf16.mxu1 %v7376_v60  ;;  %v7381_v29 = vld [vmem:[#allocation14 + $0x8] ss:$12 sps:$4 sm:$0xff]   ;;  %v7464_v59 = vld [vmem:[#allocation16 + $0xec] ss:$16 sps:$4 sm:$0xff]  }
 0x467   :  { %v2841_v36 = vpack.c.bf16 %v2837_v32, %v2835_v31  ;;  %v7385_v32 = vld [vmem:[#allocation14 + $0xe0] ss:$12 sps:$4 sm:$0xff]  }
 0x468   :  { %v2842_v37 = vpack.c.bf16 %v2838_v35, %v2836_v34  ;;  %3140 = vmatpush1.bf16.msra.mxu0 %v7332_v30 }
 0x469   :  { %3141 = vmatprep.subr.bf16.mxu0 %v7337_v33  ;;  %3554 = vmatpush1.bf16.msra.mxu1 %v7374_v6 }
 0x46a   :  { %3018 = vmatprep.mubr.bf16.mxu0 %v2842_v37  ;;  %3555 = vmatprep.subr.bf16.mxu1 %v7379_v7  ;;  %v7386_v37 = vld [vmem:[#allocation14 + $0x20] ss:$12 sps:$4 sm:$0xff]  }
 0x46b   :  { %3019 = vmatmul.mubr.bf16.gmra.mrb[20].mxu0 %v2841_v36 }
 0x46c   :  { %3142 = vmatpush1.bf16.msra.mxu0 %v7335_v38  ;;  %3169 = vmatprep.mubr.bf16.mxu0 %v8063_v44 }
 0x46d   :  { %3143 = vmatprep.subr.bf16.mxu0 %v7340_v39  ;;  %3556 = vmatpush1.bf16.msra.mxu1 %v7377_v8  ;;  %v7390_v39 = vld [vmem:[#allocation14 + $0xf8] ss:$12 sps:$4 sm:$0xff]  }
 0x46e   :  { %3557 = vmatprep.subr.bf16.mxu1 %v7384_v9 }
 0x470   :  { %3144 = vmatpush1.bf16.msra.mxu0 %v7338_v40 }
 0x471   :  { %3145 = vmatprep.subr.bf16.mxu0 %v7343_v41  ;;  %3558 = vmatpush1.bf16.msra.mxu1 %v7382_v10 }
 0x472   :  { %3559 = vmatprep.subr.bf16.mxu1 %v7389_v11 }
 0x474   :  { %3146 = vmatpush1.bf16.msra.mxu0 %v7341_v42  ;;  %v7391_v42 = vld [vmem:[#allocation14 + $0x38] ss:$12 sps:$4 sm:$0xff]  }
 0x475   :  { %3147 = vmatprep.subr.bf16.mxu0 %v7346_v43  ;;  %3560 = vmatpush1.bf16.msra.mxu1 %v7387_v12 }
 0x476   :  { %3561 = vmatprep.subr.bf16.mxu1 %v7394_v13 }
 0x478   :  { %3148 = vmatpush1.bf16.msra.mxu0 %v7344_v45  ;;  %v7395_v45 = vld [vmem:[#allocation14 + $0x110] ss:$12 sps:$4 sm:$0xff]  }
 0x479   :  { %3149 = vmatprep.subr.bf16.mxu0 %v7349_v46  ;;  %3562 = vmatpush1.bf16.msra.mxu1 %v7392_v14  ;;  %v7396_v46 = vld [vmem:[#allocation14 + $0x50] ss:$12 sps:$4 sm:$0xff]  }
 0x47a   :  { %3563 = vmatprep.subr.bf16.mxu1 %v7399_v15 }
 0x47c   :  { %3150 = vmatpush1.bf16.msra.mxu0 %v7347_v47  ;;  %v7400_v47 = vld [vmem:[#allocation14 + $0x128] ss:$12 sps:$4 sm:$0xff]  }
 0x47d   :  { %3151 = vmatprep.subr.bf16.mxu0 %v7352_v48  ;;  %3564 = vmatpush1.bf16.msra.mxu1 %v7397_v16  ;;  %v7401_v48 = vld [vmem:[#allocation14 + $0x68] ss:$12 sps:$4 sm:$0xff]  }
 0x47e   :  { %3565 = vmatprep.subr.bf16.mxu1 %v7404_v17 }
 0x480   :  { %3152 = vmatpush1.bf16.msra.mxu0 %v7350_v49  ;;  %v7405_v49 = vld [vmem:[#allocation14 + $0x140] ss:$12 sps:$4 sm:$0xff]  }
 0x481   :  { %6621 = vmatprep.subr.bf16.mxu0 %v7380_v57  ;;  %3566 = vmatpush1.bf16.msra.mxu1 %v7402_v18  ;;  %v7414_v57 = vld [vmem:[#allocation14 + $0x16c] ss:$12 sps:$4 sm:$0xff]  }
 0x482   :  { %3567 = vmatprep.subr.bf16.mxu1 %v7409_v22  ;;  %v7444_v22 = vld [vmem:[#allocation16 + $0x88] ss:$16 sps:$4 sm:$0xff]  }
 0x485   :  { %3568 = vmatpush1.bf16.msra.mxu1 %v7407_v61  ;;  %v7452_v61 = vld [vmem:[#allocation16 + $0xac] ss:$16 sps:$4 sm:$0xff]  }
 0x486   :  { %3569 = vmatprep.subr.bf16.mxu1 %v7414_v57  ;;  %v7450_v57 = vld [vmem:[#allocation16 + $0xa8] ss:$16 sps:$4 sm:$0xff]  }
 0x489   :  { %3570 = vmatpush1.bf16.msra.mxu1 %v7412_v0  ;;  %v7458_v0 = vld [vmem:[#allocation16 + $0xcc] ss:$16 sps:$4 sm:$0xff]  }
 0x48a   :  { %4363 = vmatprep.subr.bf16.mxu1 %v7422_v58  ;;  %v7461_v58 = vld [vmem:[#allocation16 + $0xe4] ss:$16 sps:$4 sm:$0xff]  }
 0x536   :  { %v6609_v19 = vpop.f32.mrb[16].mxu0 }
 0x537   :  { %v6610_v20 = vpop.f32.mrb[17].mxu0 }
 0x538   :  { %v6611_v21 = vadd.f32 %v6610_v20, %v6609_v19  ;;  %v6612_v23 = vpop.f32.mrb[18].mxu0  ;;  %v7417_v19 = vld [vmem:[#allocation16] ss:$16 sps:$4 sm:$0xff]   ;;  %v7420_v20 = vld [vmem:[#allocation16 + $0x8] ss:$16 sps:$4 sm:$0xff]  }
 0x539   :  { %v6613_v25 = vpop.f32.mrb[19].mxu0 }
 0x53a   :  { %v6614_v26 = vadd.f32 %v6613_v25, %v6612_v23  ;;  %v3013_v27 = vadd.f32 %v6611_v21, %v6200_v24  ;;  %v7428_v25 = vld [vmem:[#allocation16 + $0x2c] ss:$16 sps:$4 sm:$0xff]  }
 0x53c   :  { %v3016_v28 = vadd.f32 %v6614_v26, %v6200_v24 }
 0x53e   :  { %v3027_v30 = vpack.c.bf16 %v3016_v28, %v3013_v27  ;;  %v6615_v31 = vpop.f32.mrb[20].mxu0 }
 0x53f   :  { %v6616_v33 = vpop.f32.mrb[21].mxu0 }
 0x540   :  { %v6617_v34 = vadd.f32 %v6616_v33, %v6615_v31  ;;  %v6618_v35 = vpop.f32.mrb[22].mxu0  ;;  %3170 = vmatmul.mubr.bf16.vlgmr.msra.gmra.mrb[24].mxu0 %v3027_v30  ;;  %v7423_v31 = vld [vmem:[#allocation16 + $0x20] ss:$16 sps:$4 sm:$0xff]  }
 0x541   :  { %v6619_v36 = vpop.f32.mrb[23].mxu0  ;;  %3179 = vmatprep.mubr.bf16.mxu0 %v8063_v44  ;;  %6622 = vmatpush3.bf16.msra.mxu0 %v7381_v29 }
 0x542   :  { %v6620_v38 = vadd.f32 %v6619_v36, %v6618_v35  ;;  %6623 = vmatprep.subr.bf16.mxu0 %v7385_v32  ;;  %v3021_v40 = vadd.f32 %v6617_v34, %v6200_v24  ;;  %v7426_v32 = vld [vmem:[#allocation16 + $0x28] ss:$16 sps:$4 sm:$0xff]   ;;  %v7431_v35 = vld [vmem:[#allocation16 + $0x44] ss:$16 sps:$4 sm:$0xff]   ;;  %v7434_v36 = vld [vmem:[#allocation16 + $0x4c] ss:$16 sps:$4 sm:$0xff]  }
 0x544   :  { %v3024_v41 = vadd.f32 %v6620_v38, %v6200_v24  ;;  %v7425_v24 = vld [vmem:[#allocation16 + $0x24] ss:$16 sps:$4 sm:$0xff]  }
 0x545   :  { %6624 = vmatpush3.bf16.msra.mxu0 %v7386_v37 }
 0x546   :  { %v3028_v43 = vpack.c.bf16 %v3024_v41, %v3021_v40  ;;  %6625 = vmatprep.subr.bf16.mxu0 %v7390_v39  ;;  %v7429_v41 = vld [vmem:[#allocation16 + $0x40] ss:$16 sps:$4 sm:$0xff]  }
 0x548   :  { %3180 = vmatmul.mubr.bf16.gmra.mrb[28].mxu0 %v3028_v43  ;;  %v7437_v43 = vld [vmem:[#allocation16 + $0x64] ss:$16 sps:$4 sm:$0xff]  }
 0x549   :  { %6626 = vmatpush3.bf16.msra.mxu0 %v7391_v42  ;;  %v7432_v42 = vld [vmem:[#allocation16 + $0x48] ss:$16 sps:$4 sm:$0xff]  }
 0x54a   :  { %6627 = vmatprep.subr.bf16.mxu0 %v7395_v45  ;;  %v7440_v45 = vld [vmem:[#allocation16 + $0x6c] ss:$16 sps:$4 sm:$0xff]  }
 0x54d   :  { %6628 = vmatpush3.bf16.msra.mxu0 %v7396_v46  ;;  %v7435_v46 = vld [vmem:[#allocation16 + $0x60] ss:$16 sps:$4 sm:$0xff]  }
 0x54e   :  { %6629 = vmatprep.subr.bf16.mxu0 %v7400_v47  ;;  %v7438_v47 = vld [vmem:[#allocation16 + $0x68] ss:$16 sps:$4 sm:$0xff]  }
 0x551   :  { %6630 = vmatpush3.bf16.msra.mxu0 %v7401_v48  ;;  %v7443_v48 = vld [vmem:[#allocation16 + $0x84] ss:$16 sps:$4 sm:$0xff]  }
 0x552   :  { %6631 = vmatprep.subr.bf16.mxu0 %v7405_v49  ;;  %v7446_v49 = vld [vmem:[#allocation16 + $0x8c] ss:$16 sps:$4 sm:$0xff]  }
 0x555   :  { %6632 = vmatpush3.bf16.msra.mxu0 %v7406_v50  ;;  %v7441_v50 = vld [vmem:[#allocation16 + $0x80] ss:$16 sps:$4 sm:$0xff]  }
 0x556   :  { %6633 = vmatprep.subr.bf16.mxu0 %v7410_v54  ;;  %v7449_v54 = vld [vmem:[#allocation16 + $0xa4] ss:$16 sps:$4 sm:$0xff]  }
 0x559   :  { %6634 = vmatpush3.bf16.msra.mxu0 %v7411_v62  ;;  %v7447_v62 = vld [vmem:[#allocation16 + $0xa0] ss:$16 sps:$4 sm:$0xff]  }
 0x55a   :  { %6635 = vmatprep.subr.bf16.mxu0 %v7415_v63  ;;  %v7455_v63 = vld [vmem:[#allocation16 + $0xc4] ss:$16 sps:$4 sm:$0xff]  }
 0x55d   :  { %6636 = vmatpush3.bf16.msra.mxu0 %v7416_v2  ;;  %v7453_v2 = vld [vmem:[#allocation16 + $0xc0] ss:$16 sps:$4 sm:$0xff]  }
 0x55e   :  { %4257 = vmatprep.subr.bf16.mxu0 %v7419_v3  ;;  %v7456_v3 = vld [vmem:[#allocation16 + $0xc8] ss:$16 sps:$4 sm:$0xff]  }
 0x613   :  { %v3171_v5 = vpop.f32.mrb[24].mxu0 }
 0x614   :  { %v3172_v60 = vadd.f32 %v3171_v5, %v3050_v1  ;;  %v3173_v6 = vpop.f32.mrb[25].mxu0  ;;  %v7467_v5 = vld [vmem:[#allocation16 + $0x104] ss:$16 sps:$4 sm:$0xff]  }
 0x615   :  { %v3174_v7 = vadd.f32 %v3173_v6, %v3054_v4  ;;  %v3175_v8 = vpop.f32.mrb[26].mxu0  ;;  %v7465_v6 = vld [vmem:[#allocation16 + $0x100] ss:$16 sps:$4 sm:$0xff]  }
 0x616   :  { %v3176_v9 = vadd.f32 %v3175_v8, %v3050_v1  ;;  %v3177_v10 = vpop.f32.mrb[27].mxu0  ;;  %v3190_v12 = vmax.f32 %v3172_v60, 0.0  ;;  %v7470_v60 = vld [vmem:[#allocation16 + $0x10c] ss:$16 sps:$4 sm:$0xff]   ;;  %v7473_v8 = vld [vmem:[#allocation16 + $0x124] ss:$16 sps:$4 sm:$0xff]  }
 0x617   :  { %v3178_v11 = vadd.f32 %v3177_v10, %v3054_v4  ;;  %v3191_v14 = vmax.f32 %v3174_v7, 0.0  ;;  %v7468_v7 = vld [vmem:[#allocation16 + $0x108] ss:$16 sps:$4 sm:$0xff]   ;;  %v7471_v10 = vld [vmem:[#allocation16 + $0x120] ss:$16 sps:$4 sm:$0xff]  }
 0x618   :  { %v3192_v13 = vmax.f32 %v3176_v9, 0.0  ;;  %v7476_v9 = vld [vmem:[#allocation16 + $0x12c] ss:$16 sps:$4 sm:$0xff]  }
 0x619   :  { %v3193_v15 = vmax.f32 %v3178_v11, 0.0  ;;  %v7474_v11 = vld [vmem:[#allocation16 + $0x128] ss:$16 sps:$4 sm:$0xff]  }
 0x61a   :  { %v3198_v16 = vpack.c.bf16 %v3192_v13, %v3190_v12  ;;  %v7479_v12 = vld [vmem:[#allocation16 + $0x144] ss:$16 sps:$4 sm:$0xff]   ;;  %v7482_v13 = vld [vmem:[#allocation16 + $0x14c] ss:$16 sps:$4 sm:$0xff]  }
 0x61b   :  { %v3199_v17 = vpack.c.bf16 %v3193_v15, %v3191_v14  ;;  %v3181_v18 = vpop.f32.mrb[28].mxu0  ;;  %v7477_v14 = vld [vmem:[#allocation16 + $0x140] ss:$16 sps:$4 sm:$0xff]   ;;  %v7480_v15 = vld [vmem:[#allocation16 + $0x148] ss:$16 sps:$4 sm:$0xff]  }
 0x61c   :  { %v3182_v21 = vadd.f32 %v3181_v18, %v3050_v1  ;;  %v3183_v23 = vpop.f32.mrb[29].mxu0  ;;  %v7483_v18 = vld [vmem:[#allocation16 + $0x160] ss:$16 sps:$4 sm:$0xff]  }
 0x61d   :  { %v3184_v26 = vadd.f32 %v3183_v23, %v3054_v4  ;;  %v3185_v27 = vpop.f32.mrb[30].mxu0  ;;  %3571 = vmatprep.mubr.bf16.mxu1 %v3199_v17  ;;  %3624 = vmatprep.mubr.bf16.mxu0 %v3199_v17  ;;  %v7488_v17 = vld [vmem:[#allocation16 + $0x16c] ss:$16 sps:$4 sm:$0xff]   ;;  %v7489_v23 = vld [vmem:[#allocation16 + $0x180] ss:$16 sps:$4 sm:$0xff]  }
 0x61e   :  { %v3186_v28 = vadd.f32 %v3185_v27, %v3050_v1  ;;  %v3187_v29 = vpop.f32.mrb[31].mxu0  ;;  %3572 = vmatmul.mubr.bf16.vlgmr.msra.gmra.mrb[32].mxu1 %v3198_v16  ;;  %3625 = vmatmul.mubr.bf16.vlgmr.msra.gmra.mrb[32].mxu0 %v3198_v16  ;;  %v3194_v33 = vmax.f32 %v3182_v21, 0.0  ;;  %v7459_v1 = vld [vmem:[#allocation16 + $0xe0] ss:$16 sps:$4 sm:$0xff]   ;;  %v7485_v16 = vld [vmem:[#allocation16 + $0x164] ss:$16 sps:$4 sm:$0xff]  }
 0x61f   :  { %v3188_v30 = vadd.f32 %v3187_v29, %v3054_v4  ;;  %4258 = vmatpush1.bf16.msra.mxu0 %v7417_v19  ;;  %4364 = vmatpush1.bf16.msra.mxu1 %v7420_v20  ;;  %v3195_v37 = vmax.f32 %v3184_v26, 0.0  ;;  %v7462_v4 = vld [vmem:[#allocation16 + $0xe8] ss:$16 sps:$4 sm:$0xff]   ;;  %v7491_v20 = vld [vmem:[#allocation16 + $0x184] ss:$16 sps:$4 sm:$0xff]  }
 0x620   :  { %v3196_v34 = vmax.f32 %v3186_v28, 0.0  ;;  %4259 = vmatprep.subr.bf16.mxu0 %v7425_v24  ;;  %4365 = vmatprep.subr.bf16.mxu1 %v7428_v25  ;;  %v7486_v19 = vld [vmem:[#allocation16 + $0x168] ss:$16 sps:$4 sm:$0xff]   ;;  %v7494_v21 = vld [vmem:[#allocation16 + $0x18c] ss:$16 sps:$4 sm:$0xff]  }
 0x621   :  { %v3197_v38 = vmax.f32 %v3188_v30, 0.0  ;;  %v7492_v24 = vld [vmem:[#allocation16 + $0x188] ss:$16 sps:$4 sm:$0xff]   ;;  %v7497_v25 = vld [vmem:[#allocation16 + $0x1a4] ss:$16 sps:$4 sm:$0xff]  }
 0x622   :  { %v3200_v39 = vpack.c.bf16 %v3196_v34, %v3194_v33  ;;  %v7500_v26 = vld [vmem:[#allocation16 + $0x1ac] ss:$16 sps:$4 sm:$0xff]   ;;  %v7495_v27 = vld [vmem:[#allocation16 + $0x1a0] ss:$16 sps:$4 sm:$0xff]   ;;  %v7498_v28 = vld [vmem:[#allocation16 + $0x1a8] ss:$16 sps:$4 sm:$0xff]  }
 0x623   :  { %v3201_v40 = vpack.c.bf16 %v3197_v38, %v3195_v37  ;;  %4260 = vmatpush1.bf16.msra.mxu0 %v7423_v31  ;;  %4366 = vmatpush1.bf16.msra.mxu1 %v7426_v32  ;;  %v7503_v29 = vld [vmem:[#allocation16 + $0x1c4] ss:$16 sps:$4 sm:$0xff]   ;;  %v7506_v30 = vld [vmem:[#allocation16 + $0x1cc] ss:$16 sps:$4 sm:$0xff]   ;;  %v7501_v31 = vld [vmem:[#allocation16 + $0x1c0] ss:$16 sps:$4 sm:$0xff]  }
 0x624   :  { %4261 = vmatprep.subr.bf16.mxu0 %v7431_v35  ;;  %4367 = vmatprep.subr.bf16.mxu1 %v7434_v36  ;;  %v7504_v32 = vld [vmem:[#allocation16 + $0x1c8] ss:$16 sps:$4 sm:$0xff]   ;;  %v7509_v33 = vld [vmem:[#allocation16 + $0x1e4] ss:$16 sps:$4 sm:$0xff]   ;;  %v7512_v34 = vld [vmem:[#allocation16 + $0x1ec] ss:$16 sps:$4 sm:$0xff]  }
 0x625   :  { %3581 = vmatprep.mubr.bf16.mxu1 %v3201_v40  ;;  %3632 = vmatprep.mubr.bf16.mxu0 %v3201_v40  ;;  %v7507_v35 = vld [vmem:[#allocation16 + $0x1e0] ss:$16 sps:$4 sm:$0xff]   ;;  %v7510_v36 = vld [vmem:[#allocation16 + $0x1e8] ss:$16 sps:$4 sm:$0xff]   ;;  %v7515_v37 = vld [vmem:[#allocation16 + $0x204] ss:$16 sps:$4 sm:$0xff]  }
 0x626   :  { %3582 = vmatmul.mubr.bf16.gmra.mrb[36].mxu1 %v3200_v39  ;;  %3633 = vmatmul.mubr.bf16.gmra.mrb[36].mxu0 %v3200_v39  ;;  %v7518_v38 = vld [vmem:[#allocation16 + $0x20c] ss:$16 sps:$4 sm:$0xff]  }
 0x627   :  { %4262 = vmatpush1.bf16.msra.mxu0 %v7429_v41  ;;  %4368 = vmatpush1.bf16.msra.mxu1 %v7432_v42  ;;  %v3266_v39 = vld [vmem:[%s8453_s12] sm:$0x7] }
 0x628   :  { %4263 = vmatprep.subr.bf16.mxu0 %v7437_v43  ;;  %4369 = vmatprep.subr.bf16.mxu1 %v7440_v45  ;;  %v3271_v40 = vrot.slane %v3266_v39, %v8297_v52  ;;  %v3275_v41 = vrot.slane %v3266_v39, %v8306_v55  ;;  %v3279_v45 = vrot.slane %v3266_v39, %v8300_v53 }
 0x62b   :  { %4264 = vmatpush1.bf16.msra.mxu0 %v7435_v46  ;;  %4370 = vmatpush1.bf16.msra.mxu1 %v7438_v47 }
 0x62c   :  { %4265 = vmatprep.subr.bf16.mxu0 %v7443_v48  ;;  %4371 = vmatprep.subr.bf16.mxu1 %v7446_v49 }
 0x62f   :  { %4266 = vmatpush1.bf16.msra.mxu0 %v7441_v50  ;;  %4372 = vmatpush1.bf16.msra.mxu1 %v7444_v22 }
 0x630   :  { %4267 = vmatprep.subr.bf16.mxu0 %v7449_v54  ;;  %4373 = vmatprep.subr.bf16.mxu1 %v7452_v61 }
 0x633   :  { %4268 = vmatpush1.bf16.msra.mxu0 %v7447_v62  ;;  %4374 = vmatpush1.bf16.msra.mxu1 %v7450_v57 }
 0x634   :  { %4269 = vmatprep.subr.bf16.mxu0 %v7455_v63  ;;  %4375 = vmatprep.subr.bf16.mxu1 %v7458_v0 }
 0x637   :  { %4270 = vmatpush1.bf16.msra.mxu0 %v7453_v2  ;;  %4376 = vmatpush1.bf16.msra.mxu1 %v7456_v3 }
 0x638   :  { %4271 = vmatprep.subr.bf16.mxu0 %v7461_v58  ;;  %4377 = vmatprep.subr.bf16.mxu1 %v7464_v59 }
 0x63b   :  { %4272 = vmatpush1.bf16.msra.mxu0 %v7459_v1  ;;  %4378 = vmatpush1.bf16.msra.mxu1 %v7462_v4 }
 0x63c   :  { %4273 = vmatprep.subr.bf16.mxu0 %v7467_v5  ;;  %4379 = vmatprep.subr.bf16.mxu1 %v7470_v60  ;;  %v7513_v60 = vld [vmem:[#allocation16 + $0x200] ss:$16 sps:$4 sm:$0xff]  }
 0x63f   :  { %4274 = vmatpush1.bf16.msra.mxu0 %v7465_v6  ;;  %4380 = vmatpush1.bf16.msra.mxu1 %v7468_v7 }
 0x640   :  { %4275 = vmatprep.subr.bf16.mxu0 %v7473_v8  ;;  %4381 = vmatprep.subr.bf16.mxu1 %v7476_v9 }
 0x643   :  { %4276 = vmatpush1.bf16.msra.mxu0 %v7471_v10  ;;  %4382 = vmatpush1.bf16.msra.mxu1 %v7474_v11  ;;  %v7516_v11 = vld [vmem:[#allocation16 + $0x208] ss:$16 sps:$4 sm:$0xff]  }
 0x644   :  { %4277 = vmatprep.subr.bf16.mxu0 %v7479_v12  ;;  %4383 = vmatprep.subr.bf16.mxu1 %v7482_v13 }
 0x647   :  { %4278 = vmatpush1.bf16.msra.mxu0 %v7477_v14  ;;  %4384 = vmatpush1.bf16.msra.mxu1 %v7480_v15  ;;  %v7521_v15 = vld [vmem:[#allocation16 + $0x224] ss:$16 sps:$4 sm:$0xff]  }
 0x648   :  { %4279 = vmatprep.subr.bf16.mxu0 %v7485_v16  ;;  %4385 = vmatprep.subr.bf16.mxu1 %v7488_v17  ;;  %v7524_v16 = vld [vmem:[#allocation16 + $0x22c] ss:$16 sps:$4 sm:$0xff]  }
 0x64b   :  { %4280 = vmatpush1.bf16.msra.mxu0 %v7483_v18  ;;  %4386 = vmatpush1.bf16.msra.mxu1 %v7486_v19 }
 0x64c   :  { %4281 = vmatprep.subr.bf16.mxu0 %v7491_v20  ;;  %4387 = vmatprep.subr.bf16.mxu1 %v7494_v21 }
 0x64f   :  { %4282 = vmatpush1.bf16.msra.mxu0 %v7489_v23  ;;  %4388 = vmatpush1.bf16.msra.mxu1 %v7492_v24 }
 0x650   :  { %4283 = vmatprep.subr.bf16.mxu0 %v7497_v25  ;;  %4389 = vmatprep.subr.bf16.mxu1 %v7500_v26 }
 0x653   :  { %4284 = vmatpush1.bf16.msra.mxu0 %v7495_v27  ;;  %4390 = vmatpush1.bf16.msra.mxu1 %v7498_v28 }
 0x654   :  { %4285 = vmatprep.subr.bf16.mxu0 %v7503_v29  ;;  %4391 = vmatprep.subr.bf16.mxu1 %v7506_v30  ;;  %v7519_v29 = vld [vmem:[#allocation16 + $0x220] ss:$16 sps:$4 sm:$0xff]   ;;  %v7522_v30 = vld [vmem:[#allocation16 + $0x228] ss:$16 sps:$4 sm:$0xff]  }
 0x657   :  { %4286 = vmatpush1.bf16.msra.mxu0 %v7501_v31  ;;  %4392 = vmatpush1.bf16.msra.mxu1 %v7504_v32 }
 0x658   :  { %4287 = vmatprep.subr.bf16.mxu0 %v7509_v33  ;;  %4393 = vmatprep.subr.bf16.mxu1 %v7512_v34  ;;  %v7527_v33 = vld [vmem:[#allocation16 + $0x244] ss:$16 sps:$4 sm:$0xff]   ;;  %v7530_v34 = vld [vmem:[#allocation16 + $0x24c] ss:$16 sps:$4 sm:$0xff]  }
 0x65b   :  { %4288 = vmatpush1.bf16.msra.mxu0 %v7507_v35  ;;  %4394 = vmatpush1.bf16.msra.mxu1 %v7510_v36 }
 0x65c   :  { %4310 = vmatprep.subr.bf16.mxu0 %v7515_v37  ;;  %4416 = vmatprep.subr.bf16.mxu1 %v7518_v38 }
 0x6f1   :  { %v3573_v42 = vpop.f32.mrb[32].mxu1  ;;  %v6637_v43 = vpop.f32.mrb[32].mxu0 }
 0x6f2   :  { %v3574_v46 = vadd.f32 %v3573_v42, %v3271_v40  ;;  %v3575_v47 = vpop.f32.mrb[33].mxu1  ;;  %v6638_v48 = vpop.f32.mrb[33].mxu0 }
 0x6f3   :  { %v3576_v49 = vadd.f32 %v3575_v47, %v3275_v41  ;;  %v6639_v50 = vadd.f32 %v6638_v48, %v6637_v43  ;;  %v3577_v22 = vpop.f32.mrb[34].mxu1  ;;  %v6640_v54 = vpop.f32.mrb[34].mxu0  ;;  %v7528_v43 = vld [vmem:[#allocation16 + $0x248] ss:$16 sps:$4 sm:$0xff]   ;;  %v7536_v47 = vld [vmem:[#allocation16 + $0x26c] ss:$16 sps:$4 sm:$0xff]  }
 0x6f4   :  { %v3578_v61 = vadd.f32 %v3577_v22, %v3271_v40  ;;  %v3579_v62 = vpop.f32.mrb[35].mxu1  ;;  %v6641_v57 = vpop.f32.mrb[35].mxu0  ;;  %v3641_v3 = vmax.f32 %v3574_v46, 0.0  ;;  %v7533_v46 = vld [vmem:[#allocation16 + $0x264] ss:$16 sps:$4 sm:$0xff]  }
 0x6f5   :  { %v3627_v63 = vadd.f32 %v6639_v50, %v3279_v45  ;;  %v3580_v0 = vadd.f32 %v3579_v62, %v3275_v41  ;;  %v6642_v2 = vadd.f32 %v6641_v57, %v6640_v54  ;;  %v3642_v59 = vmax.f32 %v3576_v49, 0.0  ;;  %v7534_v49 = vld [vmem:[#allocation16 + $0x268] ss:$16 sps:$4 sm:$0xff]   ;;  %v7539_v50 = vld [vmem:[#allocation16 + $0x284] ss:$16 sps:$4 sm:$0xff]  }
 0x6f6   :  { %v3644_v58 = vmax.f32 %v3578_v61, 0.0  ;;  %v7542_v22 = vld [vmem:[#allocation16 + $0x28c] ss:$16 sps:$4 sm:$0xff]   ;;  %v7537_v54 = vld [vmem:[#allocation16 + $0x280] ss:$16 sps:$4 sm:$0xff]  }
 0x6f7   :  { %v3645_v1 = vmax.f32 %v3580_v0, 0.0  ;;  %v3630_v4 = vadd.f32 %v6642_v2, %v3279_v45  ;;  %v3643_v6 = vmax.f32 %v3627_v63, 0.0  ;;  %v7540_v61 = vld [vmem:[#allocation16 + $0x288] ss:$16 sps:$4 sm:$0xff]   ;;  %v7545_v62 = vld [vmem:[#allocation16 + $0x2a4] ss:$16 sps:$4 sm:$0xff]  }
 0x6f8   :  { %v3653_v5 = vpack.c.bf16 %v3644_v58, %v3641_v3  ;;  %v7548_v57 = vld [vmem:[#allocation16 + $0x2ac] ss:$16 sps:$4 sm:$0xff]   ;;  %v7543_v63 = vld [vmem:[#allocation16 + $0x2a0] ss:$16 sps:$4 sm:$0xff]   ;;  %v7546_v0 = vld [vmem:[#allocation16 + $0x2a8] ss:$16 sps:$4 sm:$0xff]  }
 0x6f9   :  { %v3654_v7 = vpack.c.bf16 %v3645_v1, %v3642_v59  ;;  %v3646_v8 = vmax.f32 %v3630_v4, 0.0  ;;  %v3583_v9 = vpop.f32.mrb[36].mxu1  ;;  %v6643_v10 = vpop.f32.mrb[36].mxu0  ;;  %v7551_v2 = vld [vmem:[#allocation16 + $0x2c4] ss:$16 sps:$4 sm:$0xff]  }
 0x6fa   :  { %v3584_v12 = vadd.f32 %v3583_v9, %v3271_v40  ;;  %v3585_v13 = vpop.f32.mrb[37].mxu1  ;;  %v6644_v14 = vpop.f32.mrb[37].mxu0  ;;  %v7554_v3 = vld [vmem:[#allocation16 + $0x2cc] ss:$16 sps:$4 sm:$0xff]   ;;  %v7549_v58 = vld [vmem:[#allocation16 + $0x2c0] ss:$16 sps:$4 sm:$0xff]  }
 0x6fb   :  { %v8359_v17 = vpack.c.bf16 %v3646_v8, %v3643_v6  ;;  %v3586_v18 = vadd.f32 %v3585_v13, %v3275_v41  ;;  %v6645_v19 = vadd.f32 %v6644_v14, %v6643_v10  ;;  %v3587_v20 = vpop.f32.mrb[38].mxu1  ;;  %v6646_v21 = vpop.f32.mrb[38].mxu0  ;;  %4289 = vmatprep.mubr.bf16.mxu0 %v3654_v7  ;;  %4395 = vmatprep.mubr.bf16.mxu1 %v3654_v7  ;;  %v7552_v59 = vld [vmem:[#allocation16 + $0x2c8] ss:$16 sps:$4 sm:$0xff]   ;;  %v7557_v1 = vld [vmem:[#allocation16 + $0x2e4] ss:$16 sps:$4 sm:$0xff]  }
 0x6fc   :  { %v3588_v23 = vadd.f32 %v3587_v20, %v3271_v40  ;;  %v3589_v24 = vpop.f32.mrb[39].mxu1  ;;  %v6647_v25 = vpop.f32.mrb[39].mxu0  ;;  %4290 = vmatmul.mubr.bf16.vlgmr.msra.gmra.mrb[40].mxu0 %v3653_v5  ;;  %4396 = vmatmul.mubr.bf16.vlgmr.msra.gmra.mrb[40].mxu1 %v3653_v5  ;;  %v3647_v31 = vmax.f32 %v3584_v12, 0.0  ;;  %v7560_v4 = vld [vmem:[#allocation16 + $0x2ec] ss:$16 sps:$4 sm:$0xff]  }
 0x6fd   :  { %v3635_v26 = vadd.f32 %v6645_v19, %v3279_v45  ;;  %v3590_v27 = vadd.f32 %v3589_v24, %v3275_v41  ;;  %v6648_v28 = vadd.f32 %v6647_v25, %v6646_v21  ;;  %4311 = vmatpush1.bf16.msra.mxu0 %v7513_v60  ;;  %4417 = vmatpush1.bf16.msra.mxu1 %v7516_v11  ;;  %v3648_v35 = vmax.f32 %v3586_v18, 0.0  ;;  %v7525_v41 = vld [vmem:[#allocation16 + $0x240] ss:$16 sps:$4 sm:$0xff]   ;;  %v7558_v60 = vld [vmem:[#allocation16 + $0x2e8] ss:$16 sps:$4 sm:$0xff]  }
 0x6fe   :  { %v3650_v32 = vmax.f32 %v3588_v23, 0.0  ;;  %4312 = vmatprep.subr.bf16.mxu0 %v7521_v15  ;;  %4418 = vmatprep.subr.bf16.mxu1 %v7524_v16  ;;  %v7555_v5 = vld [vmem:[#allocation16 + $0x2e0] ss:$16 sps:$4 sm:$0xff]   ;;  %v7563_v6 = vld [vmem:[#allocation17 + $0x4] ss:$20 sps:$4 sm:$0xff]  }
 0x6ff   :  { %v3651_v36 = vmax.f32 %v3590_v27, 0.0  ;;  %v3638_v37 = vadd.f32 %v6648_v28, %v3279_v45  ;;  %v3649_v39 = vmax.f32 %v3635_v26, 0.0  ;;  %v7531_v45 = vld [vmem:[#allocation16 + $0x260] ss:$16 sps:$4 sm:$0xff]   ;;  %v7564_v9 = vld [vmem:[#allocation17 + $0x8] ss:$20 sps:$4 sm:$0xff]  }
 0x700   :  { %v3656_v38 = vpack.c.bf16 %v3650_v32, %v3647_v31  ;;  %v7566_v7 = vld [vmem:[#allocation17 + $0xc] ss:$20 sps:$4 sm:$0xff]   ;;  %v7572_v11 = vld [vmem:[#allocation17 + $0x34] ss:$20 sps:$4 sm:$0xff]   ;;  %v7570_v13 = vld [vmem:[#allocation17 + $0x30] ss:$20 sps:$4 sm:$0xff]  }
 0x701   :  { %v3657_v40 = vpack.c.bf16 %v3651_v36, %v3648_v35  ;;  %v3652_v42 = vmax.f32 %v3638_v37, 0.0  ;;  %4313 = vmatpush1.bf16.msra.mxu0 %v7519_v29  ;;  %4419 = vmatpush1.bf16.msra.mxu1 %v7522_v30  ;;  %v7561_v8 = vld [vmem:[#allocation17] ss:$20 sps:$4 sm:$0xff]   ;;  %v7567_v12 = vld [vmem:[#allocation17 + $0x28] ss:$20 sps:$4 sm:$0xff]  }
 0x702   :  { %4314 = vmatprep.subr.bf16.mxu0 %v7527_v33  ;;  %4420 = vmatprep.subr.bf16.mxu1 %v7530_v34  ;;  %v7569_v10 = vld [vmem:[#allocation17 + $0x2c] ss:$20 sps:$4 sm:$0xff]   ;;  %v7575_v14 = vld [vmem:[#allocation17 + $0x54] ss:$20 sps:$4 sm:$0xff]   ;;  %v7578_v15 = vld [vmem:[#allocation17 + $0x5c] ss:$20 sps:$4 sm:$0xff]  }
 0x703   :  { %4299 = vmatprep.mubr.bf16.mxu0 %v3657_v40  ;;  %4405 = vmatprep.mubr.bf16.mxu1 %v3657_v40  ;;  %v8361_v48 = vpack.c.bf16 %v3652_v42, %v3649_v39  ;;  %v7573_v16 = vld [vmem:[#allocation17 + $0x50] ss:$20 sps:$4 sm:$0xff]   ;;  %v7576_v18 = vld [vmem:[#allocation17 + $0x58] ss:$20 sps:$4 sm:$0xff]   ;;  %v7582_v20 = vld [vmem:[#allocation17 + $0x80] ss:$20 sps:$4 sm:$0xff]  }
 0x704   :  { %4300 = vmatmul.mubr.bf16.gmra.mrb[44].mxu0 %v3656_v38  ;;  %4406 = vmatmul.mubr.bf16.gmra.mrb[44].mxu1 %v3656_v38  ;;  %v7581_v19 = vld [vmem:[#allocation17 + $0x7c] ss:$20 sps:$4 sm:$0xff]   ;;  %v7587_v21 = vld [vmem:[#allocation17 + $0xa4] ss:$20 sps:$4 sm:$0xff]   ;;  %v7590_v23 = vld [vmem:[#allocation17 + $0xac] ss:$20 sps:$4 sm:$0xff]  }
 0x705   :  { %4315 = vmatpush1.bf16.msra.mxu0 %v7525_v41  ;;  %4421 = vmatpush1.bf16.msra.mxu1 %v7528_v43  ;;  %v7585_v24 = vld [vmem:[#allocation17 + $0xa0] ss:$20 sps:$4 sm:$0xff]   ;;  %v7588_v25 = vld [vmem:[#allocation17 + $0xa8] ss:$20 sps:$4 sm:$0xff]   ;;  %v7594_v29 = vld [vmem:[#allocation17 + $0xd0] ss:$20 sps:$4 sm:$0xff]  }
 0x706   :  { %4316 = vmatprep.subr.bf16.mxu0 %v7533_v46  ;;  %4422 = vmatprep.subr.bf16.mxu1 %v7536_v47  ;;  %v7593_v26 = vld [vmem:[#allocation17 + $0xcc] ss:$20 sps:$4 sm:$0xff]   ;;  %v7596_v27 = vld [vmem:[#allocation17 + $0xd4] ss:$20 sps:$4 sm:$0xff]   ;;  %v7602_v31 = vld [vmem:[#allocation17 + $0xfc] ss:$20 sps:$4 sm:$0xff]  }
 0x707   :  { %4342 = vmatprep.mubr.bf16.mxu0 %v8063_v44  ;;  %4448 = vmatprep.mubr.bf16.mxu1 %v8063_v44  ;;  %v7591_v28 = vld [vmem:[#allocation17 + $0xc8] ss:$20 sps:$4 sm:$0xff]   ;;  %v7597_v32 = vld [vmem:[#allocation17 + $0xf0] ss:$20 sps:$4 sm:$0xff]   ;;  %v7600_v33 = vld [vmem:[#allocation17 + $0xf8] ss:$20 sps:$4 sm:$0xff]  }
 0x708   :  { %v7599_v30 = vld [vmem:[#allocation17 + $0xf4] ss:$20 sps:$4 sm:$0xff]   ;;  %v7605_v34 = vld [vmem:[#allocation17 + $0x11c] ss:$20 sps:$4 sm:$0xff]   ;;  %v7608_v35 = vld [vmem:[#allocation17 + $0x124] ss:$20 sps:$4 sm:$0xff]  }
 0x709   :  { %4317 = vmatpush1.bf16.msra.mxu0 %v7531_v45  ;;  %4423 = vmatpush1.bf16.msra.mxu1 %v7534_v49  ;;  %v7603_v36 = vld [vmem:[#allocation17 + $0x118] ss:$20 sps:$4 sm:$0xff]   ;;  %v7606_v37 = vld [vmem:[#allocation17 + $0x120] ss:$20 sps:$4 sm:$0xff]   ;;  %v7612_v42 = vld [vmem:[#allocation17 + $0x148] ss:$20 sps:$4 sm:$0xff]  }
 0x70a   :  { %4318 = vmatprep.subr.bf16.mxu0 %v7539_v50  ;;  %4424 = vmatprep.subr.bf16.mxu1 %v7542_v22  ;;  %v7611_v38 = vld [vmem:[#allocation17 + $0x144] ss:$20 sps:$4 sm:$0xff]   ;;  %v7614_v39 = vld [vmem:[#allocation17 + $0x14c] ss:$20 sps:$4 sm:$0xff]   ;;  %v7620_v43 = vld [vmem:[#allocation17 + $0x174] ss:$20 sps:$4 sm:$0xff]  }
 0x70b   :  { %v7609_v40 = vld [vmem:[#allocation17 + $0x140] ss:$20 sps:$4 sm:$0xff]   ;;  %v7615_v46 = vld [vmem:[#allocation17 + $0x168] ss:$20 sps:$4 sm:$0xff]   ;;  %v7618_v47 = vld [vmem:[#allocation17 + $0x170] ss:$20 sps:$4 sm:$0xff]  }
 0x70c   :  { %v7617_v41 = vld [vmem:[#allocation17 + $0x16c] ss:$20 sps:$4 sm:$0xff]   ;;  %v7626_v45 = vld [vmem:[#allocation17 + $0x19c] ss:$20 sps:$4 sm:$0xff]  }
 0x70d   :  { %4319 = vmatpush1.bf16.msra.mxu0 %v7537_v54  ;;  %4425 = vmatpush1.bf16.msra.mxu1 %v7540_v61  ;;  %v7621_v49 = vld [vmem:[#allocation17 + $0x190] ss:$20 sps:$4 sm:$0xff]   ;;  %v7624_v50 = vld [vmem:[#allocation17 + $0x198] ss:$20 sps:$4 sm:$0xff]  }
 0x70e   :  { %4320 = vmatprep.subr.bf16.mxu0 %v7545_v62  ;;  %4426 = vmatprep.subr.bf16.mxu1 %v7548_v57  ;;  %v7629_v22 = vld [vmem:[#allocation17 + $0x1bc] ss:$20 sps:$4 sm:$0xff]   ;;  %v7632_v54 = vld [vmem:[#allocation17 + $0x1c4] ss:$20 sps:$4 sm:$0xff]   ;;  %v7630_v62 = vld [vmem:[#allocation17 + $0x1c0] ss:$20 sps:$4 sm:$0xff]  }
 0x70f   :  { %v7627_v61 = vld [vmem:[#allocation17 + $0x1b8] ss:$20 sps:$4 sm:$0xff]  }
 0x710   :  { %v7635_v57 = vld [vmem:[#allocation17 + $0x1e4] ss:$20 sps:$4 sm:$0xff]  }
 0x711   :  { %4321 = vmatpush1.bf16.msra.mxu0 %v7543_v63  ;;  %4427 = vmatpush1.bf16.msra.mxu1 %v7546_v0  ;;  %v7638_v63 = vld [vmem:[#allocation17 + $0x1ec] ss:$20 sps:$4 sm:$0xff]  }
 0x712   :  { %4322 = vmatprep.subr.bf16.mxu0 %v7551_v2  ;;  %4428 = vmatprep.subr.bf16.mxu1 %v7554_v3  ;;  %v7633_v0 = vld [vmem:[#allocation17 + $0x1e0] ss:$20 sps:$4 sm:$0xff]   ;;  %v7636_v2 = vld [vmem:[#allocation17 + $0x1e8] ss:$20 sps:$4 sm:$0xff]  }
 0x713   :  { %v7641_v3 = vld [vmem:[#allocation17 + $0x20c] ss:$20 sps:$4 sm:$0xff]  }
 0x715   :  { %4323 = vmatpush1.bf16.msra.mxu0 %v7549_v58  ;;  %4429 = vmatpush1.bf16.msra.mxu1 %v7552_v59  ;;  %v7644_v58 = vld [vmem:[#allocation17 + $0x214] ss:$20 sps:$4 sm:$0xff]  }
 0x716   :  { %4324 = vmatprep.subr.bf16.mxu0 %v7557_v1  ;;  %4430 = vmatprep.subr.bf16.mxu1 %v7560_v4  ;;  %v7639_v59 = vld [vmem:[#allocation17 + $0x208] ss:$20 sps:$4 sm:$0xff]   ;;  %v7642_v1 = vld [vmem:[#allocation17 + $0x210] ss:$20 sps:$4 sm:$0xff]  }
 0x717   :  { %v7647_v4 = vld [vmem:[#allocation17 + $0x234] ss:$20 sps:$4 sm:$0xff]  }
 0x719   :  { %4325 = vmatpush1.bf16.msra.mxu0 %v7555_v5  ;;  %4431 = vmatpush1.bf16.msra.mxu1 %v7558_v60  ;;  %v7650_v5 = vld [vmem:[#allocation17 + $0x23c] ss:$20 sps:$4 sm:$0xff]  }
 0x71a   :  { %5544 = vmatprep.subr.bf16.mxu0 %v7563_v6  ;;  %5650 = vmatprep.subr.bf16.mxu1 %v7566_v7  ;;  %v7645_v60 = vld [vmem:[#allocation17 + $0x230] ss:$20 sps:$4 sm:$0xff]   ;;  %v7648_v6 = vld [vmem:[#allocation17 + $0x238] ss:$20 sps:$4 sm:$0xff]  }
 0x71b   :  { %v7653_v7 = vld [vmem:[#allocation17 + $0x25c] ss:$20 sps:$4 sm:$0xff]  }
 0x71c   :  { %4343 = vmatmul.mubr.bf16.vlgmr.msra.gmra.mrb[40].mxu0 %v8359_v17  ;;  %4449 = vmatmul.mubr.bf16.vlgmr.msra.gmra.mrb[40].mxu1 %v8359_v17  ;;  %v7584_v17 = vld [vmem:[#allocation17 + $0x84] ss:$20 sps:$4 sm:$0xff]  }
 0x71d   :  { %4352 = vmatprep.mubr.bf16.mxu0 %v8063_v44  ;;  %4458 = vmatprep.mubr.bf16.mxu1 %v8063_v44  ;;  %v7579_v44 = vld [vmem:[#allocation17 + $0x78] ss:$20 sps:$4 sm:$0xff]  }
 0x71e   :  { %5545 = vmatpush1.bf16.msra.mxu0 %v7561_v8  ;;  %5651 = vmatpush1.bf16.msra.mxu1 %v7564_v9  ;;  %v7656_v8 = vld [vmem:[#allocation17 + $0x264] ss:$20 sps:$4 sm:$0xff]  }
 0x71f   :  { %5546 = vmatprep.subr.bf16.mxu0 %v7569_v10  ;;  %5652 = vmatprep.subr.bf16.mxu1 %v7572_v11  ;;  %v7651_v9 = vld [vmem:[#allocation17 + $0x258] ss:$20 sps:$4 sm:$0xff]   ;;  %v7654_v10 = vld [vmem:[#allocation17 + $0x260] ss:$20 sps:$4 sm:$0xff]  }
 0x720   :  { %v7659_v11 = vld [vmem:[#allocation17 + $0x284] ss:$20 sps:$4 sm:$0xff]  }
 0x722   :  { %5547 = vmatpush1.bf16.msra.mxu0 %v7567_v12  ;;  %5653 = vmatpush1.bf16.msra.mxu1 %v7570_v13  ;;  %v7662_v12 = vld [vmem:[#allocation17 + $0x28c] ss:$20 sps:$4 sm:$0xff]   ;;  %v3755_v13 = vld [vmem:[%s8455_s14] sm:$0xf] }
 0x723   :  { %5548 = vmatprep.subr.bf16.mxu0 %v7575_v14  ;;  %5654 = vmatprep.subr.bf16.mxu1 %v7578_v15  ;;  %v3760_v14 = vrot.slane %v3755_v13, %v8297_v52  ;;  %v3768_v15 = vrot.slane %v3755_v13, %v8300_v53 }
 0x724   :  { %4353 = vmatmul.mubr.bf16.gmra.mrb[44].mxu0 %v8361_v48  ;;  %4459 = vmatmul.mubr.bf16.gmra.mrb[44].mxu1 %v8361_v48  ;;  %v7623_v48 = vld [vmem:[#allocation17 + $0x194] ss:$20 sps:$4 sm:$0xff]  }
 0x726   :  { %5549 = vmatpush1.bf16.msra.mxu0 %v7573_v16  ;;  %5655 = vmatpush1.bf16.msra.mxu1 %v7576_v18  ;;  %v3764_v16 = vrot.slane %v3755_v13, %v8306_v55  ;;  %v3772_v18 = vrot.slane %v3755_v13, %v8309_v56 }
 0x727   :  { %5550 = vmatprep.subr.bf16.mxu0 %v7581_v19  ;;  %5656 = vmatprep.subr.bf16.mxu1 %v7584_v17 }
 0x72a   :  { %5551 = vmatpush1.bf16.msra.mxu0 %v7579_v44  ;;  %5657 = vmatpush1.bf16.msra.mxu1 %v7582_v20 }
 0x72b   :  { %5552 = vmatprep.subr.bf16.mxu0 %v7587_v21  ;;  %5658 = vmatprep.subr.bf16.mxu1 %v7590_v23 }
 0x72e   :  { %5553 = vmatpush1.bf16.msra.mxu0 %v7585_v24  ;;  %5659 = vmatpush1.bf16.msra.mxu1 %v7588_v25 }
 0x72f   :  { %5554 = vmatprep.subr.bf16.mxu0 %v7593_v26  ;;  %5660 = vmatprep.subr.bf16.mxu1 %v7596_v27 }
 0x732   :  { %5555 = vmatpush1.bf16.msra.mxu0 %v7591_v28  ;;  %5661 = vmatpush1.bf16.msra.mxu1 %v7594_v29 }
 0x733   :  { %5556 = vmatprep.subr.bf16.mxu0 %v7599_v30  ;;  %5662 = vmatprep.subr.bf16.mxu1 %v7602_v31 }
 0x736   :  { %5557 = vmatpush1.bf16.msra.mxu0 %v7597_v32  ;;  %5663 = vmatpush1.bf16.msra.mxu1 %v7600_v33 }
 0x737   :  { %5558 = vmatprep.subr.bf16.mxu0 %v7605_v34  ;;  %5664 = vmatprep.subr.bf16.mxu1 %v7608_v35 }
 0x73a   :  { %5559 = vmatpush1.bf16.msra.mxu0 %v7603_v36  ;;  %5665 = vmatpush1.bf16.msra.mxu1 %v7606_v37 }
 0x73b   :  { %5560 = vmatprep.subr.bf16.mxu0 %v7611_v38  ;;  %5666 = vmatprep.subr.bf16.mxu1 %v7614_v39 }
 0x73e   :  { %5561 = vmatpush1.bf16.msra.mxu0 %v7609_v40  ;;  %5667 = vmatpush1.bf16.msra.mxu1 %v7612_v42 }
 0x73f   :  { %5562 = vmatprep.subr.bf16.mxu0 %v7617_v41  ;;  %5668 = vmatprep.subr.bf16.mxu1 %v7620_v43 }
 0x742   :  { %5563 = vmatpush1.bf16.msra.mxu0 %v7615_v46  ;;  %5669 = vmatpush1.bf16.msra.mxu1 %v7618_v47 }
 0x743   :  { %5564 = vmatprep.subr.bf16.mxu0 %v7623_v48  ;;  %5670 = vmatprep.subr.bf16.mxu1 %v7626_v45 }
 0x746   :  { %5565 = vmatpush1.bf16.msra.mxu0 %v7621_v49  ;;  %5671 = vmatpush1.bf16.msra.mxu1 %v7624_v50  ;;  %v7657_v49 = vld [vmem:[#allocation17 + $0x280] ss:$20 sps:$4 sm:$0xff]   ;;  %v7660_v50 = vld [vmem:[#allocation17 + $0x288] ss:$20 sps:$4 sm:$0xff]  }
 0x747   :  { %5566 = vmatprep.subr.bf16.mxu0 %v7629_v22  ;;  %5672 = vmatprep.subr.bf16.mxu1 %v7632_v54 }
 0x74a   :  { %5567 = vmatpush1.bf16.msra.mxu0 %v7627_v61  ;;  %5673 = vmatpush1.bf16.msra.mxu1 %v7630_v62 }
 0x74b   :  { %5568 = vmatprep.subr.bf16.mxu0 %v7635_v57  ;;  %5674 = vmatprep.subr.bf16.mxu1 %v7638_v63  ;;  %v7665_v57 = vld [vmem:[#allocation17 + $0x2ac] ss:$20 sps:$4 sm:$0xff]   ;;  %v7668_v63 = vld [vmem:[#allocation17 + $0x2b4] ss:$20 sps:$4 sm:$0xff]  }
 0x74e   :  { %5569 = vmatpush1.bf16.msra.mxu0 %v7633_v0  ;;  %5675 = vmatpush1.bf16.msra.mxu1 %v7636_v2 }
 0x74f   :  { %5570 = vmatprep.subr.bf16.mxu0 %v7641_v3  ;;  %5676 = vmatprep.subr.bf16.mxu1 %v7644_v58 }
 0x752   :  { %5571 = vmatpush1.bf16.msra.mxu0 %v7639_v59  ;;  %5677 = vmatpush1.bf16.msra.mxu1 %v7642_v1 }
 0x753   :  { %5572 = vmatprep.subr.bf16.mxu0 %v7647_v4  ;;  %5678 = vmatprep.subr.bf16.mxu1 %v7650_v5 }
 0x756   :  { %5573 = vmatpush1.bf16.msra.mxu0 %v7645_v60  ;;  %5679 = vmatpush1.bf16.msra.mxu1 %v7648_v6 }
 0x757   :  { %5574 = vmatprep.subr.bf16.mxu0 %v7653_v7  ;;  %5680 = vmatprep.subr.bf16.mxu1 %v7656_v8  ;;  %v7663_v7 = vld [vmem:[#allocation17 + $0x2a8] ss:$20 sps:$4 sm:$0xff]   ;;  %v7666_v8 = vld [vmem:[#allocation17 + $0x2b0] ss:$20 sps:$4 sm:$0xff]  }
 0x75a   :  { %5575 = vmatpush1.bf16.msra.mxu0 %v7651_v9  ;;  %5681 = vmatpush1.bf16.msra.mxu1 %v7654_v10  ;;  %v7671_v9 = vld [vmem:[#allocation17 + $0x2d4] ss:$20 sps:$4 sm:$0xff]  }
 0x75b   :  { %5597 = vmatprep.subr.bf16.mxu0 %v7659_v11  ;;  %5703 = vmatprep.subr.bf16.mxu1 %v7662_v12 }
 0x7ef   :  { %v4344_v19 = vpop.f32.mrb[40].mxu0  ;;  %v4450_v17 = vpop.f32.mrb[40].mxu1 }
 0x7f0   :  { %v6737_v44 = vadd.f32 %v4344_v19, %v3760_v14  ;;  %v6745_v20 = vadd.f32 %v4450_v17, %v3768_v15  ;;  %v4346_v21 = vpop.f32.mrb[41].mxu0  ;;  %v4452_v23 = vpop.f32.mrb[41].mxu1 }
 0x7f1   :  { %v6738_v24 = vadd.f32 %v4346_v21, %v3764_v16  ;;  %v6746_v25 = vadd.f32 %v4452_v23, %v3772_v18  ;;  %v4348_v26 = vpop.f32.mrb[42].mxu0  ;;  %v4454_v27 = vpop.f32.mrb[42].mxu1  ;;  %v7669_v23 = vld [vmem:[#allocation17 + $0x2d0] ss:$20 sps:$4 sm:$0xff]  }
 0x7f2   :  { %v6739_v28 = vadd.f32 %v4348_v26, %v3760_v14  ;;  %v6747_v29 = vadd.f32 %v4454_v27, %v3768_v15  ;;  %v4350_v30 = vpop.f32.mrb[43].mxu0  ;;  %v4456_v31 = vpop.f32.mrb[43].mxu1  ;;  %v4469_v34 = vmax.f32 %v6737_v44, 0.0  ;;  %v4471_v35 = vmax.f32 %v6745_v20, 0.0  ;;  %v7680_v26 = vld [vmem:[#allocation17 + $0x304] ss:$20 sps:$4 sm:$0xff]  }
 0x7f3   :  { %v6740_v32 = vadd.f32 %v4350_v30, %v3764_v16  ;;  %v6748_v33 = vadd.f32 %v4456_v31, %v3772_v18  ;;  %v4470_v38 = vmax.f32 %v6738_v24, 0.0  ;;  %v4472_v39 = vmax.f32 %v6746_v25, 0.0  ;;  %v7672_v24 = vld [vmem:[#allocation17 + $0x2d8] ss:$20 sps:$4 sm:$0xff]   ;;  %v7677_v25 = vld [vmem:[#allocation17 + $0x2fc] ss:$20 sps:$4 sm:$0xff]  }
 0x7f4   :  { %v4473_v36 = vmax.f32 %v6739_v28, 0.0  ;;  %v4475_v37 = vmax.f32 %v6747_v29, 0.0  ;;  %v7675_v27 = vld [vmem:[#allocation17 + $0x2f8] ss:$20 sps:$4 sm:$0xff]   ;;  %v7678_v28 = vld [vmem:[#allocation17 + $0x300] ss:$20 sps:$4 sm:$0xff]  }
 0x7f5   :  { %v4474_v40 = vmax.f32 %v6740_v32, 0.0  ;;  %v4476_v42 = vmax.f32 %v6748_v33, 0.0  ;;  %v7683_v29 = vld [vmem:[#allocation17 + $0x324] ss:$20 sps:$4 sm:$0xff]   ;;  %v7686_v30 = vld [vmem:[#allocation17 + $0x32c] ss:$20 sps:$4 sm:$0xff]  }
 0x7f6   :  { %v8378_v41 = vpack.c.bf16 %v4473_v36, %v4469_v34  ;;  %v8380_v43 = vpack.c.bf16 %v4475_v37, %v4471_v35  ;;  %v7681_v31 = vld [vmem:[#allocation17 + $0x320] ss:$20 sps:$4 sm:$0xff]   ;;  %v7684_v32 = vld [vmem:[#allocation17 + $0x328] ss:$20 sps:$4 sm:$0xff]   ;;  %v7690_v36 = vld [vmem:[#allocation17 + $0x350] ss:$20 sps:$4 sm:$0xff]  }
 0x7f7   :  { %v8382_v46 = vpack.c.bf16 %v4474_v40, %v4470_v38  ;;  %v8384_v47 = vpack.c.bf16 %v4476_v42, %v4472_v39  ;;  %v4354_v48 = vpop.f32.mrb[44].mxu0  ;;  %v4460_v45 = vpop.f32.mrb[44].mxu1  ;;  %v7689_v33 = vld [vmem:[#allocation17 + $0x34c] ss:$20 sps:$4 sm:$0xff]   ;;  %v7692_v34 = vld [vmem:[#allocation17 + $0x354] ss:$20 sps:$4 sm:$0xff]  }
 0x7f8   :  { %v6741_v22 = vadd.f32 %v4354_v48, %v3760_v14  ;;  %v6749_v54 = vadd.f32 %v4460_v45, %v3768_v15  ;;  %v4356_v61 = vpop.f32.mrb[45].mxu0  ;;  %v4462_v62 = vpop.f32.mrb[45].mxu1  ;;  %v7687_v35 = vld [vmem:[#allocation17 + $0x348] ss:$20 sps:$4 sm:$0xff]   ;;  %v7693_v39 = vld [vmem:[#allocation17 + $0x370] ss:$20 sps:$4 sm:$0xff]  }
 0x7f9   :  { %v6742_v0 = vadd.f32 %v4356_v61, %v3764_v16  ;;  %v6750_v2 = vadd.f32 %v4462_v62, %v3772_v18  ;;  %v4358_v3 = vpop.f32.mrb[46].mxu0  ;;  %v4464_v58 = vpop.f32.mrb[46].mxu1  ;;  %5576 = vmatprep.mubr.bf16.mxu0 %v8382_v46  ;;  %5682 = vmatprep.mubr.bf16.mxu1 %v8382_v46  ;;  %v7695_v37 = vld [vmem:[#allocation17 + $0x374] ss:$20 sps:$4 sm:$0xff]   ;;  %v7698_v38 = vld [vmem:[#allocation17 + $0x37c] ss:$20 sps:$4 sm:$0xff]  }
 0x7fa   :  { %v6743_v59 = vadd.f32 %v4358_v3, %v3760_v14  ;;  %v6751_v1 = vadd.f32 %v4464_v58, %v3768_v15  ;;  %v4360_v4 = vpop.f32.mrb[47].mxu0  ;;  %v4466_v5 = vpop.f32.mrb[47].mxu1  ;;  %5577 = vmatmul.mubr.bf16.vlgmr.msra.gmra.mrb[48].mxu0 %v8378_v41  ;;  %5683 = vmatmul.mubr.bf16.vlgmr.msra.gmra.mrb[48].mxu1 %v8378_v41  ;;  %v4477_v10 = vmax.f32 %v6741_v22, 0.0  ;;  %v4479_v11 = vmax.f32 %v6749_v54, 0.0  ;;  %v7674_v14 = vld [vmem:[#allocation17 + $0x2dc] ss:$20 sps:$4 sm:$0xff]  }
 0x7fb   :  { %v6744_v60 = vadd.f32 %v4360_v4, %v3764_v16  ;;  %v6752_v6 = vadd.f32 %v4466_v5, %v3772_v18  ;;  %5598 = vmatpush1.bf16.msra.mxu0 %v7657_v49  ;;  %5704 = vmatpush1.bf16.msra.mxu1 %v7660_v50  ;;  %v4478_v15 = vmax.f32 %v6742_v0, 0.0  ;;  %v4480_v19 = vmax.f32 %v6750_v2, 0.0  ;;  %v7696_v40 = vld [vmem:[#allocation17 + $0x378] ss:$20 sps:$4 sm:$0xff]   ;;  %v7701_v42 = vld [vmem:[#allocation17 + $0x39c] ss:$20 sps:$4 sm:$0xff]  }
 0x7fc   :  { %v4481_v12 = vmax.f32 %v6743_v59, 0.0  ;;  %v4483_v13 = vmax.f32 %v6751_v1, 0.0  ;;  %5599 = vmatprep.subr.bf16.mxu0 %v7665_v57  ;;  %5705 = vmatprep.subr.bf16.mxu1 %v7668_v63  ;;  %v7704_v48 = vld [vmem:[#allocation17 + $0x3a4] ss:$20 sps:$4 sm:$0xff]   ;;  %v7702_v49 = vld [vmem:[#allocation17 + $0x3a0] ss:$20 sps:$4 sm:$0xff]  }
 0x7fd   :  { %v4482_v17 = vmax.f32 %v6744_v60, 0.0  ;;  %v4484_v44 = vmax.f32 %v6752_v6, 0.0  ;;  %v7699_v45 = vld [vmem:[#allocation17 + $0x398] ss:$20 sps:$4 sm:$0xff]   ;;  %v7705_v54 = vld [vmem:[#allocation17 + $0x3c0] ss:$20 sps:$4 sm:$0xff]  }
 0x7fe   :  { %v8390_v20 = vpack.c.bf16 %v4481_v12, %v4477_v10  ;;  %v8392_v16 = vpack.c.bf16 %v4483_v13, %v4479_v11  ;;  %v7707_v50 = vld [vmem:[#allocation17 + $0x3c4] ss:$20 sps:$4 sm:$0xff]   ;;  %v7710_v22 = vld [vmem:[#allocation17 + $0x3cc] ss:$20 sps:$4 sm:$0xff]   ;;  %v7708_v61 = vld [vmem:[#allocation17 + $0x3c8] ss:$20 sps:$4 sm:$0xff]  }
 0x7ff   :  { %v8394_v18 = vpack.c.bf16 %v4482_v17, %v4478_v15  ;;  %v8396_v21 = vpack.c.bf16 %v4484_v44, %v4480_v19  ;;  %5600 = vmatpush1.bf16.msra.mxu0 %v7663_v7  ;;  %5706 = vmatpush1.bf16.msra.mxu1 %v7666_v8  ;;  %v7713_v62 = vld [vmem:[#allocation17 + $0x3ec] ss:$20 sps:$4 sm:$0xff]   ;;  %v7716_v57 = vld [vmem:[#allocation17 + $0x3f4] ss:$20 sps:$4 sm:$0xff]   ;;  %v7714_v0 = vld [vmem:[#allocation17 + $0x3f0] ss:$20 sps:$4 sm:$0xff]  }
 0x800   :  { %5601 = vmatprep.subr.bf16.mxu0 %v7671_v9  ;;  %5707 = vmatprep.subr.bf16.mxu1 %v7674_v14  ;;  %v7711_v63 = vld [vmem:[#allocation17 + $0x3e8] ss:$20 sps:$4 sm:$0xff]   ;;  %v7717_v58 = vld [vmem:[#allocation17 + $0x410] ss:$20 sps:$4 sm:$0xff]   ;;  %v7720_v59 = vld [vmem:[#allocation17 + $0x418] ss:$20 sps:$4 sm:$0xff]  }
 0x801   :  { %5586 = vmatprep.mubr.bf16.mxu0 %v8394_v18  ;;  %5692 = vmatprep.mubr.bf16.mxu1 %v8394_v18  ;;  %v7719_v2 = vld [vmem:[#allocation17 + $0x414] ss:$20 sps:$4 sm:$0xff]   ;;  %v7722_v3 = vld [vmem:[#allocation17 + $0x41c] ss:$20 sps:$4 sm:$0xff]   ;;  %v7728_v4 = vld [vmem:[#allocation17 + $0x444] ss:$20 sps:$4 sm:$0xff]  }
 0x802   :  { %5587 = vmatmul.mubr.bf16.gmra.mrb[52].mxu0 %v8390_v20  ;;  %5693 = vmatmul.mubr.bf16.gmra.mrb[52].mxu1 %v8390_v20  ;;  %v7725_v1 = vld [vmem:[#allocation17 + $0x43c] ss:$20 sps:$4 sm:$0xff]   ;;  %v7723_v5 = vld [vmem:[#allocation17 + $0x438] ss:$20 sps:$4 sm:$0xff]   ;;  %v7726_v60 = vld [vmem:[#allocation17 + $0x440] ss:$20 sps:$4 sm:$0xff]  }
 0x803   :  { %5602 = vmatpush1.bf16.msra.mxu0 %v7669_v23  ;;  %5708 = vmatpush1.bf16.msra.mxu1 %v7672_v24  ;;  %v7731_v6 = vld [vmem:[#allocation17 + $0x464] ss:$20 sps:$4 sm:$0xff]   ;;  %v7734_v7 = vld [vmem:[#allocation17 + $0x46c] ss:$20 sps:$4 sm:$0xff]   ;;  %v7732_v9 = vld [vmem:[#allocation17 + $0x468] ss:$20 sps:$4 sm:$0xff]  }
 0x804   :  { %5629 = vmatprep.mubr.bf16.mxu0 %v8384_v47  ;;  %5735 = vmatprep.mubr.bf16.mxu1 %v8384_v47  ;;  %v7729_v8 = vld [vmem:[#allocation17 + $0x460] ss:$20 sps:$4 sm:$0xff]   ;;  %v7735_v12 = vld [vmem:[#allocation17 + $0x488] ss:$20 sps:$4 sm:$0xff]   ;;  %v7738_v13 = vld [vmem:[#allocation17 + $0x490] ss:$20 sps:$4 sm:$0xff]  }
 0x805   :  { %5603 = vmatprep.subr.bf16.mxu0 %v7677_v25  ;;  %5709 = vmatprep.subr.bf16.mxu1 %v7680_v26  ;;  %v7737_v10 = vld [vmem:[#allocation17 + $0x48c] ss:$20 sps:$4 sm:$0xff]   ;;  %v7740_v11 = vld [vmem:[#allocation17 + $0x494] ss:$20 sps:$4 sm:$0xff]   ;;  %v7746_v15 = vld [vmem:[#allocation17 + $0x4bc] ss:$20 sps:$4 sm:$0xff]  }
 0x806   :  { %v7743_v14 = vld [vmem:[#allocation17 + $0x4b4] ss:$20 sps:$4 sm:$0xff]   ;;  %v7741_v19 = vld [vmem:[#allocation17 + $0x4b0] ss:$20 sps:$4 sm:$0xff]   ;;  %v7744_v17 = vld [vmem:[#allocation17 + $0x4b8] ss:$20 sps:$4 sm:$0xff]  }
 0x807   :  { %5604 = vmatpush1.bf16.msra.mxu0 %v7675_v27  ;;  %5710 = vmatpush1.bf16.msra.mxu1 %v7678_v28  ;;  %v7749_v44 = vld [vmem:[#allocation17 + $0x4dc] ss:$20 sps:$4 sm:$0xff]   ;;  %v7752_v23 = vld [vmem:[#allocation17 + $0x4e4] ss:$20 sps:$4 sm:$0xff]   ;;  %v7750_v25 = vld [vmem:[#allocation17 + $0x4e0] ss:$20 sps:$4 sm:$0xff]  }
 0x808   :  { %5605 = vmatprep.subr.bf16.mxu0 %v7683_v29  ;;  %5711 = vmatprep.subr.bf16.mxu1 %v7686_v30  ;;  %v7747_v24 = vld [vmem:[#allocation17 + $0x4d8] ss:$20 sps:$4 sm:$0xff]   ;;  %v7753_v26 = vld [vmem:[#allocation17 + $0x150] ss:$20 sps:$4 sm:$0xff]  }
 0x809   :  { %v7754_v27 = vld [vmem:[#allocation17 + $0x3d0] ss:$20 sps:$4 sm:$0xff]   ;;  %v7757_v30 = vld [vmem:[#allocation17 + $0x178] ss:$20 sps:$4 sm:$0xff]  }
 0x80a   :  { %v7755_v28 = vld [vmem:[#allocation17 + $0x10] ss:$20 sps:$4 sm:$0xff]  }
 0x80b   :  { %5606 = vmatpush1.bf16.msra.mxu0 %v7681_v31  ;;  %5712 = vmatpush1.bf16.msra.mxu1 %v7684_v32  ;;  %v7756_v29 = vld [vmem:[#allocation17 + $0x290] ss:$20 sps:$4 sm:$0xff]   ;;  %v7758_v31 = vld [vmem:[#allocation17 + $0x3f8] ss:$20 sps:$4 sm:$0xff]  }
 0x80c   :  { %5607 = vmatprep.subr.bf16.mxu0 %v7689_v33  ;;  %5713 = vmatprep.subr.bf16.mxu1 %v7692_v34  ;;  %v7759_v32 = vld [vmem:[#allocation17 + $0x38] ss:$20 sps:$4 sm:$0xff]   ;;  %v7761_v34 = vld [vmem:[#allocation17 + $0x1a0] ss:$20 sps:$4 sm:$0xff]  }
 0x80d   :  { %v7760_v33 = vld [vmem:[#allocation17 + $0x2b8] ss:$20 sps:$4 sm:$0xff]  }
 0x80f   :  { %5608 = vmatpush1.bf16.msra.mxu0 %v7687_v35  ;;  %5714 = vmatpush1.bf16.msra.mxu1 %v7690_v36  ;;  %v7762_v35 = vld [vmem:[#allocation17 + $0x420] ss:$20 sps:$4 sm:$0xff]  }
 0x810   :  { %5609 = vmatprep.subr.bf16.mxu0 %v7695_v37  ;;  %5715 = vmatprep.subr.bf16.mxu1 %v7698_v38  ;;  %v7763_v36 = vld [vmem:[#allocation17 + $0x60] ss:$20 sps:$4 sm:$0xff]   ;;  %v7765_v38 = vld [vmem:[#allocation17 + $0x1c8] ss:$20 sps:$4 sm:$0xff]  }
 0x811   :  { %v7764_v37 = vld [vmem:[#allocation17 + $0x2e0] ss:$20 sps:$4 sm:$0xff]  }
 0x813   :  { %5610 = vmatpush1.bf16.msra.mxu0 %v7693_v39  ;;  %5716 = vmatpush1.bf16.msra.mxu1 %v7696_v40  ;;  %v7766_v39 = vld [vmem:[#allocation17 + $0x448] ss:$20 sps:$4 sm:$0xff]  }
 0x814   :  { %5611 = vmatprep.subr.bf16.mxu0 %v7701_v42  ;;  %5717 = vmatprep.subr.bf16.mxu1 %v7704_v48  ;;  %v7767_v40 = vld [vmem:[#allocation17 + $0x88] ss:$20 sps:$4 sm:$0xff]   ;;  %v7769_v48 = vld [vmem:[#allocation17 + $0x1f0] ss:$20 sps:$4 sm:$0xff]  }
 0x815   :  { %v7768_v42 = vld [vmem:[#allocation17 + $0x308] ss:$20 sps:$4 sm:$0xff]  }
 0x817   :  { %5612 = vmatpush1.bf16.msra.mxu0 %v7699_v45  ;;  %5718 = vmatpush1.bf16.msra.mxu1 %v7702_v49  ;;  %v7770_v45 = vld [vmem:[#allocation17 + $0x470] ss:$20 sps:$4 sm:$0xff]  }
 0x818   :  { %5613 = vmatprep.subr.bf16.mxu0 %v7707_v50  ;;  %5719 = vmatprep.subr.bf16.mxu1 %v7710_v22  ;;  %v7771_v49 = vld [vmem:[#allocation17 + $0xb0] ss:$20 sps:$4 sm:$0xff]   ;;  %v7773_v22 = vld [vmem:[#allocation17 + $0x218] ss:$20 sps:$4 sm:$0xff]  }
 0x819   :  { %v7772_v50 = vld [vmem:[#allocation17 + $0x330] ss:$20 sps:$4 sm:$0xff]  }
 0x81b   :  { %5614 = vmatpush1.bf16.msra.mxu0 %v7705_v54  ;;  %5720 = vmatpush1.bf16.msra.mxu1 %v7708_v61  ;;  %v7774_v54 = vld [vmem:[#allocation17 + $0x498] ss:$20 sps:$4 sm:$0xff]   ;;  %v7777_v61 = vld [vmem:[#allocation17 + $0x240] ss:$20 sps:$4 sm:$0xff]  }
 0x81c   :  { %5615 = vmatprep.subr.bf16.mxu0 %v7713_v62  ;;  %5721 = vmatprep.subr.bf16.mxu1 %v7716_v57  ;;  %v7778_v62 = vld [vmem:[#allocation17 + $0x4c0] ss:$20 sps:$4 sm:$0xff]  }
 0x81d   :  { %v7779_v57 = vld [vmem:[#allocation17 + $0x100] ss:$20 sps:$4 sm:$0xff]  }
 0x81f   :  { %5616 = vmatpush1.bf16.msra.mxu0 %v7711_v63  ;;  %5722 = vmatpush1.bf16.msra.mxu1 %v7714_v0  ;;  %v7780_v63 = vld [vmem:[#allocation17 + $0x380] ss:$20 sps:$4 sm:$0xff]   ;;  %v7781_v0 = vld [vmem:[#allocation17 + $0x268] ss:$20 sps:$4 sm:$0xff]  }
 0x820   :  { %5617 = vmatprep.subr.bf16.mxu0 %v7719_v2  ;;  %5723 = vmatprep.subr.bf16.mxu1 %v7722_v3  ;;  %v7782_v2 = vld [vmem:[#allocation17 + $0x4e8] ss:$20 sps:$4 sm:$0xff]  }
 0x821   :  { %v7783_v3 = vld [vmem:[#allocation17 + $0x128] ss:$20 sps:$4 sm:$0xff]  }
 0x823   :  { %5618 = vmatpush1.bf16.msra.mxu0 %v7717_v58  ;;  %5724 = vmatpush1.bf16.msra.mxu1 %v7720_v59  ;;  %v7784_v58 = vld [vmem:[#allocation17 + $0x3a8] ss:$20 sps:$4 sm:$0xff]  }
 0x824   :  { %5619 = vmatprep.subr.bf16.mxu0 %v7725_v1  ;;  %5725 = vmatprep.subr.bf16.mxu1 %v7728_v4  ;;  %v4685_v59 = vld [vmem:[%s8470_s29] sm:$0x1f] }
 0x825   :  { %v4690_v1 = vrot.slane %v4685_v59, %v8297_v52  ;;  %v4698_v4 = vrot.slane %v4685_v59, %v8300_v53 }
 0x827   :  { %5620 = vmatpush1.bf16.msra.mxu0 %v7723_v5  ;;  %5726 = vmatpush1.bf16.msra.mxu1 %v7726_v60 }
 0x828   :  { %5621 = vmatprep.subr.bf16.mxu0 %v7731_v6  ;;  %5727 = vmatprep.subr.bf16.mxu1 %v7734_v7 }
 0x82b   :  { %5622 = vmatpush1.bf16.msra.mxu0 %v7729_v8  ;;  %5728 = vmatpush1.bf16.msra.mxu1 %v7732_v9 }
 0x82c   :  { %5623 = vmatprep.subr.bf16.mxu0 %v7737_v10  ;;  %5729 = vmatprep.subr.bf16.mxu1 %v7740_v11 }
 0x82f   :  { %5624 = vmatpush1.bf16.msra.mxu0 %v7735_v12  ;;  %5730 = vmatpush1.bf16.msra.mxu1 %v7738_v13 }
 0x830   :  { %5625 = vmatprep.subr.bf16.mxu0 %v7743_v14  ;;  %5731 = vmatprep.subr.bf16.mxu1 %v7746_v15 }
 0x833   :  { %5626 = vmatpush1.bf16.msra.mxu0 %v7741_v19  ;;  %5732 = vmatpush1.bf16.msra.mxu1 %v7744_v17 }
 0x834   :  { %5627 = vmatprep.subr.bf16.mxu0 %v7749_v44  ;;  %5733 = vmatprep.subr.bf16.mxu1 %v7752_v23 }
 0x837   :  { %5628 = vmatpush1.bf16.msra.mxu0 %v7747_v24  ;;  %5734 = vmatpush1.bf16.msra.mxu1 %v7750_v25 }
 0x838   :  { %6649 = vmatprep.subr.bf16.mxu0 %v7753_v26  ;;  %6677 = vmatprep.subr.bf16.mxu1 %v7754_v27 }
 0x83a   :  { %5630 = vmatmul.mubr.bf16.vlgmr.msra.gmra.mrb[48].mxu0 %v8380_v43  ;;  %5736 = vmatmul.mubr.bf16.vlgmr.msra.gmra.mrb[48].mxu1 %v8380_v43 }
 0x83b   :  { %5639 = vmatprep.mubr.bf16.mxu0 %v8396_v21  ;;  %5745 = vmatprep.mubr.bf16.mxu1 %v8396_v21 }
 0x83c   :  { %6650 = vmatpush3.bf16.msra.mxu0 %v7755_v28  ;;  %6678 = vmatpush3.bf16.msra.mxu1 %v7756_v29 }
 0x83d   :  { %6651 = vmatprep.subr.bf16.mxu0 %v7757_v30  ;;  %6679 = vmatprep.subr.bf16.mxu1 %v7758_v31 }
 0x840   :  { %6652 = vmatpush3.bf16.msra.mxu0 %v7759_v32  ;;  %6680 = vmatpush3.bf16.msra.mxu1 %v7760_v33  ;;  %v4705_v32 = vsub.s32 4, %v8294_v51 }
 0x841   :  { %6653 = vmatprep.subr.bf16.mxu0 %v7761_v34  ;;  %6681 = vmatprep.subr.bf16.mxu1 %v7762_v35 }
 0x842   :  { %5640 = vmatmul.mubr.bf16.gmra.mrb[52].mxu0 %v8392_v16  ;;  %5746 = vmatmul.mubr.bf16.gmra.mrb[52].mxu1 %v8392_v16  ;;  %v4706_v35 = vrot.slane %v4685_v59, %v4705_v32 }
 0x843   :  { %5788 = vmatprep.mubr.bf16.mxu0 %v8382_v46  ;;  %5837 = vmatprep.mubr.bf16.mxu1 %v8384_v47  ;;  %v7775_v46 = vld [vmem:[#allocation17 + $0xd8] ss:$20 sps:$4 sm:$0xff]  }
 0x844   :  { %6654 = vmatpush3.bf16.msra.mxu0 %v7763_v36  ;;  %6682 = vmatpush3.bf16.msra.mxu1 %v7764_v37  ;;  %v7776_v47 = vld [vmem:[#allocation17 + $0x358] ss:$20 sps:$4 sm:$0xff]  }
 0x845   :  { %6655 = vmatprep.subr.bf16.mxu0 %v7765_v38  ;;  %6683 = vmatprep.subr.bf16.mxu1 %v7766_v39 }
 0x848   :  { %6656 = vmatpush3.bf16.msra.mxu0 %v7767_v40  ;;  %6684 = vmatpush3.bf16.msra.mxu1 %v7768_v42 }
 0x849   :  { %6657 = vmatprep.subr.bf16.mxu0 %v7769_v48  ;;  %6685 = vmatprep.subr.bf16.mxu1 %v7770_v45 }
 0x84c   :  { %6658 = vmatpush3.bf16.msra.mxu0 %v7771_v49  ;;  %6686 = vmatpush3.bf16.msra.mxu1 %v7772_v50 }
 0x84d   :  { %6659 = vmatprep.subr.bf16.mxu0 %v7773_v22  ;;  %6687 = vmatprep.subr.bf16.mxu1 %v7774_v54 }
 0x850   :  { %6660 = vmatpush3.bf16.msra.mxu0 %v7775_v46  ;;  %6688 = vmatpush3.bf16.msra.mxu1 %v7776_v47 }
 0x851   :  { %6661 = vmatprep.subr.bf16.mxu0 %v7777_v61  ;;  %6689 = vmatprep.subr.bf16.mxu1 %v7778_v62 }
 0x854   :  { %6662 = vmatpush3.bf16.msra.mxu0 %v7779_v57  ;;  %6690 = vmatpush3.bf16.msra.mxu1 %v7780_v63 }
 0x855   :  { %6663 = vmatprep.subr.bf16.mxu0 %v7781_v0  ;;  %6691 = vmatprep.subr.bf16.mxu1 %v7782_v2 }
 0x858   :  { %6664 = vmatpush3.bf16.msra.mxu0 %v7783_v3  ;;  %6692 = vmatpush3.bf16.msra.mxu1 %v7784_v58 }
 0x85b   :  { %5789 = vmatmul.mubr.bf16.vlgmr.msra.gmra.mrb[56].mxu0 %v8378_v41  ;;  %5838 = vmatmul.mubr.bf16.vlgmr.msra.gmra.mrb[56].mxu1 %v8380_v43  ;;  %v4694_v41 = vrot.slane %v4685_v59, %v8306_v55  ;;  %v4702_v43 = vrot.slane %v4685_v59, %v8309_v56 }
 0x85c   :  { %5796 = vmatprep.mubr.bf16.mxu0 %v8394_v18  ;;  %5845 = vmatprep.mubr.bf16.mxu1 %v8396_v21 }
 0x863   :  { %5797 = vmatmul.mubr.bf16.gmra.mrb[60].mxu0 %v8390_v20  ;;  %5846 = vmatmul.mubr.bf16.gmra.mrb[60].mxu1 %v8392_v16 }
 0x90d   :  { %v5631_v5 = vpop.f32.mrb[48].mxu0  ;;  %v5737_v18 = vpop.f32.mrb[48].mxu1 }
 0x90e   :  { %v6753_v60 = vadd.f32 %v5631_v5, %v4690_v1  ;;  %v6761_v21 = vadd.f32 %v5737_v18, %v4698_v4  ;;  %v5633_v6 = vpop.f32.mrb[49].mxu0  ;;  %v5739_v20 = vpop.f32.mrb[49].mxu1 }
 0x90f   :  { %v6754_v7 = vadd.f32 %v5633_v6, %v4694_v41  ;;  %v6762_v16 = vadd.f32 %v5739_v20, %v4702_v43  ;;  %v5635_v8 = vpop.f32.mrb[50].mxu0  ;;  %v5741_v9 = vpop.f32.mrb[50].mxu1 }
 0x910   :  { %5854 = vst [vmem:[#allocation19] sm:$0xff] %v6753_v60  ;;  %5856 = vst [vmem:[#allocation19 + $0x10] sm:$0xff] %v6761_v21  ;;  %v6755_v10 = vadd.f32 %v5635_v8, %v4690_v1  ;;  %v6763_v52 = vadd.f32 %v5741_v9, %v4698_v4  ;;  %v5637_v11 = vpop.f32.mrb[51].mxu0  ;;  %v5743_v53 = vpop.f32.mrb[51].mxu1 }
 0x911   :  { %5855 = vst [vmem:[#allocation19 + $0x8] sm:$0xff] %v6754_v7  ;;  %5857 = vst [vmem:[#allocation19 + $0x18] sm:$0xff] %v6762_v16  ;;  %v6756_v55 = vadd.f32 %v5637_v11, %v4694_v41  ;;  %v6764_v56 = vadd.f32 %v5743_v53, %v4702_v43 }
 0x912   :  { %5859 = vst [vmem:[#allocation19 + $0x28] sm:$0xff] %v6755_v10  ;;  %5861 = vst [vmem:[#allocation19 + $0x38] sm:$0xff] %v6763_v52 }
 0x913   :  { %5860 = vst [vmem:[#allocation19 + $0x30] sm:$0xff] %v6756_v55  ;;  %5862 = vst [vmem:[#allocation19 + $0x40] sm:$0xff] %v6764_v56 }
 0x915   :  { %v5641_v12 = vpop.f32.mrb[52].mxu0  ;;  %v5747_v13 = vpop.f32.mrb[52].mxu1 }
 0x916   :  { %v6757_v14 = vadd.f32 %v5641_v12, %v4690_v1  ;;  %v6765_v15 = vadd.f32 %v5747_v13, %v4698_v4  ;;  %v5643_v19 = vpop.f32.mrb[53].mxu0  ;;  %v5749_v17 = vpop.f32.mrb[53].mxu1 }
 0x917   :  { %v6758_v44 = vadd.f32 %v5643_v19, %v4694_v41  ;;  %v6766_v23 = vadd.f32 %v5749_v17, %v4702_v43  ;;  %v5645_v24 = vpop.f32.mrb[54].mxu0  ;;  %v5751_v25 = vpop.f32.mrb[54].mxu1 }
 0x918   :  { %5864 = vst [vmem:[#allocation19 + $0x50] sm:$0xff] %v6757_v14  ;;  %5866 = vst [vmem:[#allocation19 + $0x60] sm:$0xff] %v6765_v15  ;;  %v6759_v26 = vadd.f32 %v5645_v24, %v4690_v1  ;;  %v6767_v27 = vadd.f32 %v5751_v25, %v4698_v4  ;;  %v5647_v28 = vpop.f32.mrb[55].mxu0  ;;  %v5753_v29 = vpop.f32.mrb[55].mxu1 }
 0x919   :  { %5865 = vst [vmem:[#allocation19 + $0x58] sm:$0xff] %v6758_v44  ;;  %5867 = vst [vmem:[#allocation19 + $0x68] sm:$0xff] %v6766_v23  ;;  %v6760_v30 = vadd.f32 %v5647_v28, %v4694_v41  ;;  %v6768_v31 = vadd.f32 %v5753_v29, %v4702_v43 }
 0x91a   :  { %5869 = vst [vmem:[#allocation19 + $0x78] sm:$0xff] %v6759_v26  ;;  %5871 = vst [vmem:[#allocation19 + $0x88] sm:$0xff] %v6767_v27 }
 0x91b   :  { %5870 = vst [vmem:[#allocation19 + $0x80] sm:$0xff] %v6760_v30  ;;  %5872 = vst [vmem:[#allocation19 + $0x90] sm:$0xff] %v6768_v31 }
 0x92e   :  { %v6665_v33 = vpop.f32.mrb[56].mxu0  ;;  %v6693_v34 = vpop.f32.mrb[56].mxu1 }
 0x92f   :  { %v6666_v36 = vpop.f32.mrb[57].mxu0  ;;  %v6694_v37 = vpop.f32.mrb[57].mxu1 }
 0x930   :  { %v6667_v38 = vadd.f32 %v6666_v36, %v6665_v33  ;;  %v6695_v39 = vadd.f32 %v6694_v37, %v6693_v34  ;;  %v6668_v40 = vpop.f32.mrb[58].mxu0  ;;  %v6696_v42 = vpop.f32.mrb[58].mxu1 }
 0x931   :  { %v6669_v48 = vpop.f32.mrb[59].mxu0  ;;  %v6697_v45 = vpop.f32.mrb[59].mxu1 }
 0x932   :  { %v5791_v49 = vadd.f32 %v6667_v38, %v4706_v35  ;;  %v6670_v50 = vadd.f32 %v6669_v48, %v6668_v40  ;;  %v6698_v22 = vadd.f32 %v6697_v45, %v6696_v42 }
 0x934   :  { %v5840_v54 = vadd.f32 %v6695_v39, %v5791_v49  ;;  %v5794_v46 = vadd.f32 %v6670_v50, %v4706_v35 }
 0x936   :  { %5858 = vst [vmem:[#allocation19 + $0x20] sm:$0xff] %v5840_v54  ;;  %v5843_v47 = vadd.f32 %v6698_v22, %v5794_v46  ;;  %v6671_v61 = vpop.f32.mrb[60].mxu0  ;;  %v6699_v51 = vpop.f32.mrb[60].mxu1 }
 0x937   :  { %v6672_v62 = vpop.f32.mrb[61].mxu0  ;;  %v6700_v57 = vpop.f32.mrb[61].mxu1 }
 0x938   :  { %5863 = vst [vmem:[#allocation19 + $0x48] sm:$0xff] %v5843_v47  ;;  %v6673_v63 = vadd.f32 %v6672_v62, %v6671_v61  ;;  %v6701_v0 = vadd.f32 %v6700_v57, %v6699_v51  ;;  %v6674_v2 = vpop.f32.mrb[62].mxu0  ;;  %v6702_v3 = vpop.f32.mrb[62].mxu1 }
 0x939   :  { %v6675_v58 = vpop.f32.mrb[63].mxu0  ;;  %v6703_v59 = vpop.f32.mrb[63].mxu1 }
 0x93a   :  { %v5799_v1 = vadd.f32 %v6673_v63, %v4706_v35  ;;  %v6676_v4 = vadd.f32 %v6675_v58, %v6674_v2  ;;  %v6704_v41 = vadd.f32 %v6703_v59, %v6702_v3 }
 0x93c   :  { %v5848_v43 = vadd.f32 %v6701_v0, %v5799_v1  ;;  %v5802_v5 = vadd.f32 %v6676_v4, %v4706_v35 }
 0x93e   :  { %5868 = vst [vmem:[#allocation19 + $0x70] sm:$0xff] %v5848_v43  ;;  %v5851_v18 = vadd.f32 %v6704_v41, %v5802_v5 }
 0x940   :  { %5873 = vst [vmem:[#allocation19 + $0x98] sm:$0xff] %v5851_v18 }
 0x941   :  { %8016 = shalt.err (!%p8013_p0)
}
 0x942   :  { %s8471_s5 = sld [smem:[#allocation30_spill]] }
 0x948   :  { %s8017_s28 = scalar_lea.hbm %s8471_s5, 2560 }
 0x949   :  { %p8018_p1 = scmp.ne.s32.totalorder %s8471_s5, %s8017_s28  ;;  %p8021_p2 = scmp.lt.u32.totalorder %s8017_s28, %s8471_s5 }
 0x94b   :  { %p8023_p3 = pnand %p8021_p2, %p8018_p1 }
 0x94d   :  { %8026 = shalt.err (!%p8023_p3)
}
 0x94e   :  { %5885 = dma.vmem_to_hbm [thread:$0]  %s5880_s26, 2560, %s8471_s5, [#allocation4], %s8052_s11, %s8052_s11, %s8053_s22  }
 0x94f   :  { %8039 = dma.done.wait [#allocation4], 2560  }
 0x950   :  { %8040 = vsyncadd [#allocation4], 4294964736 }
 0x951   :  { %5889 = vsyncpa [#allocation3], 1 }
 0x952   :  { %5890 = vsyncpa [#allocation6], 1 }
 0x953   :  { %5891 = vsyncpa [#allocation9], 1 }
 0x954   :  { %5892 = vsyncpa [#allocation12], 1 }
 0x955   :  { %5893 = vsyncpa [#allocation15], 1 }
 0x956   :  { %5894 = vsyncpa [#allocation18], 1 }
 0x957   :  { %5895 = vsyncpa [#allocation4], 1 }

</bundles_post_ra>
